<compile_context>
chip_gen: v7x
topology: tpu7x:2x2x1
jax: 0.10.0
libtpu: 0.0.40
codegen_flags: <defaults>
</compile_context>

<pallas_src>
import functools

import jax
import jax.numpy as jnp
import numpy as np
from jax.experimental import pallas as pl
from jax.experimental.pallas import tpu as pltpu


def _round_up(x, m):
    return (x + m - 1) // m * m


# ---------------------------------------------------------------------------
# Static per-shape plan (all sizes are Python ints baked into the kernel)
# ---------------------------------------------------------------------------
class Plan:
    def __init__(self, in_dim, h, w):
        assert h % 2 == 0 and w % 2 == 0, "input spatial dims must be even"
        self.in_dim = in_dim
        # layer 1: 4x4/stride-2/pad-1 conv == 2x2/stride-1 conv on the
        # space-to-depth of the (raw, pad=127.5) padded image.
        self.hs, self.ws = (h + 2) // 2, (w + 2) // 2          # s2d spatial (9, 9)
        self.ho1, self.wo1 = self.hs - 1, self.ws - 1          # (8, 8)
        # stride-1 4x4/pad-1 layers 2..4
        self.hp2, self.wp2 = self.ho1 + 2, self.wo1 + 2        # (10, 10)
        self.ho2, self.wo2 = self.hp2 - 3, self.wp2 - 3        # (7, 7)
        self.hp3, self.wp3 = self.ho2 + 2, self.wo2 + 2        # (9, 9)
        self.ho3, self.wo3 = self.hp3 - 3, self.wp3 - 3        # (6, 6)
        self.hp4, self.wp4 = self.ho3 + 2, self.wo3 + 2        # (8, 8)
        self.ho4, self.wo4 = self.hp4 - 3, self.wp4 - 3        # (5, 5)
        # common aligned row pitch (bf16 sublane packing = 16)
        self.R = max(16, _round_up(max(self.ws, self.wp2, self.wp3, self.wp4), 16))
        R = self.R
        self.m1 = self.ho1 * R                                 # 128
        self.m2 = self.ho2 * R                                 # 112
        self.m3 = self.ho3 * R                                 # 96
        self.m4 = self.ho4 * R                                 # 80
        self.len1 = self.hs * R                                # layer-1 input rows (host)
        self.len2 = self.hp2 * R                               # kw-packed VMEM buffers
        self.len3 = self.hp3 * R
        self.len4 = self.hp4 * R
        # TODO(synk): for large images (M per layer >> 128) add M tiling; the
        # PatchAIL use case (small frames) fits in a single tile per layer.


# ---------------------------------------------------------------------------
# The fused kernel: 4 convs, activations never leave VMEM
# ---------------------------------------------------------------------------
def _fused_kernel(in1_ref, w1_ref, b1_ref, w2_ref, b2_ref, w3_ref, b3_ref,
                  w4_ref, b4_ref, o_ref, wide2, wide3, wide4, *, plan):
    R = plan.R

    # pad pixels of every kw-packed buffer must contribute zero
    wide2[...] = jnp.zeros(wide2.shape, wide2.dtype)
    wide3[...] = jnp.zeros(wide3.shape, wide3.dtype)
    wide4[...] = jnp.zeros(wide4.shape, wide4.dtype)

    def conv(read, w_ref, b_ref, kh, m, cout, neg_slope, wo):
        # one ALIGNED (m, kw*Cin) slice per kernel row -> MXU matmul, f32 acc
        acc = jnp.zeros((m, cout), jnp.float32)
        for di in range(kh):                                   # static, unrolled
            acc = acc + jnp.dot(read(di, m), w_ref[di],
                                preferred_element_type=jnp.float32)
        acc = acc + b_ref[...]                                 # f32 epilogue
        if neg_slope is not None:
            acc = jnp.where(acc > 0, acc, neg_slope * acc)
        if wo is not None:
            # zero the over-computed pitch columns so they land as pad zeros
            col = jax.lax.broadcasted_iota(jnp.int32, (m, 1), 0) % R
            acc = jnp.where(col < wo, acc, 0.0)
        return acc

    def scatter(dst_ref, out_f32, cin):
        # write the layer output straight into the next layer's kw-packed buffer:
        #   dst[m + R + 1 - dj, dj*cin:(dj+1)*cin] = out[m]   (4 static shifted stores)
        out_bf = out_f32.astype(dst_ref.dtype)
        m = out_bf.shape[0]
        for dj in range(4):
            dst_ref[pl.ds(R + 1 - dj, m), pl.ds(dj * cin, cin)] = out_bf

    # layer 1: 2x2 conv on space-to-depth input, K = 2 * 4*in_dim
    out1 = conv(lambda di, m: in1_ref[0, pl.ds(di * R, m), :],
                w1_ref, b1_ref, kh=2, m=plan.m1, cout=32,
                neg_slope=0.2, wo=plan.wo1)
    scatter(wide2, out1, 32)

    # layer 2: 4x4 conv, K = 4*32
    out2 = conv(lambda di, m: wide2[pl.ds(di * R, m), :],
                w2_ref, b2_ref, kh=4, m=plan.m2, cout=64,
                neg_slope=0.2, wo=plan.wo2)
    scatter(wide3, out2, 64)

    # layer 3: 4x4 conv, K = 4*64
    out3 = conv(lambda di, m: wide3[pl.ds(di * R, m), :],
                w3_ref, b3_ref, kh=4, m=plan.m3, cout=128,
                neg_slope=0.2, wo=plan.wo3)
    scatter(wide4, out3, 128)

    # layer 4: 4x4 conv, K = 4*128, Cout zero-padded 1 -> 128 (lane-dense store)
    out4 = conv(lambda di, m: wide4[pl.ds(di * R, m), :],
                w4_ref, b4_ref, kh=4, m=plan.m4, cout=128,
                neg_slope=None, wo=None)
    o_ref[0] = out4.astype(o_ref.dtype)


# ---------------------------------------------------------------------------
# Host-side prep (tiny, same-size ops only)
# ---------------------------------------------------------------------------
def _prep_input(obs, plan):
    """Raw NCHW pixels -> bf16 kw-packed space-to-depth layout (N, hs*R, 8*C)."""
    n, c, _, _ = obs.shape
    R, hs, ws = plan.R, plan.hs, plan.ws
    x = jnp.transpose(obs.astype(jnp.float32), (0, 2, 3, 1))            # NHWC
    # zero padding in normalised space == 127.5 raw (normalisation folded into w1/b1)
    xp = jnp.pad(x, ((0, 0), (1, 1), (1, 1), (0, 0)), constant_values=127.5)
    s2d = xp.reshape(n, hs, 2, ws, 2, c)
    s2d = jnp.transpose(s2d, (0, 1, 3, 2, 4, 5)).reshape(n, hs, ws, 4 * c)
    s2d = jnp.pad(s2d, ((0, 0), (0, 0), (0, R - ws), (0, 0)))           # pitch pad
    flat = s2d.reshape(n, hs * R, 4 * c)
    flat = jnp.pad(flat, ((0, 0), (0, 8), (0, 0)))                      # room for +1 shift
    wide = jnp.concatenate([flat[:, 0:hs * R, :], flat[:, 1:hs * R + 1, :]], axis=-1)
    return wide.astype(jnp.bfloat16)                                    # (N, hs*R, 8c)


def init_patch_discriminator_params(in_dim, key):
    shapes = [(32, in_dim, 4, 4), (64, 32, 4, 4), (128, 64, 4, 4), (1, 128, 4, 4)]
    params = {}
    for idx, shp in enumerate(shapes, start=1):
        key, kw_, kb_ = jax.random.split(key, 3)
        fan_in = shp[1] * shp[2] * shp[3]
        scale = 1.0 / np.sqrt(fan_in)
        params[f"w{idx}"] = scale * jax.random.normal(kw_, shp, jnp.float32)
        params[f"b{idx}"] = 0.01 * jax.random.normal(kb_, (shp[0],), jnp.float32)
    return params


def prepare_params(params):
    """One-time weight packing (fold normalisation, s2d-reindex, kw-pack, bf16)."""
    packed = {}
    w1, b1 = params["w1"], params["b1"]                        # (32, C, 4, 4), (32,)
    cout1, c = w1.shape[0], w1.shape[1]
    w1n = w1 / 255.0                                           # fold x/255
    b1n = b1 - 0.5 * jnp.sum(w1, axis=(1, 2, 3))               # fold -0.5
    # 4x4/stride-2 -> 2x2/stride-1 on s2d channels (p, q, c); kh4 = 2u+p, kw4 = 2v+q
    w1r = w1n.reshape(cout1, c, 2, 2, 2, 2)                    # (co, c, u, p, v, q)
    w1r = jnp.transpose(w1r, (2, 4, 3, 5, 1, 0))               # (u, v, p, q, c, co)
    packed["w1"] = w1r.reshape(2, 2 * 4 * c, cout1).astype(jnp.bfloat16)
    packed["b1"] = b1n.reshape(1, cout1).astype(jnp.float32)
    for idx in (2, 3, 4):
        w = params[f"w{idx}"]                                  # (Cout, Cin, 4, 4)
        b = params[f"b{idx}"]
        cout, cin = w.shape[0], w.shape[1]
        wt = jnp.transpose(w, (2, 3, 1, 0)).reshape(4, 4 * cin, cout)   # (di, dj*Cin, Cout)
        if idx == 4:
            # lane-dense store: pad Cout 1 -> 128 with zero columns (free MXU lanes)
            wt = jnp.pad(wt, ((0, 0), (0, 0), (0, 128 - cout)))
            b = jnp.pad(b, (0, 128 - cout))
            cout = 128
        packed[f"w{idx}"] = wt.astype(jnp.bfloat16)
        packed[f"b{idx}"] = b.reshape(1, cout).astype(jnp.float32)
    return packed


# ---------------------------------------------------------------------------
# Forward pass: one pallas_call for the whole network
# ---------------------------------------------------------------------------
def patch_discriminator_forward(obs, packed, plan):
    """obs: (N, in_dim, H, W) raw pixels in [0, 255].  Returns (N, 1, H', W') f32."""
    n = obs.shape[0]
    in1 = _prep_input(obs, plan)
    kernel = functools.partial(_fused_kernel, plan=plan)
    out = pl.pallas_call(
        kernel,
        out_shape=jax.ShapeDtypeStruct((n, plan.m4, 128), jnp.float32),
        grid=(n,),
        in_specs=[
            pl.BlockSpec((1,) + in1.shape[1:], lambda i: (i, 0, 0)),
            pl.BlockSpec(packed["w1"].shape, lambda i: (0, 0, 0)),
            pl.BlockSpec(packed["b1"].shape, lambda i: (0, 0)),
            pl.BlockSpec(packed["w2"].shape, lambda i: (0, 0, 0)),
            pl.BlockSpec(packed["b2"].shape, lambda i: (0, 0)),
            pl.BlockSpec(packed["w3"].shape, lambda i: (0, 0, 0)),
            pl.BlockSpec(packed["b3"].shape, lambda i: (0, 0)),
            pl.BlockSpec(packed["w4"].shape, lambda i: (0, 0, 0)),
            pl.BlockSpec(packed["b4"].shape, lambda i: (0, 0)),
        ],
        out_specs=pl.BlockSpec((1, plan.m4, 128), lambda i: (i, 0, 0)),
        scratch_shapes=[
            pltpu.VMEM((plan.len2, 4 * 32), jnp.bfloat16),
            pltpu.VMEM((plan.len3, 4 * 64), jnp.bfloat16),
            pltpu.VMEM((plan.len4, 4 * 128), jnp.bfloat16),
        ],
        compiler_params=pltpu.CompilerParams(
            dimension_semantics=("parallel",),
            vmem_limit_bytes=32 * 1024 * 1024,
        ),
    )(in1, packed["w1"], packed["b1"], packed["w2"], packed["b2"],
      packed["w3"], packed["b3"], packed["w4"], packed["b4"])
    # drop pitch-garbage columns and the zero-padded output channels (tiny slice)
    out = out.reshape(n, plan.ho4, plan.R, 128)[:, :, :plan.wo4, 0]
    return out[:, None, :, :]                                  # (N, 1, Ho4, Wo4)
    # TODO(synk): final_iid=True branch (extra LeakyReLU + 1x1 conv) not wired;
    # default constructor has final_iid=False.


# ---------------------------------------------------------------------------
# Pure-JAX f32 reference (correctness check)
# ---------------------------------------------------------------------------
def _ref_forward(obs, params):
    x = obs.astype(jnp.float32) / 255.0 - 0.5
    cfg = [("w1", "b1", 2, 0.2), ("w2", "b2", 1, 0.2),
           ("w3", "b3", 1, 0.2), ("w4", "b4", 1, None)]
    for wk, bk, s, slope in cfg:
        x = jax.lax.conv_general_dilated(
            x, params[wk], window_strides=(s, s), padding=((1, 1), (1, 1)),
            dimension_numbers=("NCHW", "OIHW", "NCHW"),
        ) + params[bk].reshape(1, -1, 1, 1)
        if slope is not None:
            x = jnp.where(x > 0, x, slope * x)
    return x


if __name__ == "__main__":
    key = jax.random.PRNGKey(0)
    k_obs, k_params = jax.random.split(key)

    in_dim, H, W = 4, 16, 16
    obs = jax.random.uniform(
        k_obs, (2, in_dim, H, W), jnp.float32, minval=0.0, maxval=255.0)
    params = init_patch_discriminator_params(in_dim, k_params)
    packed = jax.tree_util.tree_map(jnp.asarray, prepare_params(params))
    plan = Plan(in_dim, H, W)

    fwd = jax.jit(functools.partial(patch_discriminator_forward, plan=plan))
    out = jax.block_until_ready(fwd(obs, packed))
    ref = jax.block_until_ready(_ref_forward(obs, params))

    assert out.shape == (2, 1, 5, 5), out.shape
    # Tolerance sized for bf16 MXU operands / bf16 inter-layer activations with
    # f32 accumulation (reference runs fully in f32).
    np.testing.assert_allclose(np.asarray(out), np.asarray(ref), atol=3e-2, rtol=3e-2)

    print("KERNEL_OK")
</pallas_src>

<mosaic_0001>
module attributes {stable_mosaic.version = 11 : i64} {
  func.func @_fused_kernel(%arg0: i32, %arg1: memref<1x144x32xbf16, #tpu.memory_space<vmem>>, %arg2: memref<2x32x32xbf16, #tpu.memory_space<vmem>>, %arg3: memref<1x32xf32, #tpu.memory_space<vmem>>, %arg4: memref<4x128x64xbf16, #tpu.memory_space<vmem>>, %arg5: memref<1x64xf32, #tpu.memory_space<vmem>>, %arg6: memref<4x256x128xbf16, #tpu.memory_space<vmem>>, %arg7: memref<1x128xf32, #tpu.memory_space<vmem>>, %arg8: memref<4x512x128xbf16, #tpu.memory_space<vmem>>, %arg9: memref<1x128xf32, #tpu.memory_space<vmem>>, %arg10: memref<1x80x128xf32, #tpu.memory_space<vmem>>, %arg11: memref<160x128xbf16, #tpu.memory_space<vmem>>, %arg12: memref<144x256xbf16, #tpu.memory_space<vmem>>, %arg13: memref<128x512xbf16, #tpu.memory_space<vmem>>) attributes {dimension_semantics = [#tpu.dimension_semantics<parallel>], iteration_bounds = array<i64: 2>, scalar_prefetch = 0 : i64, scratch_operands = 3 : i64, tpu.core_type = #tpu.core_type<tc>, window_params = [{transform_indices = @transform_0, window_bounds = array<i64: 1, 144, 32>}, {pipeline_mode = #tpu.pipeline_mode<synchronous>, transform_indices = @transform_1, window_bounds = array<i64: 2, 32, 32>}, {pipeline_mode = #tpu.pipeline_mode<synchronous>, transform_indices = @transform_2, window_bounds = array<i64: 1, 32>}, {pipeline_mode = #tpu.pipeline_mode<synchronous>, transform_indices = @transform_3, window_bounds = array<i64: 4, 128, 64>}, {pipeline_mode = #tpu.pipeline_mode<synchronous>, transform_indices = @transform_4, window_bounds = array<i64: 1, 64>}, {pipeline_mode = #tpu.pipeline_mode<synchronous>, transform_indices = @transform_5, window_bounds = array<i64: 4, 256, 128>}, {pipeline_mode = #tpu.pipeline_mode<synchronous>, transform_indices = @transform_6, window_bounds = array<i64: 1, 128>}, {pipeline_mode = #tpu.pipeline_mode<synchronous>, transform_indices = @transform_7, window_bounds = array<i64: 4, 512, 128>}, {pipeline_mode = #tpu.pipeline_mode<synchronous>, transform_indices = @transform_8, window_bounds = array<i64: 1, 128>}, {transform_indices = @transform_9, window_bounds = array<i64: 1, 80, 128>}]} {
    %cst = arith.constant 0.000000e+00 : bf16
    %0 = vector.broadcast %cst : bf16 to vector<160x128xbf16>
    %c0 = arith.constant 0 : index
    %c0_0 = arith.constant 0 : index
    %1 = vector.load %arg11[%c0, %c0_0] : memref<160x128xbf16, #tpu.memory_space<vmem>>, vector<160x128xbf16>
    tpu.vector_store %arg11[%c0, %c0_0], %0 {strides = array<i32>} : memref<160x128xbf16, #tpu.memory_space<vmem>>, vector<160x128xbf16>,
    %cst_1 = arith.constant 0.000000e+00 : bf16
    %2 = vector.broadcast %cst_1 : bf16 to vector<144x256xbf16>
    %c0_2 = arith.constant 0 : index
    %c0_3 = arith.constant 0 : index
    %3 = vector.load %arg12[%c0_2, %c0_3] : memref<144x256xbf16, #tpu.memory_space<vmem>>, vector<144x256xbf16>
    tpu.vector_store %arg12[%c0_2, %c0_3], %2 {strides = array<i32>} : memref<144x256xbf16, #tpu.memory_space<vmem>>, vector<144x256xbf16>,
    %cst_4 = arith.constant 0.000000e+00 : bf16
    %4 = vector.broadcast %cst_4 : bf16 to vector<128x512xbf16>
    %c0_5 = arith.constant 0 : index
    %c0_6 = arith.constant 0 : index
    %5 = vector.load %arg13[%c0_5, %c0_6] : memref<128x512xbf16, #tpu.memory_space<vmem>>, vector<128x512xbf16>
    tpu.vector_store %arg13[%c0_5, %c0_6], %4 {strides = array<i32>} : memref<128x512xbf16, #tpu.memory_space<vmem>>, vector<128x512xbf16>,
    %cst_7 = arith.constant 0.000000e+00 : f32
    %6 = vector.broadcast %cst_7 : f32 to vector<128x32xf32>
    %c0_8 = arith.constant 0 : index
    %c0_9 = arith.constant 0 : index
    %c0_10 = arith.constant 0 : index
    %7 = vector.load %arg1[%c0_8, %c0_9, %c0_10] : memref<1x144x32xbf16, #tpu.memory_space<vmem>>, vector<1x128x32xbf16>
    %8 = vector.shape_cast %7 : vector<1x128x32xbf16> to vector<128x32xbf16>
    %c0_11 = arith.constant 0 : index
    %c0_12 = arith.constant 0 : index
    %c0_13 = arith.constant 0 : index
    %9 = vector.load %arg2[%c0_11, %c0_12, %c0_13] : memref<2x32x32xbf16, #tpu.memory_space<vmem>>, vector<1x32x32xbf16>
    %10 = vector.shape_cast %9 : vector<1x32x32xbf16> to vector<32x32xbf16>
    %cst_14 = arith.constant dense<0.000000e+00> : vector<128x32xf32>
    %11 = tpu.matmul %8, %10, %cst_14 {dimension_numbers = #tpu.dot_dimension_numbers<[1], [0], [0], [1], [0, 0, 1, 1], [], []>} : vector<128x32xbf16>, vector<32x32xbf16>, vector<128x32xf32> -> vector<128x32xf32>
    %12 = arith.addf %6, %11 : vector<128x32xf32>
    %c0_15 = arith.constant 0 : index
    %c16 = arith.constant 16 : index
    %c0_16 = arith.constant 0 : index
    %13 = vector.load %arg1[%c0_15, %c16, %c0_16] : memref<1x144x32xbf16, #tpu.memory_space<vmem>>, vector<1x128x32xbf16>
    %14 = vector.shape_cast %13 : vector<1x128x32xbf16> to vector<128x32xbf16>
    %c1 = arith.constant 1 : index
    %c0_17 = arith.constant 0 : index
    %c0_18 = arith.constant 0 : index
    %15 = vector.load %arg2[%c1, %c0_17, %c0_18] : memref<2x32x32xbf16, #tpu.memory_space<vmem>>, vector<1x32x32xbf16>
    %16 = vector.shape_cast %15 : vector<1x32x32xbf16> to vector<32x32xbf16>
    %cst_19 = arith.constant dense<0.000000e+00> : vector<128x32xf32>
    %17 = tpu.matmul %14, %16, %cst_19 {dimension_numbers = #tpu.dot_dimension_numbers<[1], [0], [0], [1], [0, 0, 1, 1], [], []>} : vector<128x32xbf16>, vector<32x32xbf16>, vector<128x32xf32> -> vector<128x32xf32>
    %18 = arith.addf %12, %17 : vector<128x32xf32>
    %c0_20 = arith.constant 0 : index
    %c0_21 = arith.constant 0 : index
    %19 = vector.load %arg3[%c0_20, %c0_21] : memref<1x32xf32, #tpu.memory_space<vmem>>, vector<1x32xf32>
    %20 = vector.broadcast %19 : vector<1x32xf32> to vector<128x32xf32>
    %21 = arith.addf %18, %20 : vector<128x32xf32>
    %cst_22 = arith.constant 0.000000e+00 : f32
    %22 = vector.broadcast %cst_22 : f32 to vector<128x32xf32>
    %23 = arith.cmpf ogt, %21, %22 : vector<128x32xf32>
    %cst_23 = arith.constant 2.000000e-01 : f32
    %24 = vector.broadcast %cst_23 : f32 to vector<128x32xf32>
    %25 = arith.mulf %24, %21 : vector<128x32xf32>
    %26 = arith.select %23, %21, %25 : vector<128x32xi1>, vector<128x32xf32>
    %27 = tpu.iota {dimensions = array<i32: 0>} : vector<128x1xi32>
    %c16_i32 = arith.constant 16 : i32
    %c0_i32 = arith.constant 0 : i32
    %28 = arith.cmpi eq, %c16_i32, %c0_i32 : i32
    %c1_i32 = arith.constant 1 : i32
    %29 = arith.select %28, %c1_i32, %c16_i32 : i32
    %30 = vector.broadcast %29 : i32 to vector<128x1xi32>
    %31 = arith.remsi %27, %30 : vector<128x1xi32>
    %c0_i32_24 = arith.constant 0 : i32
    %32 = vector.broadcast %c0_i32_24 : i32 to vector<128x1xi32>
    %33 = arith.cmpi ne, %31, %32 : vector<128x1xi32>
    %c0_i32_25 = arith.constant 0 : i32
    %34 = vector.broadcast %c0_i32_25 : i32 to vector<128x1xi32>
    %35 = arith.cmpi slt, %31, %34 : vector<128x1xi32>
    %c0_i32_26 = arith.constant 0 : i32
    %36 = arith.cmpi slt, %29, %c0_i32_26 : i32
    %37 = vector.broadcast %36 : i1 to vector<128x1xi1>
    %38 = vector.broadcast %37 : vector<128x1xi1> to vector<128x1xi1>
    %39 = arith.xori %35, %38 : vector<128x1xi1>
    %40 = arith.andi %39, %33 : vector<128x1xi1>
    %41 = vector.broadcast %29 : i32 to vector<128x1xi32>
    %42 = arith.addi %31, %41 : vector<128x1xi32>
    %43 = arith.select %40, %42, %31 : vector<128x1xi1>, vector<128x1xi32>
    %c8_i32 = arith.constant 8 : i32
    %44 = vector.broadcast %c8_i32 : i32 to vector<128x1xi32>
    %45 = arith.cmpi slt, %43, %44 : vector<128x1xi32>
    %cst_27 = arith.constant 0.000000e+00 : f32
    %46 = vector.shape_cast %45 : vector<128x1xi1> to vector<128x1xi1>
    %47 = vector.broadcast %46 : vector<128x1xi1> to vector<128x32xi1>
    %48 = vector.broadcast %cst_27 : f32 to vector<128x32xf32>
    %49 = arith.select %47, %26, %48 : vector<128x32xi1>, vector<128x32xf32>
    %50 = arith.truncf %49 : vector<128x32xf32> to vector<128x32xbf16>
    %c17 = arith.constant 17 : index
    %c0_28 = arith.constant 0 : index
    %51 = vector.load %arg11[%c17, %c0_28] : memref<160x128xbf16, #tpu.memory_space<vmem>>, vector<128x32xbf16>
    tpu.vector_store %arg11[%c17, %c0_28], %50 {strides = array<i32>} : memref<160x128xbf16, #tpu.memory_space<vmem>>, vector<128x32xbf16>,
    %c16_29 = arith.constant 16 : index
    %c32 = arith.constant 32 : index
    %52 = vector.load %arg11[%c16_29, %c32] : memref<160x128xbf16, #tpu.memory_space<vmem>>, vector<128x32xbf16>
    tpu.vector_store %arg11[%c16_29, %c32], %50 {strides = array<i32>} : memref<160x128xbf16, #tpu.memory_space<vmem>>, vector<128x32xbf16>,
    %c15 = arith.constant 15 : index
    %c64 = arith.constant 64 : index
    %53 = vector.load %arg11[%c15, %c64] : memref<160x128xbf16, #tpu.memory_space<vmem>>, vector<128x32xbf16>
    tpu.vector_store %arg11[%c15, %c64], %50 {strides = array<i32>} : memref<160x128xbf16, #tpu.memory_space<vmem>>, vector<128x32xbf16>,
    %c14 = arith.constant 14 : index
    %c96 = arith.constant 96 : index
    %54 = vector.load %arg11[%c14, %c96] : memref<160x128xbf16, #tpu.memory_space<vmem>>, vector<128x32xbf16>
    tpu.vector_store %arg11[%c14, %c96], %50 {strides = array<i32>} : memref<160x128xbf16, #tpu.memory_space<vmem>>, vector<128x32xbf16>,
    %cst_30 = arith.constant 0.000000e+00 : f32
    %55 = vector.broadcast %cst_30 : f32 to vector<112x64xf32>
    %c0_31 = arith.constant 0 : index
    %c0_32 = arith.constant 0 : index
    %56 = vector.load %arg11[%c0_31, %c0_32] : memref<160x128xbf16, #tpu.memory_space<vmem>>, vector<112x128xbf16>
    %c0_33 = arith.constant 0 : index
    %c0_34 = arith.constant 0 : index
    %c0_35 = arith.constant 0 : index
    %57 = vector.load %arg4[%c0_33, %c0_34, %c0_35] : memref<4x128x64xbf16, #tpu.memory_space<vmem>>, vector<1x128x64xbf16>
    %58 = vector.shape_cast %57 : vector<1x128x64xbf16> to vector<128x64xbf16>
    %cst_36 = arith.constant dense<0.000000e+00> : vector<112x64xf32>
    %59 = tpu.matmul %56, %58, %cst_36 {dimension_numbers = #tpu.dot_dimension_numbers<[1], [0], [0], [1], [0, 0, 1, 1], [], []>} : vector<112x128xbf16>, vector<128x64xbf16>, vector<112x64xf32> -> vector<112x64xf32>
    %60 = arith.addf %55, %59 : vector<112x64xf32>
    %c16_37 = arith.constant 16 : index
    %c0_38 = arith.constant 0 : index
    %61 = vector.load %arg11[%c16_37, %c0_38] : memref<160x128xbf16, #tpu.memory_space<vmem>>, vector<112x128xbf16>
    %c1_39 = arith.constant 1 : index
    %c0_40 = arith.constant 0 : index
    %c0_41 = arith.constant 0 : index
    %62 = vector.load %arg4[%c1_39, %c0_40, %c0_41] : memref<4x128x64xbf16, #tpu.memory_space<vmem>>, vector<1x128x64xbf16>
    %63 = vector.shape_cast %62 : vector<1x128x64xbf16> to vector<128x64xbf16>
    %cst_42 = arith.constant dense<0.000000e+00> : vector<112x64xf32>
    %64 = tpu.matmul %61, %63, %cst_42 {dimension_numbers = #tpu.dot_dimension_numbers<[1], [0], [0], [1], [0, 0, 1, 1], [], []>} : vector<112x128xbf16>, vector<128x64xbf16>, vector<112x64xf32> -> vector<112x64xf32>
    %65 = arith.addf %60, %64 : vector<112x64xf32>
    %c32_43 = arith.constant 32 : index
    %c0_44 = arith.constant 0 : index
    %66 = vector.load %arg11[%c32_43, %c0_44] : memref<160x128xbf16, #tpu.memory_space<vmem>>, vector<112x128xbf16>
    %c2 = arith.constant 2 : index
    %c0_45 = arith.constant 0 : index
    %c0_46 = arith.constant 0 : index
    %67 = vector.load %arg4[%c2, %c0_45, %c0_46] : memref<4x128x64xbf16, #tpu.memory_space<vmem>>, vector<1x128x64xbf16>
    %68 = vector.shape_cast %67 : vector<1x128x64xbf16> to vector<128x64xbf16>
    %cst_47 = arith.constant dense<0.000000e+00> : vector<112x64xf32>
    %69 = tpu.matmul %66, %68, %cst_47 {dimension_numbers = #tpu.dot_dimension_numbers<[1], [0], [0], [1], [0, 0, 1, 1], [], []>} : vector<112x128xbf16>, vector<128x64xbf16>, vector<112x64xf32> -> vector<112x64xf32>
    %70 = arith.addf %65, %69 : vector<112x64xf32>
    %c48 = arith.constant 48 : index
    %c0_48 = arith.constant 0 : index
    %71 = vector.load %arg11[%c48, %c0_48] : memref<160x128xbf16, #tpu.memory_space<vmem>>, vector<112x128xbf16>
    %c3 = arith.constant 3 : index
    %c0_49 = arith.constant 0 : index
    %c0_50 = arith.constant 0 : index
    %72 = vector.load %arg4[%c3, %c0_49, %c0_50] : memref<4x128x64xbf16, #tpu.memory_space<vmem>>, vector<1x128x64xbf16>
    %73 = vector.shape_cast %72 : vector<1x128x64xbf16> to vector<128x64xbf16>
    %cst_51 = arith.constant dense<0.000000e+00> : vector<112x64xf32>
    %74 = tpu.matmul %71, %73, %cst_51 {dimension_numbers = #tpu.dot_dimension_numbers<[1], [0], [0], [1], [0, 0, 1, 1], [], []>} : vector<112x128xbf16>, vector<128x64xbf16>, vector<112x64xf32> -> vector<112x64xf32>
    %75 = arith.addf %70, %74 : vector<112x64xf32>
    %c0_52 = arith.constant 0 : index
    %c0_53 = arith.constant 0 : index
    %76 = vector.load %arg5[%c0_52, %c0_53] : memref<1x64xf32, #tpu.memory_space<vmem>>, vector<1x64xf32>
    %77 = vector.broadcast %76 : vector<1x64xf32> to vector<112x64xf32>
    %78 = arith.addf %75, %77 : vector<112x64xf32>
    %cst_54 = arith.constant 0.000000e+00 : f32
    %79 = vector.broadcast %cst_54 : f32 to vector<112x64xf32>
    %80 = arith.cmpf ogt, %78, %79 : vector<112x64xf32>
    %cst_55 = arith.constant 2.000000e-01 : f32
    %81 = vector.broadcast %cst_55 : f32 to vector<112x64xf32>
    %82 = arith.mulf %81, %78 : vector<112x64xf32>
    %83 = arith.select %80, %78, %82 : vector<112x64xi1>, vector<112x64xf32>
    %84 = tpu.iota {dimensions = array<i32: 0>} : vector<112x1xi32>
    %c16_i32_56 = arith.constant 16 : i32
    %c0_i32_57 = arith.constant 0 : i32
    %85 = arith.cmpi eq, %c16_i32_56, %c0_i32_57 : i32
    %c1_i32_58 = arith.constant 1 : i32
    %86 = arith.select %85, %c1_i32_58, %c16_i32_56 : i32
    %87 = vector.broadcast %86 : i32 to vector<112x1xi32>
    %88 = arith.remsi %84, %87 : vector<112x1xi32>
    %c0_i32_59 = arith.constant 0 : i32
    %89 = vector.broadcast %c0_i32_59 : i32 to vector<112x1xi32>
    %90 = arith.cmpi ne, %88, %89 : vector<112x1xi32>
    %c0_i32_60 = arith.constant 0 : i32
    %91 = vector.broadcast %c0_i32_60 : i32 to vector<112x1xi32>
    %92 = arith.cmpi slt, %88, %91 : vector<112x1xi32>
    %c0_i32_61 = arith.constant 0 : i32
    %93 = arith.cmpi slt, %86, %c0_i32_61 : i32
    %94 = vector.broadcast %93 : i1 to vector<112x1xi1>
    %95 = vector.broadcast %94 : vector<112x1xi1> to vector<112x1xi1>
    %96 = arith.xori %92, %95 : vector<112x1xi1>
    %97 = arith.andi %96, %90 : vector<112x1xi1>
    %98 = vector.broadcast %86 : i32 to vector<112x1xi32>
    %99 = arith.addi %88, %98 : vector<112x1xi32>
    %100 = arith.select %97, %99, %88 : vector<112x1xi1>, vector<112x1xi32>
    %c7_i32 = arith.constant 7 : i32
    %101 = vector.broadcast %c7_i32 : i32 to vector<112x1xi32>
    %102 = arith.cmpi slt, %100, %101 : vector<112x1xi32>
    %cst_62 = arith.constant 0.000000e+00 : f32
    %103 = vector.shape_cast %102 : vector<112x1xi1> to vector<112x1xi1>
    %104 = vector.broadcast %103 : vector<112x1xi1> to vector<112x64xi1>
    %105 = vector.broadcast %cst_62 : f32 to vector<112x64xf32>
    %106 = arith.select %104, %83, %105 : vector<112x64xi1>, vector<112x64xf32>
    %107 = arith.truncf %106 : vector<112x64xf32> to vector<112x64xbf16>
    %c17_63 = arith.constant 17 : index
    %c0_64 = arith.constant 0 : index
    %108 = vector.load %arg12[%c17_63, %c0_64] : memref<144x256xbf16, #tpu.memory_space<vmem>>, vector<112x64xbf16>
    tpu.vector_store %arg12[%c17_63, %c0_64], %107 {strides = array<i32>} : memref<144x256xbf16, #tpu.memory_space<vmem>>, vector<112x64xbf16>,
    %c16_65 = arith.constant 16 : index
    %c64_66 = arith.constant 64 : index
    %109 = vector.load %arg12[%c16_65, %c64_66] : memref<144x256xbf16, #tpu.memory_space<vmem>>, vector<112x64xbf16>
    tpu.vector_store %arg12[%c16_65, %c64_66], %107 {strides = array<i32>} : memref<144x256xbf16, #tpu.memory_space<vmem>>, vector<112x64xbf16>,
    %c15_67 = arith.constant 15 : index
    %c128 = arith.constant 128 : index
    %110 = vector.load %arg12[%c15_67, %c128] : memref<144x256xbf16, #tpu.memory_space<vmem>>, vector<112x64xbf16>
    tpu.vector_store %arg12[%c15_67, %c128], %107 {strides = array<i32>} : memref<144x256xbf16, #tpu.memory_space<vmem>>, vector<112x64xbf16>,
    %c14_68 = arith.constant 14 : index
    %c192 = arith.constant 192 : index
    %111 = vector.load %arg12[%c14_68, %c192] : memref<144x256xbf16, #tpu.memory_space<vmem>>, vector<112x64xbf16>
    tpu.vector_store %arg12[%c14_68, %c192], %107 {strides = array<i32>} : memref<144x256xbf16, #tpu.memory_space<vmem>>, vector<112x64xbf16>,
    %cst_69 = arith.constant 0.000000e+00 : f32
    %112 = vector.broadcast %cst_69 : f32 to vector<96x128xf32>
    %c0_70 = arith.constant 0 : index
    %c0_71 = arith.constant 0 : index
    %113 = vector.load %arg12[%c0_70, %c0_71] : memref<144x256xbf16, #tpu.memory_space<vmem>>, vector<96x256xbf16>
    %c0_72 = arith.constant 0 : index
    %c0_73 = arith.constant 0 : index
    %c0_74 = arith.constant 0 : index
    %114 = vector.load %arg6[%c0_72, %c0_73, %c0_74] : memref<4x256x128xbf16, #tpu.memory_space<vmem>>, vector<1x256x128xbf16>
    %115 = vector.shape_cast %114 : vector<1x256x128xbf16> to vector<256x128xbf16>
    %cst_75 = arith.constant dense<0.000000e+00> : vector<96x128xf32>
    %116 = tpu.matmul %113, %115, %cst_75 {dimension_numbers = #tpu.dot_dimension_numbers<[1], [0], [0], [1], [0, 0, 1, 1], [], []>} : vector<96x256xbf16>, vector<256x128xbf16>, vector<96x128xf32> -> vector<96x128xf32>
    %117 = arith.addf %112, %116 : vector<96x128xf32>
    %c16_76 = arith.constant 16 : index
    %c0_77 = arith.constant 0 : index
    %118 = vector.load %arg12[%c16_76, %c0_77] : memref<144x256xbf16, #tpu.memory_space<vmem>>, vector<96x256xbf16>
    %c1_78 = arith.constant 1 : index
    %c0_79 = arith.constant 0 : index
    %c0_80 = arith.constant 0 : index
    %119 = vector.load %arg6[%c1_78, %c0_79, %c0_80] : memref<4x256x128xbf16, #tpu.memory_space<vmem>>, vector<1x256x128xbf16>
    %120 = vector.shape_cast %119 : vector<1x256x128xbf16> to vector<256x128xbf16>
    %cst_81 = arith.constant dense<0.000000e+00> : vector<96x128xf32>
    %121 = tpu.matmul %118, %120, %cst_81 {dimension_numbers = #tpu.dot_dimension_numbers<[1], [0], [0], [1], [0, 0, 1, 1], [], []>} : vector<96x256xbf16>, vector<256x128xbf16>, vector<96x128xf32> -> vector<96x128xf32>
    %122 = arith.addf %117, %121 : vector<96x128xf32>
    %c32_82 = arith.constant 32 : index
    %c0_83 = arith.constant 0 : index
    %123 = vector.load %arg12[%c32_82, %c0_83] : memref<144x256xbf16, #tpu.memory_space<vmem>>, vector<96x256xbf16>
    %c2_84 = arith.constant 2 : index
    %c0_85 = arith.constant 0 : index
    %c0_86 = arith.constant 0 : index
    %124 = vector.load %arg6[%c2_84, %c0_85, %c0_86] : memref<4x256x128xbf16, #tpu.memory_space<vmem>>, vector<1x256x128xbf16>
    %125 = vector.shape_cast %124 : vector<1x256x128xbf16> to vector<256x128xbf16>
    %cst_87 = arith.constant dense<0.000000e+00> : vector<96x128xf32>
    %126 = tpu.matmul %123, %125, %cst_87 {dimension_numbers = #tpu.dot_dimension_numbers<[1], [0], [0], [1], [0, 0, 1, 1], [], []>} : vector<96x256xbf16>, vector<256x128xbf16>, vector<96x128xf32> -> vector<96x128xf32>
    %127 = arith.addf %122, %126 : vector<96x128xf32>
    %c48_88 = arith.constant 48 : index
    %c0_89 = arith.constant 0 : index
    %128 = vector.load %arg12[%c48_88, %c0_89] : memref<144x256xbf16, #tpu.memory_space<vmem>>, vector<96x256xbf16>
    %c3_90 = arith.constant 3 : index
    %c0_91 = arith.constant 0 : index
    %c0_92 = arith.constant 0 : index
    %129 = vector.load %arg6[%c3_90, %c0_91, %c0_92] : memref<4x256x128xbf16, #tpu.memory_space<vmem>>, vector<1x256x128xbf16>
    %130 = vector.shape_cast %129 : vector<1x256x128xbf16> to vector<256x128xbf16>
    %cst_93 = arith.constant dense<0.000000e+00> : vector<96x128xf32>
    %131 = tpu.matmul %128, %130, %cst_93 {dimension_numbers = #tpu.dot_dimension_numbers<[1], [0], [0], [1], [0, 0, 1, 1], [], []>} : vector<96x256xbf16>, vector<256x128xbf16>, vector<96x128xf32> -> vector<96x128xf32>
    %132 = arith.addf %127, %131 : vector<96x128xf32>
    %c0_94 = arith.constant 0 : index
    %c0_95 = arith.constant 0 : index
    %133 = vector.load %arg7[%c0_94, %c0_95] : memref<1x128xf32, #tpu.memory_space<vmem>>, vector<1x128xf32>
    %134 = vector.broadcast %133 : vector<1x128xf32> to vector<96x128xf32>
    %135 = arith.addf %132, %134 : vector<96x128xf32>
    %cst_96 = arith.constant 0.000000e+00 : f32
    %136 = vector.broadcast %cst_96 : f32 to vector<96x128xf32>
    %137 = arith.cmpf ogt, %135, %136 : vector<96x128xf32>
    %cst_97 = arith.constant 2.000000e-01 : f32
    %138 = vector.broadcast %cst_97 : f32 to vector<96x128xf32>
    %139 = arith.mulf %138, %135 : vector<96x128xf32>
    %140 = arith.select %137, %135, %139 : vector<96x128xi1>, vector<96x128xf32>
    %141 = tpu.iota {dimensions = array<i32: 0>} : vector<96x1xi32>
    %c16_i32_98 = arith.constant 16 : i32
    %c0_i32_99 = arith.constant 0 : i32
    %142 = arith.cmpi eq, %c16_i32_98, %c0_i32_99 : i32
    %c1_i32_100 = arith.constant 1 : i32
    %143 = arith.select %142, %c1_i32_100, %c16_i32_98 : i32
    %144 = vector.broadcast %143 : i32 to vector<96x1xi32>
    %145 = arith.remsi %141, %144 : vector<96x1xi32>
    %c0_i32_101 = arith.constant 0 : i32
    %146 = vector.broadcast %c0_i32_101 : i32 to vector<96x1xi32>
    %147 = arith.cmpi ne, %145, %146 : vector<96x1xi32>
    %c0_i32_102 = arith.constant 0 : i32
    %148 = vector.broadcast %c0_i32_102 : i32 to vector<96x1xi32>
    %149 = arith.cmpi slt, %145, %148 : vector<96x1xi32>
    %c0_i32_103 = arith.constant 0 : i32
    %150 = arith.cmpi slt, %143, %c0_i32_103 : i32
    %151 = vector.broadcast %150 : i1 to vector<96x1xi1>
    %152 = vector.broadcast %151 : vector<96x1xi1> to vector<96x1xi1>
    %153 = arith.xori %149, %152 : vector<96x1xi1>
    %154 = arith.andi %153, %147 : vector<96x1xi1>
    %155 = vector.broadcast %143 : i32 to vector<96x1xi32>
    %156 = arith.addi %145, %155 : vector<96x1xi32>
    %157 = arith.select %154, %156, %145 : vector<96x1xi1>, vector<96x1xi32>
    %c6_i32 = arith.constant 6 : i32
    %158 = vector.broadcast %c6_i32 : i32 to vector<96x1xi32>
    %159 = arith.cmpi slt, %157, %158 : vector<96x1xi32>
    %cst_104 = arith.constant 0.000000e+00 : f32
    %160 = vector.shape_cast %159 : vector<96x1xi1> to vector<96x1xi1>
    %161 = vector.broadcast %160 : vector<96x1xi1> to vector<96x128xi1>
    %162 = vector.broadcast %cst_104 : f32 to vector<96x128xf32>
    %163 = arith.select %161, %140, %162 : vector<96x128xi1>, vector<96x128xf32>
    %164 = arith.truncf %163 : vector<96x128xf32> to vector<96x128xbf16>
    %c17_105 = arith.constant 17 : index
    %c0_106 = arith.constant 0 : index
    %165 = vector.load %arg13[%c17_105, %c0_106] : memref<128x512xbf16, #tpu.memory_space<vmem>>, vector<96x128xbf16>
    tpu.vector_store %arg13[%c17_105, %c0_106], %164 {strides = array<i32>} : memref<128x512xbf16, #tpu.memory_space<vmem>>, vector<96x128xbf16>,
    %c16_107 = arith.constant 16 : index
    %c128_108 = arith.constant 128 : index
    %166 = vector.load %arg13[%c16_107, %c128_108] : memref<128x512xbf16, #tpu.memory_space<vmem>>, vector<96x128xbf16>
    tpu.vector_store %arg13[%c16_107, %c128_108], %164 {strides = array<i32>} : memref<128x512xbf16, #tpu.memory_space<vmem>>, vector<96x128xbf16>,
    %c15_109 = arith.constant 15 : index
    %c256 = arith.constant 256 : index
    %167 = vector.load %arg13[%c15_109, %c256] : memref<128x512xbf16, #tpu.memory_space<vmem>>, vector<96x128xbf16>
    tpu.vector_store %arg13[%c15_109, %c256], %164 {strides = array<i32>} : memref<128x512xbf16, #tpu.memory_space<vmem>>, vector<96x128xbf16>,
    %c14_110 = arith.constant 14 : index
    %c384 = arith.constant 384 : index
    %168 = vector.load %arg13[%c14_110, %c384] : memref<128x512xbf16, #tpu.memory_space<vmem>>, vector<96x128xbf16>
    tpu.vector_store %arg13[%c14_110, %c384], %164 {strides = array<i32>} : memref<128x512xbf16, #tpu.memory_space<vmem>>, vector<96x128xbf16>,
    %cst_111 = arith.constant 0.000000e+00 : f32
    %169 = vector.broadcast %cst_111 : f32 to vector<80x128xf32>
    %c0_112 = arith.constant 0 : index
    %c0_113 = arith.constant 0 : index
    %170 = vector.load %arg13[%c0_112, %c0_113] : memref<128x512xbf16, #tpu.memory_space<vmem>>, vector<80x512xbf16>
    %c0_114 = arith.constant 0 : index
    %c0_115 = arith.constant 0 : index
    %c0_116 = arith.constant 0 : index
    %171 = vector.load %arg8[%c0_114, %c0_115, %c0_116] : memref<4x512x128xbf16, #tpu.memory_space<vmem>>, vector<1x512x128xbf16>
    %172 = vector.shape_cast %171 : vector<1x512x128xbf16> to vector<512x128xbf16>
    %cst_117 = arith.constant dense<0.000000e+00> : vector<80x128xf32>
    %173 = tpu.matmul %170, %172, %cst_117 {dimension_numbers = #tpu.dot_dimension_numbers<[1], [0], [0], [1], [0, 0, 1, 1], [], []>} : vector<80x512xbf16>, vector<512x128xbf16>, vector<80x128xf32> -> vector<80x128xf32>
    %174 = arith.addf %169, %173 : vector<80x128xf32>
    %c16_118 = arith.constant 16 : index
    %c0_119 = arith.constant 0 : index
    %175 = vector.load %arg13[%c16_118, %c0_119] : memref<128x512xbf16, #tpu.memory_space<vmem>>, vector<80x512xbf16>
    %c1_120 = arith.constant 1 : index
    %c0_121 = arith.constant 0 : index
    %c0_122 = arith.constant 0 : index
    %176 = vector.load %arg8[%c1_120, %c0_121, %c0_122] : memref<4x512x128xbf16, #tpu.memory_space<vmem>>, vector<1x512x128xbf16>
    %177 = vector.shape_cast %176 : vector<1x512x128xbf16> to vector<512x128xbf16>
    %cst_123 = arith.constant dense<0.000000e+00> : vector<80x128xf32>
    %178 = tpu.matmul %175, %177, %cst_123 {dimension_numbers = #tpu.dot_dimension_numbers<[1], [0], [0], [1], [0, 0, 1, 1], [], []>} : vector<80x512xbf16>, vector<512x128xbf16>, vector<80x128xf32> -> vector<80x128xf32>
    %179 = arith.addf %174, %178 : vector<80x128xf32>
    %c32_124 = arith.constant 32 : index
    %c0_125 = arith.constant 0 : index
    %180 = vector.load %arg13[%c32_124, %c0_125] : memref<128x512xbf16, #tpu.memory_space<vmem>>, vector<80x512xbf16>
    %c2_126 = arith.constant 2 : index
    %c0_127 = arith.constant 0 : index
    %c0_128 = arith.constant 0 : index
    %181 = vector.load %arg8[%c2_126, %c0_127, %c0_128] : memref<4x512x128xbf16, #tpu.memory_space<vmem>>, vector<1x512x128xbf16>
    %182 = vector.shape_cast %181 : vector<1x512x128xbf16> to vector<512x128xbf16>
    %cst_129 = arith.constant dense<0.000000e+00> : vector<80x128xf32>
    %183 = tpu.matmul %180, %182, %cst_129 {dimension_numbers = #tpu.dot_dimension_numbers<[1], [0], [0], [1], [0, 0, 1, 1], [], []>} : vector<80x512xbf16>, vector<512x128xbf16>, vector<80x128xf32> -> vector<80x128xf32>
    %184 = arith.addf %179, %183 : vector<80x128xf32>
    %c48_130 = arith.constant 48 : index
    %c0_131 = arith.constant 0 : index
    %185 = vector.load %arg13[%c48_130, %c0_131] : memref<128x512xbf16, #tpu.memory_space<vmem>>, vector<80x512xbf16>
    %c3_132 = arith.constant 3 : index
    %c0_133 = arith.constant 0 : index
    %c0_134 = arith.constant 0 : index
    %186 = vector.load %arg8[%c3_132, %c0_133, %c0_134] : memref<4x512x128xbf16, #tpu.memory_space<vmem>>, vector<1x512x128xbf16>
    %187 = vector.shape_cast %186 : vector<1x512x128xbf16> to vector<512x128xbf16>
    %cst_135 = arith.constant dense<0.000000e+00> : vector<80x128xf32>
    %188 = tpu.matmul %185, %187, %cst_135 {dimension_numbers = #tpu.dot_dimension_numbers<[1], [0], [0], [1], [0, 0, 1, 1], [], []>} : vector<80x512xbf16>, vector<512x128xbf16>, vector<80x128xf32> -> vector<80x128xf32>
    %189 = arith.addf %184, %188 : vector<80x128xf32>
    %c0_136 = arith.constant 0 : index
    %c0_137 = arith.constant 0 : index
    %190 = vector.load %arg9[%c0_136, %c0_137] : memref<1x128xf32, #tpu.memory_space<vmem>>, vector<1x128xf32>
    %191 = vector.broadcast %190 : vector<1x128xf32> to vector<80x128xf32>
    %192 = arith.addf %189, %191 : vector<80x128xf32>
    %c0_138 = arith.constant 0 : index
    %c0_139 = arith.constant 0 : index
    %c0_140 = arith.constant 0 : index
    %193 = vector.load %arg10[%c0_138, %c0_139, %c0_140] : memref<1x80x128xf32, #tpu.memory_space<vmem>>, vector<1x80x128xf32>
    %194 = vector.shape_cast %193 : vector<1x80x128xf32> to vector<80x128xf32>
    %195 = vector.shape_cast %192 : vector<80x128xf32> to vector<1x80x128xf32>
    tpu.vector_store %arg10[%c0_138, %c0_139, %c0_140], %195 {strides = array<i32>} : memref<1x80x128xf32, #tpu.memory_space<vmem>>, vector<1x80x128xf32>,
    return
  }
  func.func @transform_0(%arg0: i32) -> (i32, i32, i32) {
    %c0_i32 = arith.constant 0 : i32
    %c0_i32_0 = arith.constant 0 : i32
    %c0_i32_1 = arith.constant 0 : i32
    return %arg0, %c0_i32, %c0_i32_0 : i32, i32, i32
  }
  func.func @transform_1(%arg0: i32) -> (i32, i32, i32) {
    %c0_i32 = arith.constant 0 : i32
    %c0_i32_0 = arith.constant 0 : i32
    %c0_i32_1 = arith.constant 0 : i32
    %c0_i32_2 = arith.constant 0 : i32
    return %c0_i32, %c0_i32_0, %c0_i32_1 : i32, i32, i32
  }
  func.func @transform_2(%arg0: i32) -> (i32, i32) {
    %c0_i32 = arith.constant 0 : i32
    %c0_i32_0 = arith.constant 0 : i32
    %c0_i32_1 = arith.constant 0 : i32
    return %c0_i32, %c0_i32_0 : i32, i32
  }
  func.func @transform_3(%arg0: i32) -> (i32, i32, i32) {
    %c0_i32 = arith.constant 0 : i32
    %c0_i32_0 = arith.constant 0 : i32
    %c0_i32_1 = arith.constant 0 : i32
    %c0_i32_2 = arith.constant 0 : i32
    return %c0_i32, %c0_i32_0, %c0_i32_1 : i32, i32, i32
  }
  func.func @transform_4(%arg0: i32) -> (i32, i32) {
    %c0_i32 = arith.constant 0 : i32
    %c0_i32_0 = arith.constant 0 : i32
    %c0_i32_1 = arith.constant 0 : i32
    return %c0_i32, %c0_i32_0 : i32, i32
  }
  func.func @transform_5(%arg0: i32) -> (i32, i32, i32) {
    %c0_i32 = arith.constant 0 : i32
    %c0_i32_0 = arith.constant 0 : i32
    %c0_i32_1 = arith.constant 0 : i32
    %c0_i32_2 = arith.constant 0 : i32
    return %c0_i32, %c0_i32_0, %c0_i32_1 : i32, i32, i32
  }
  func.func @transform_6(%arg0: i32) -> (i32, i32) {
    %c0_i32 = arith.constant 0 : i32
    %c0_i32_0 = arith.constant 0 : i32
    %c0_i32_1 = arith.constant 0 : i32
    return %c0_i32, %c0_i32_0 : i32, i32
  }
  func.func @transform_7(%arg0: i32) -> (i32, i32, i32) {
    %c0_i32 = arith.constant 0 : i32
    %c0_i32_0 = arith.constant 0 : i32
    %c0_i32_1 = arith.constant 0 : i32
    %c0_i32_2 = arith.constant 0 : i32
    return %c0_i32, %c0_i32_0, %c0_i32_1 : i32, i32, i32
  }
  func.func @transform_8(%arg0: i32) -> (i32, i32) {
    %c0_i32 = arith.constant 0 : i32
    %c0_i32_0 = arith.constant 0 : i32
    %c0_i32_1 = arith.constant 0 : i32
    return %c0_i32, %c0_i32_0 : i32, i32
  }
  func.func @transform_9(%arg0: i32) -> (i32, i32, i32) {
    %c0_i32 = arith.constant 0 : i32
    %c0_i32_0 = arith.constant 0 : i32
    %c0_i32_1 = arith.constant 0 : i32
    return %arg0, %c0_i32, %c0_i32_0 : i32, i32, i32
  }
}

</mosaic_0001>

<bundles_post_ra>
// kernel: patch_discriminator_forward.1
= control target key start
LH: loop header
LB: loop body
LE: loop exit
PB: predicated region body
PF: predicated region fallthrough
CT: control target
= control target key end

     0   :  { %s7092_s30 = smov 0   ;;  %s8777_s0 = inlined_call_operand.vmem [shape: bf16[2,144,32], index: 0, kind: input, shape index: {}]   ;;  %s8778_s1 = inlined_call_operand.vmem [shape: bf16[2,32,32], index: 1, kind: input, shape index: {}]   ;;  %s8779_s2 = inlined_call_operand.vmem [shape: f32[1,32], index: 2, kind: input, shape index: {}]   ;;  %s8780_s3 = inlined_call_operand.vmem [shape: bf16[4,128,64], index: 3, kind: input, shape index: {}]   ;;  %s8781_s4 = inlined_call_operand.vmem [shape: f32[1,64], index: 4, kind: input, shape index: {}]   ;;  %s8782_s5 = inlined_call_operand.vmem [shape: bf16[4,256,128], index: 5, kind: input, shape index: {}]   ;;  %s8783_s6 = inlined_call_operand.vmem [shape: f32[1,128], index: 6, kind: input, shape index: {}]   ;;  %s8784_s7 = inlined_call_operand.vmem [shape: bf16[4,512,128], index: 7, kind: input, shape index: {}]   ;;  %s8785_s8 = inlined_call_operand.vmem [shape: f32[1,128], index: 8, kind: input, shape index: {}]   ;;  %s8786_s9 = inlined_call_operand.vmem [shape: f32[2,80,128], index: 9, kind: output, shape index: {}]  }
   0x1 LB: > { %s5249_s10 = sadd.s32 4294967295, %s7033_s30   ;;  %p5253_p0 = scmp.ge.s32.totalorder %s7033_s30, 1  ;;  %s7033_s30 = sphi %s7092_s30, %s19_s30  }
   0x2   : > { %p287_p1 = scmp.lt.s32.totalorder %s7033_s30, 3 }
   0x4   : > { %p288_p2 = pnand %p5253_p0, %p287_p1 }
   0x5   : > { %v6743_v0 = vld [vmem:[%s8778_s1 + $0x10] sm:$0xff] (!%p288_p2)   ;;  %p323_p3 = scmp.lt.s32.totalorder (!%p288_p2), %s5249_s10, 1  ;;  %v6744_v1 = vld [vmem:[%s8778_s1] sm:$0xff] (!%p288_p2)   ;;  %v6745_v2 = vld [vmem:[%s8778_s1 + $0x18] sm:$0xff] (!%p288_p2)   ;;  %vm473_vm0 = vcmask (!%p288_p2), 261120   ;;  %v7035_v13 = vmov (!%p288_p2), 0.0  }
   0x6   : > { %291 = sbr.rel (%p288_p2) target bundleno = 1456 (0x5b0), region = 56  ;;  %6511 = vmatprep.subr.bf16.mxu0 (!%p288_p2), %v6743_v0  ;;  %6531 = vmatprep.subr.bf16.mxu1 (!%p288_p2), %v6744_v1  ;;  %v6746_v3 = vld [vmem:[%s8778_s1 + $0x8] sm:$0xff] (!%p288_p2)   ;;  %v7036_v14 = vmov (!%p288_p2), 0   ;;  %v6756_v15 = vld [vmem:[%s8780_s3 + $0x40] sm:$0xff] (!%p288_p2)   ;;  %v6760_v19 = vld [vmem:[%s8780_s3 + $0x50] sm:$0xff] (!%p288_p2)   ;;  %vm1266_vm3 = vcmask (!%p288_p2), 1046528  }
   0x7   : > { %6512 = vmatpush3.bf16.msra.mxu0 (!%p288_p2), %v6743_v0  ;;  %6532 = vmatpush3.bf16.msra.mxu1 (!%p288_p2), %v6744_v1  ;;  %343 = vst [vmem:[#allocation2 + $0x48] sm:$0xff] (!%p288_p2), %v7036_v14  ;;  %334 = vst [vmem:[#allocation2] sm:$0xff] (!%p288_p2), %v7036_v14  ;;  %v6757_v16 = vld [vmem:[%s8780_s3] sm:$0xff] (!%p288_p2)   ;;  %v6758_v17 = vld [vmem:[%s8780_s3 + $0x48] sm:$0xff] (!%p288_p2)   ;;  %vm1064_vm4 = vsmask.f32 (!%p288_p2), 256 }
   0x8   : > { %6513 = vmatprep.subr.bf16.mxu0 (!%p288_p2), %v6745_v2  ;;  %6533 = vmatprep.subr.bf16.mxu1 (!%p288_p2), %v6746_v3  ;;  %336 = vst [vmem:[#allocation2 + $0x10] sm:$0xff] (!%p288_p2), %v7036_v14  ;;  %337 = vst [vmem:[#allocation2 + $0x18] sm:$0xff] (!%p288_p2), %v7036_v14  ;;  %v6759_v18 = vld [vmem:[%s8780_s3 + $0x8] sm:$0xff] (!%p288_p2)   ;;  %v6761_v20 = vld [vmem:[%s8780_s3 + $0x10] sm:$0xff] (!%p288_p2)   ;;  %vm1138_vm5 = vsmask.f32 (!%p288_p2), 7938 }
   0x9   : > { %338 = vst [vmem:[#allocation2 + $0x20] sm:$0xff] (!%p288_p2), %v7036_v14  ;;  %339 = vst [vmem:[#allocation2 + $0x28] sm:$0xff] (!%p288_p2), %v7036_v14  ;;  %v6762_v21 = vld [vmem:[%s8780_s3 + $0x58] sm:$0xff] (!%p288_p2)   ;;  %v6764_v23 = vld [vmem:[%s8780_s3 + $0x60] sm:$0xff] (!%p288_p2)   ;;  %s7037_s17 = smov (!%p288_p2), 32   ;;  %s7038_s18 = smov (!%p288_p2), 96  }
   0xa   : > { %340 = vst [vmem:[#allocation2 + $0x30] sm:$0xff] (!%p288_p2), %v7036_v14  ;;  %341 = vst [vmem:[#allocation2 + $0x38] sm:$0xff] (!%p288_p2), %v7036_v14  ;;  %v6763_v22 = vld [vmem:[%s8780_s3 + $0x18] sm:$0xff] (!%p288_p2)   ;;  %v7174_v26 = vld [vmem:[%s8779_s2] ss:$0 sm:$0xff] (!%p288_p2)  ;;  %vm7039_vm9 = vmmov (!%p288_p2), 0  }
   0xb   : > { %6514 = vmatpush3.bf16.msra.mxu0 (!%p288_p2), %v6745_v2  ;;  %6534 = vmatpush3.bf16.msra.mxu1 (!%p288_p2), %v6746_v3  ;;  %342 = vst [vmem:[#allocation2 + $0x40] sm:$0xff] (!%p288_p2), %v7036_v14  ;;  %344 = vst [vmem:[#allocation3] sm:$0xff] (!%p288_p2), %v7036_v14  ;;  %v6765_v27 = vld [vmem:[%s8780_s3 + $0x20] sm:$0xff] (!%p288_p2)   ;;  %v6766_v28 = vld [vmem:[%s8780_s3 + $0x68] sm:$0xff] (!%p288_p2)   ;;  %vm1196_vm6 = vsmask.f32 (!%p288_p2), 7424 }
   0xc   : > { %6551 = vmatprep.subr.bf16.mxu0 (!%p288_p2), %v7035_v13  ;;  %6595 = vmatprep.subr.bf16.mxu1 (!%p288_p2), %v7035_v13  ;;  %345 = vst [vmem:[#allocation3 + $0x8] sm:$0xff] (!%p288_p2), %v7036_v14  ;;  %347 = vst [vmem:[#allocation3 + $0x18] sm:$0xff] (!%p288_p2), %v7036_v14  ;;  %v6767_v41 = vld [vmem:[%s8780_s3 + $0x28] sm:$0xff] (!%p288_p2)   ;;  %v6768_v43 = vld [vmem:[%s8780_s3 + $0x70] sm:$0xff] (!%p288_p2)   ;;  %s7040_s21 = smov (!%p288_p2), 64   ;;  %vm1150_vm15 = vcmask (!%p288_p2), 253952  }
   0xd   : > { %s8834_s10 = smov (!%p323_p3, %s5249_s10), 1  ;;  %348 = vst [vmem:[#allocation3 + $0x20] sm:$0xff] %v7036_v14  ;;  %349 = vst [vmem:[#allocation3 + $0x28] sm:$0xff] %v7036_v14  ;;  %v6769_v52 = vld [vmem:[%s8780_s3 + $0x30] sm:$0xff]   ;;  %v6770_v53 = vld [vmem:[%s8780_s3 + $0x78] sm:$0xff]  }
   0xe   : > { %s6727_s19 = smul.u32 72, %s8834_s10  ;;  %350 = vst [vmem:[#allocation3 + $0x30] sm:$0xff] %v7036_v14  ;;  %351 = vst [vmem:[#allocation3 + $0x38] sm:$0xff] %v7036_v14 }
   0xf   : > { %352 = vst [vmem:[#allocation3 + $0x40] sm:$0xff] %v7036_v14  ;;  %353 = vst [vmem:[#allocation3 + $0x48] sm:$0xff] %v7036_v14  ;;  %s6728_s29 = smul.u32 80, %s8834_s10 }
  0x10   : > { %s327_s22 = scalar_lea.vmem %s8777_s0, %s6727_s19  ;;  %354 = vst [vmem:[#allocation3 + $0x50] sm:$0xff] %v7036_v14  ;;  %355 = vst [vmem:[#allocation3 + $0x58] sm:$0xff] %v7036_v14 }
  0x11   : > { %v6747_v4 = vld [vmem:[%s327_s22 + $0x8] sm:$0xff]   ;;  %v6748_v5 = vld [vmem:[%s327_s22] sm:$0xff]   ;;  %v6749_v6 = vld [vmem:[%s327_s22 + $0x10] sm:$0xff]   ;;  %356 = vst [vmem:[#allocation3 + $0x60] sm:$0xff] %v7036_v14  ;;  %s8743_s10 = scalar_lea.vmem %s8786_s9, %s6728_s29 }
  0x12   : > { %6515 = vmatprep.mubr.msk.bf16.mxu0 %vm473_vm0, %v6747_v4  ;;  %6535 = vmatprep.mubr.msk.bf16.mxu1 %vm473_vm0, %v6748_v5  ;;  %v6750_v7 = vld [vmem:[%s327_s22 + $0x18] sm:$0xff]   ;;  %v6751_v8 = vld [vmem:[%s327_s22 + $0x20] sm:$0xff]   ;;  %v6752_v9 = vld [vmem:[%s327_s22 + $0x28] sm:$0xff]   ;;  %357 = vst [vmem:[#allocation3 + $0x68] sm:$0xff] %v7036_v14 }
  0x13   : > { %6516 = vmatmul.mubr.msk.bf16.vlgmr.msra.gmra.mrb[0].mxu0 %vm473_vm0, %v6749_v6  ;;  %6536 = vmatmul.mubr.msk.bf16.vlgmr.msra.gmra.mrb[0].mxu1 %vm473_vm0, %v6747_v4  ;;  %v6753_v10 = vld [vmem:[%s327_s22 + $0x30] sm:$0xff]   ;;  %v6754_v11 = vld [vmem:[%s327_s22 + $0x38] sm:$0xff]   ;;  %v6755_v12 = vld [vmem:[%s327_s22 + $0x40] sm:$0xff]   ;;  %358 = vst [vmem:[#allocation3 + $0x70] sm:$0xff] %v7036_v14 }
  0x14   : > { %6519 = vmatprep.mubr.msk.bf16.mxu0 %vm473_vm0, %v6750_v7  ;;  %6539 = vmatprep.mubr.msk.bf16.mxu1 %vm473_vm0, %v6749_v6  ;;  %360 = vst [vmem:[#allocation3 + $0x80] sm:$0xff] %v7036_v14  ;;  %364 = vst [vmem:[#allocation4 + $0x10] sm:$0xff] %v7036_v14 }
  0x15   : > { %365 = vst [vmem:[#allocation4 + $0x18] sm:$0xff] %v7036_v14  ;;  %389 = vst [vmem:[#allocation4 + $0xd8] sm:$0xff] %v7036_v14  ;;  %6552 = vmatpush3.bf16.msra.mxu0 %v6756_v15  ;;  %6596 = vmatpush3.bf16.msra.mxu1 %v6757_v16 }
  0x16   : > { %390 = vst [vmem:[#allocation4 + $0xe0] sm:$0xff] %v7036_v14  ;;  %6553 = vmatprep.subr.bf16.mxu0 %v7035_v13  ;;  %6597 = vmatprep.subr.bf16.mxu1 %v7035_v13  ;;  %vm7242_vm10 = vmand %vm473_vm0, %vm1138_vm5 }
  0x19   : > { %6554 = vmatpush3.bf16.msra.mxu0 %v6758_v17  ;;  %6598 = vmatpush3.bf16.msra.mxu1 %v6759_v18 }
  0x1a   : > { %6555 = vmatprep.subr.bf16.mxu0 %v7035_v13  ;;  %6599 = vmatprep.subr.bf16.mxu1 %v7035_v13 }
  0x1b   : > { %6520 = vmatmul.mubr.msk.bf16.gmra.mrb[4].mxu0 %vm473_vm0, %v6751_v8  ;;  %6540 = vmatmul.mubr.msk.bf16.gmra.mrb[4].mxu1 %vm473_vm0, %v6750_v7 }
  0x1c   : > { %6523 = vmatprep.mubr.msk.bf16.mxu0 %vm473_vm0, %v6752_v9  ;;  %6543 = vmatprep.mubr.msk.bf16.mxu1 %vm473_vm0, %v6751_v8 }
  0x1d   : > { %6556 = vmatpush3.bf16.msra.mxu0 %v6760_v19  ;;  %6600 = vmatpush3.bf16.msra.mxu1 %v6761_v20 }
  0x1e   : > { %6557 = vmatprep.subr.bf16.mxu0 %v7035_v13  ;;  %6601 = vmatprep.subr.bf16.mxu1 %v7035_v13 }
  0x21   : > { %6558 = vmatpush3.bf16.msra.mxu0 %v6762_v21  ;;  %6602 = vmatpush3.bf16.msra.mxu1 %v6763_v22 }
  0x22   : > { %6559 = vmatprep.subr.bf16.mxu0 %v7035_v13  ;;  %6603 = vmatprep.subr.bf16.mxu1 %v7035_v13 }
  0x23   : > { %6524 = vmatmul.mubr.msk.bf16.gmra.mrb[8].mxu0 %vm473_vm0, %v6753_v10  ;;  %6544 = vmatmul.mubr.msk.bf16.gmra.mrb[8].mxu1 %vm473_vm0, %v6752_v9 }
  0x24   : > { %6527 = vmatprep.mubr.msk.bf16.mxu0 %vm473_vm0, %v6754_v11  ;;  %6547 = vmatprep.mubr.msk.bf16.mxu1 %vm473_vm0, %v6753_v10 }
  0x25   : > { %6560 = vmatpush3.bf16.msra.mxu0 %v6764_v23  ;;  %6604 = vmatpush3.bf16.msra.mxu1 %v6765_v27 }
  0x26   : > { %6561 = vmatprep.subr.bf16.mxu0 %v7035_v13  ;;  %6605 = vmatprep.subr.bf16.mxu1 %v7035_v13 }
  0x29   : > { %6562 = vmatpush3.bf16.msra.mxu0 %v6766_v28  ;;  %6606 = vmatpush3.bf16.msra.mxu1 %v6767_v41 }
  0x2a   : > { %6563 = vmatprep.subr.bf16.mxu0 %v7035_v13  ;;  %6607 = vmatprep.subr.bf16.mxu1 %v7035_v13 }
  0x2b   : > { %6528 = vmatmul.mubr.msk.bf16.gmra.mrb[12].mxu0 %vm473_vm0, %v6755_v12  ;;  %6548 = vmatmul.mubr.msk.bf16.gmra.mrb[12].mxu1 %vm473_vm0, %v6754_v11  ;;  %v6771_v11 = vld [vmem:[%s8780_s3 + $0x38] sm:$0xff]  }
  0x2c   : > { %6567 = vmatprep.mubr.msk.bf16.mxu0 %vm7039_vm9, %v7035_v13  ;;  %6611 = vmatprep.mubr.msk.bf16.mxu1 %vm7039_vm9, %v7035_v13 }
  0x2d   : > { %6564 = vmatpush3.bf16.msra.mxu0 %v6768_v43  ;;  %6608 = vmatpush3.bf16.msra.mxu1 %v6769_v52 }
  0x2e   : > { %6565 = vmatprep.subr.bf16.mxu0 %v7035_v13  ;;  %6609 = vmatprep.subr.bf16.mxu1 %v7035_v13 }
  0x31   : > { %6566 = vmatpush3.bf16.msra.mxu0 %v6770_v53  ;;  %6610 = vmatpush3.bf16.msra.mxu1 %v6771_v11 }
  0x32   : > { %6639 = vmatprep.subr.bf16.mxu0 %v7035_v13  ;;  %6683 = vmatprep.subr.bf16.mxu1 %v7035_v13 }
  0xe6   : > { %v6517_v24 = vpop.f32.mrb[0].mxu0  ;;  %v6537_v25 = vpop.f32.mrb[0].mxu1 }
  0xe7   : > { %v658_v29 = vadd.f32 %v6537_v25, %v6517_v24  ;;  %v532_v30 = vpop.f32.mrb[1].mxu0  ;;  %v649_v31 = vpop.f32.mrb[1].mxu1 }
  0xe8   : > { %v650_v32 = vadd.f32 %v649_v31, %v532_v30  ;;  %v6518_v33 = vpop.f32.mrb[2].mxu0  ;;  %v6538_v34 = vpop.f32.mrb[2].mxu1 }
  0xe9   : > { %v721_v35 = vadd.f32 %v7174_v26, %v658_v29  ;;  %v535_v36 = vpop.f32.mrb[3].mxu0  ;;  %v652_v37 = vpop.f32.mrb[3].mxu1 }
  0xea   : > { %v719_v38 = vadd.f32 %v7174_v26, %v650_v32 }
  0xeb   : > { %vm737_vm1 = vcmp.gt.f32.partialorder %v721_v35, 0.0  ;;  %v753_v39 = vmul.f32 0.2, %v721_v35 }
  0xec   : > { %vm735_vm2 = vcmp.gt.f32.partialorder %v719_v38, 0.0  ;;  %v751_v40 = vmul.f32 0.2, %v719_v38 }
  0xed   : > { %v769_v42 = vsel %vm737_vm1, %v721_v35, %v753_v39  ;;  %vm7314_vm1 = vmand %vm1150_vm15, %vm1064_vm4 }
  0xee   : > { %v7194_v44 = vpack.c.bf16 %v7035_v13, %v769_v42  ;;  %v767_v45 = vsel %vm735_vm2, %v719_v38, %v751_v40  ;;  %v6521_v46 = vpop.f32.mrb[4].mxu0  ;;  %v6541_v47 = vpop.f32.mrb[4].mxu1  ;;  %vm1247_vm2 = vcmask 785927  }
  0xef   : > { %v674_v48 = vadd.f32 %v6541_v47, %v6521_v46  ;;  %v548_v49 = vpop.f32.mrb[5].mxu0  ;;  %v665_v50 = vpop.f32.mrb[5].mxu1  ;;  %v7197_v51 = vpack.c.bf16 %v7035_v13, %v767_v45 }
  0xf0   : > { %v666_v54 = vadd.f32 %v665_v50, %v548_v49  ;;  %v6522_v55 = vpop.f32.mrb[6].mxu0  ;;  %v6542_v56 = vpop.f32.mrb[6].mxu1  ;;  %v1268_v57 = vrot.slane %v7194_v44, 1  ;;  %v1076_v58 = vshll.u32 %v7194_v44, 16  ;;  %v1073_v59 = vshrl.u32 %v7194_v44, 16 }
  0xf1   : > { %v725_v60 = vadd.f32 %v7174_v26, %v674_v48  ;;  %v551_v61 = vpop.f32.mrb[7].mxu0  ;;  %v668_v62 = vpop.f32.mrb[7].mxu1  ;;  %1163 = vrot.lane.b32.xlu0 %v7197_v51, %s7037_s17  ;;  %v1267_v63 = vrot.slane %v7197_v51, 1  ;;  %v1069_v0 = vshll.u32 %v7197_v51, 16  ;;  %v1066_v1 = vshrl.u32 %v7197_v51, 16 }
  0xf2   : > { %v723_v2 = vadd.f32 %v7174_v26, %v666_v54  ;;  %v1199_v3 = vrot.slane %v1076_v58, 1  ;;  %v7217_v4 = vrot.slane %v1073_v59, 7 }
  0xf3   : > { %vm741_vm7 = vcmp.gt.f32.partialorder %v725_v60, 0.0  ;;  %v757_v5 = vmul.f32 0.2, %v725_v60  ;;  %v1269_v6 = vsel %vm1266_vm3, %v1267_v63, %v1268_v57  ;;  %v1197_v7 = vrot.slane %v1069_v0, 1 }
  0xf4   : > { %vm739_vm8 = vcmp.gt.f32.partialorder %v723_v2, 0.0  ;;  %v755_v8 = vmul.f32 0.2, %v723_v2  ;;  %1284 = vrot.lane.b32.xlu1 %v1269_v6, %s7038_s18  ;;  %v1068_v9 = vrot.slane %v1066_v1, 7  ;;  %v1201_v10 = vor.u32 %v1199_v3, %v1073_v59 }
  0xf5   : > { %v773_v12 = vsel %vm741_vm7, %v725_v60, %v757_v5  ;;  %v1198_v14 = vor.u32 %v1197_v7, %v1066_v1  ;;  %v1078_v15 = vor.u32 %v1076_v58, %v7217_v4  ;;  %vm1248_vm7 = vsmask.f32 7966 }
  0xf6   : > { %v7232_v16 = vpack.c.bf16 %v7035_v13, %v773_v12  ;;  %v771_v17 = vsel %vm739_vm8, %v723_v2, %v755_v8  ;;  %v6525_v18 = vpop.f32.mrb[8].mxu0  ;;  %v6545_v19 = vpop.f32.mrb[8].mxu1  ;;  %v1071_v20 = vor.u32 %v1069_v0, %v1068_v9  ;;  %vm1249_vm8 = vmand %vm1247_vm2, %vm1248_vm7 }
  0xf7   : > { %v7237_v21 = vpack.c.bf16 %v7035_v13, %v771_v17  ;;  %v690_v22 = vadd.f32 %v6545_v19, %v6525_v18  ;;  %v564_v23 = vpop.f32.mrb[9].mxu0  ;;  %v681_v24 = vpop.f32.mrb[9].mxu1  ;;  %v1200_v25 = vsel %vm1196_vm6, %v1198_v14, %v1199_v3  ;;  %v1079_v28 = vsel %vm1064_vm4, %v1068_v9, %v1078_v15 }
  0xf8   : > { %v682_v29 = vadd.f32 %v681_v24, %v564_v23  ;;  %1220 = vrot.lane.b32.xlu1 %v1197_v7, %s7040_s21  ;;  %1222 = vrot.lane.b32.xlu0 %v1200_v25, %s7040_s21  ;;  %v6526_v30 = vpop.f32.mrb[10].mxu0  ;;  %v6546_v31 = vpop.f32.mrb[10].mxu1  ;;  %v1092_v32 = vshll.u32 %v7232_v16, 16  ;;  %v1272_v33 = vrot.slane %v7232_v16, 1  ;;  %v1089_v34 = vshrl.u32 %v7232_v16, 16  ;;  %1143 = vst.msk [vmem:[#allocation2 + $0x10] sm:$0xff] %vm473_vm0, %v1079_v28 }
  0xf9   : > { %v729_v35 = vadd.f32 %v7174_v26, %v690_v22  ;;  %v567_v36 = vpop.f32.mrb[11].mxu0  ;;  %v684_v37 = vpop.f32.mrb[11].mxu1  ;;  %v1270_v38 = vrot.slane %v7237_v21, 1  ;;  %v1084_v39 = vshll.u32 %v7237_v21, 16  ;;  %v1081_v40 = vshrl.u32 %v7237_v21, 16 }
  0xfa   : > { %v727_v41 = vadd.f32 %v7174_v26, %v682_v29  ;;  %v1205_v42 = vrot.slane %v1092_v32, 1  ;;  %v7261_v43 = vrot.slane %v1089_v34, 7  ;;  %v1141_v45 = vsel %vm7242_vm10, %v1071_v20, 0 }
  0xfb   : > { %vm745_vm11 = vcmp.gt.f32.partialorder %v729_v35, 0.0  ;;  %v761_v46 = vmul.f32 0.2, %v729_v35  ;;  %v1271_v47 = vsel %vm1266_vm3, %v1268_v57, %v1270_v38  ;;  %v1202_v48 = vrot.slane %v1084_v39, 1  ;;  %1142 = vst [vmem:[#allocation2 + $0x8] sm:$0xff] %v1141_v45 }
  0xfc   : > { %vm743_vm12 = vcmp.gt.f32.partialorder %v727_v41, 0.0  ;;  %v759_v49 = vmul.f32 0.2, %v727_v41  ;;  %1165 = vrot.lane.b32.xlu1 %v7194_v44, %s7037_s17  ;;  %1282 = vrot.lane.b32.xlu0 %v1267_v63, %s7038_s18  ;;  %v1083_v50 = vrot.slane %v1081_v40, 7  ;;  %v1273_v52 = vsel %vm1266_vm3, %v1270_v38, %v1272_v33 }
  0xfd   : > { %v777_v53 = vsel %vm745_vm11, %v729_v35, %v761_v46  ;;  %v1203_v54 = vsel %vm1196_vm6, %v1201_v10, %v1202_v48  ;;  %v1204_v55 = vor.u32 %v1202_v48, %v1081_v40  ;;  %v1207_v60 = vor.u32 %v1205_v42, %v1089_v34 }
  0xfe   : > { %v7276_v56 = vpack.c.bf16 %v7035_v13, %v777_v53  ;;  %v775_v57 = vsel %vm743_vm12, %v727_v41, %v759_v49  ;;  %v6529_v58 = vpop.f32.mrb[12].mxu0  ;;  %v6549_v59 = vpop.f32.mrb[12].mxu1  ;;  %v1086_v61 = vor.u32 %v1084_v39, %v1083_v50  ;;  %v1094_v1 = vor.u32 %v1092_v32, %v7261_v43 }
  0xff   : > { %v7279_v44 = vpack.c.bf16 %v7035_v13, %v775_v57  ;;  %v706_v51 = vadd.f32 %v6549_v59, %v6529_v58  ;;  %v580_v62 = vpop.f32.mrb[13].mxu0  ;;  %v697_v63 = vpop.f32.mrb[13].mxu1  ;;  %v1206_v0 = vsel %vm1196_vm6, %v1204_v55, %v1205_v42  ;;  %vm1253_vm10 = vcmask 785920  }
 0x100   : > { %v698_v2 = vadd.f32 %v697_v63, %v580_v62  ;;  %1286 = vrot.lane.b32.xlu1 %v1271_v47, %s7038_s18  ;;  %1224 = vrot.lane.b32.xlu0 %v1203_v54, %s7040_s21  ;;  %v6530_v3 = vpop.f32.mrb[14].mxu0  ;;  %v6550_v5 = vpop.f32.mrb[14].mxu1  ;;  %v1108_v6 = vshll.u32 %v7276_v56, 16  ;;  %v1276_v7 = vrot.slane %v7276_v56, 1  ;;  %v1105_v8 = vshrl.u32 %v7276_v56, 16 }
 0x101   : > { %v733_v9 = vadd.f32 %v7174_v26, %v706_v51  ;;  %v1274_v10 = vrot.slane %v7279_v44, 1  ;;  %v1100_v11 = vshll.u32 %v7279_v44, 16  ;;  %v1097_v12 = vshrl.u32 %v7279_v44, 16  ;;  %v583_v14 = vpop.f32.mrb[15].mxu0  ;;  %v700_v15 = vpop.f32.mrb[15].mxu1 }
 0x102   : > { %v731_v17 = vadd.f32 %v7174_v26, %v698_v2  ;;  %v1211_v18 = vrot.slane %v1108_v6, 1  ;;  %v1107_v19 = vrot.slane %v1105_v8, 7  ;;  %v1087_v20 = vsel %vm1064_vm4, %v7217_v4, %v1086_v61  ;;  %v1152_v47 = vld [vmem:[#allocation2 + $0x48] sm:$0x1]  ;;  %v1250_v63 = vld [vmem:[#allocation2] sm:$0x80] }
 0x103   : > { %vm749_vm13 = vcmp.gt.f32.partialorder %v733_v9, 0.0  ;;  %v765_v22 = vmul.f32 0.2, %v733_v9  ;;  %v1275_v23 = vsel %vm1266_vm3, %v1272_v33, %v1274_v10  ;;  %v1208_v24 = vrot.slane %v1100_v11, 1  ;;  %1144 = vst.msk [vmem:[#allocation2 + $0x18] sm:$0xff] %vm473_vm0, %v1087_v20 }
 0x104   : > { %vm747_vm14 = vcmp.gt.f32.partialorder %v731_v17, 0.0  ;;  %v763_v25 = vmul.f32 0.2, %v731_v17  ;;  %1226 = vrot.lane.b32.xlu1 %v1206_v0, %s7040_s21  ;;  %1167 = vrot.lane.b32.xlu0 %v7237_v21, %s7037_s17  ;;  %v1099_v26 = vrot.slane %v1097_v12, 7  ;;  %v1277_v27 = vsel %vm1266_vm3, %v1274_v10, %v1276_v7  ;;  %v6773_v10 = vld [vmem:[%s8780_s3 + $0xc0] sm:$0xff]  }
 0x105   : > { %v781_v28 = vsel %vm749_vm13, %v733_v9, %v765_v22  ;;  %v1209_v4 = vsel %vm1196_vm6, %v1207_v60, %v1208_v24  ;;  %v1210_v29 = vor.u32 %v1208_v24, %v1097_v12  ;;  %v1095_v32 = vsel %vm1064_vm4, %v1083_v50, %v1094_v1  ;;  %v6778_v24 = vld [vmem:[%s8780_s3 + $0x98] sm:$0xff]   ;;  %vm1262_vm13 = vmand %vm1253_vm10, %vm1196_vm6 }
 0x106   : > { %v1063_v30 = vpack.c.bf16 %v7035_v13, %v781_v28  ;;  %v779_v31 = vsel %vm747_vm14, %v731_v17, %v763_v25  ;;  %v1102_v33 = vor.u32 %v1100_v11, %v1099_v26  ;;  %v1213_v36 = vor.u32 %v1211_v18, %v1105_v8  ;;  %1145 = vst.msk [vmem:[#allocation2 + $0x20] sm:$0xff] %vm473_vm0, %v1095_v32  ;;  %v6774_v11 = vld [vmem:[%s8780_s3 + $0x88] sm:$0xff]   ;;  %v6780_v28 = vld [vmem:[%s8780_s3 + $0xa0] sm:$0xff]  }
 0x107   : > { %v1062_v34 = vpack.c.bf16 %v7035_v13, %v779_v31  ;;  %v1212_v35 = vsel %vm1196_vm6, %v1210_v29, %v1211_v18  ;;  %v1110_v21 = vor.u32 %v1108_v6, %v1107_v19  ;;  %vm1311_vm11 = vcmask 1048320   ;;  %v6772_v6 = vld [vmem:[%s8780_s3 + $0x80] sm:$0xff]   ;;  %v6775_v17 = vld [vmem:[%s8780_s3 + $0xc8] sm:$0xff]   ;;  %v6776_v18 = vld [vmem:[%s8780_s3 + $0x90] sm:$0xff]  }
 0x108   : > { %1169 = vrot.lane.b32.xlu1 %v7232_v16, %s7037_s17  ;;  %1288 = vrot.lane.b32.xlu0 %v1273_v52, %s7038_s18  ;;  %v1124_v37 = vshll.u32 %v1063_v30, 16  ;;  %v1280_v38 = vrot.slane %v1063_v30, 1  ;;  %v1121_v39 = vshrl.u32 %v1063_v30, 16  ;;  %v1103_v40 = vsel %vm1064_vm4, %v7261_v43, %v1102_v33  ;;  %v6781_v31 = vld [vmem:[%s8780_s3 + $0xe0] sm:$0xff]   ;;  %v6782_v32 = vld [vmem:[%s8780_s3 + $0xa8] sm:$0xff]  }
 0x109   : > { %v1278_v41 = vrot.slane %v1062_v34, 1  ;;  %v1116_v42 = vshll.u32 %v1062_v34, 16  ;;  %v1113_v45 = vshrl.u32 %v1062_v34, 16  ;;  %1146 = vst.msk [vmem:[#allocation2 + $0x28] sm:$0xff] %vm473_vm0, %v1103_v40  ;;  %v1111_v16 = vsel %vm1064_vm4, %v1099_v26, %v1110_v21  ;;  %v6786_v40 = vld [vmem:[%s8780_s3 + $0xb8] sm:$0xff]  }
 0x10a   : > { %v1217_v48 = vrot.slane %v1124_v37, 1  ;;  %v1123_v49 = vrot.slane %v1121_v39, 7  ;;  %1147 = vst.msk [vmem:[#allocation2 + $0x30] sm:$0xff] %vm473_vm0, %v1111_v16  ;;  %vm1309_vm12 = vcmask 1048327   ;;  %vm1319_vm14 = vcmask 1047296  }
 0x10b   : > { %v1279_v43 = vsel %vm1266_vm3, %v1276_v7, %v1278_v41  ;;  %v1214_v50 = vrot.slane %v1116_v42, 1  ;;  %v1115_v52 = vrot.slane %v1113_v45, 7  ;;  %v1281_v53 = vsel %vm1266_vm3, %v1278_v41, %v1280_v38 }
 0x10c   : > { %1290 = vrot.lane.b32.xlu1 %v1275_v23, %s7038_s18  ;;  %1228 = vrot.lane.b32.xlu0 %v1209_v4, %s7040_s21  ;;  %v1126_v54 = vor.u32 %v1124_v37, %v1123_v49  ;;  %v1153_v55 = vsel %vm7314_vm1, %v1123_v49, %v1152_v47  ;;  %v6777_v23 = vld [vmem:[%s8780_s3 + $0xd0] sm:$0xff]   ;;  %vm2256_vm1 = vcmask 523271  }
 0x10d   : > { %v1215_v57 = vsel %vm1196_vm6, %v1213_v36, %v1214_v50  ;;  %v1216_v58 = vor.u32 %v1214_v50, %v1113_v45  ;;  %1154 = vst [vmem:[#allocation2 + $0x48] sm:$0x1] %v1153_v55  ;;  %v1118_v59 = vor.u32 %v1116_v42, %v1115_v52  ;;  %v6784_v36 = vld [vmem:[%s8780_s3 + $0xb0] sm:$0xff]   ;;  %v6787_v45 = vld [vmem:[%s8780_s3 + $0xf8] sm:$0xff]   ;;  %vm7624_vm2 = vmand %vm2256_vm1, %vm1248_vm7 }
 0x10e   : > { %v1127_v60 = vsel %vm1064_vm4, %v1115_v52, %v1126_v54 }
 0x10f   : > { %v1218_v61 = vsel %vm1196_vm6, %v1216_v58, %v1217_v48  ;;  %v1119_v51 = vsel %vm1064_vm4, %v1107_v19, %v1118_v59  ;;  %1149 = vst.msk [vmem:[#allocation2 + $0x40] sm:$0xff] %vm473_vm0, %v1127_v60  ;;  %v6789_v58 = vld [vmem:[%s8782_s5 + $0x80] sm:$0xff]  }
 0x110   : > { %1230 = vrot.lane.b32.xlu1 %v1212_v35, %s7040_s21  ;;  %1171 = vrot.lane.b32.xlu0 %v7279_v44, %s7037_s17  ;;  %1148 = vst.msk [vmem:[#allocation2 + $0x38] sm:$0xff] %vm473_vm0, %v1119_v51  ;;  %v1219_v44 = vor.u32 %v1217_v48, %v1121_v39  ;;  %vm1187_vm0 = vcmask 523520   ;;  %v6783_v35 = vld [vmem:[%s8780_s3 + $0xe8] sm:$0xff]   ;;  %v6785_v39 = vld [vmem:[%s8780_s3 + $0xf0] sm:$0xff]  }
 0x111   : > { %v6790_v59 = vld [vmem:[%s8782_s5 + $0x40] sm:$0xff]   ;;  %v6794_v51 = vld [vmem:[%s8782_s5 + $0x48] sm:$0xff]  }
 0x112   : > { %v6791_v60 = vld [vmem:[%s8782_s5] sm:$0xff]  }
 0x114   : > { %1173 = vrot.lane.b32.xlu1 %v7276_v56, %s7037_s17  ;;  %1292 = vrot.lane.b32.xlu0 %v1277_v27, %s7038_s18  ;;  %v6779_v27 = vld [vmem:[%s8780_s3 + $0xd8] sm:$0xff]   ;;  %v1817_v55 = vld [vmem:[#allocation2 + $0x48] sm:$0xff] }
 0x118   : > { %1294 = vrot.lane.b32.xlu1 %v1279_v43, %s7038_s18  ;;  %1232 = vrot.lane.b32.xlu0 %v1215_v57, %s7040_s21  ;;  %v6788_v57 = vld [vmem:[%s8782_s5 + $0xc0] sm:$0xff]  }
 0x11c   : > { %1234 = vrot.lane.b32.xlu1 %v1218_v61, %s7040_s21  ;;  %1175 = vrot.lane.b32.xlu0 %v1062_v34, %s7037_s17  ;;  %v6792_v61 = vld [vmem:[%s8782_s5 + $0xc8] sm:$0xff]  }
 0x120   : > { %1177 = vrot.lane.b32.xlu1 %v1063_v30, %s7037_s17  ;;  %1296 = vrot.lane.b32.xlu0 %v1281_v53, %s7038_s18 }
 0x124   : > { %1298 = vrot.lane.b32.xlu1 %v1280_v38, %s7038_s18  ;;  %1236 = vrot.lane.b32.xlu0 %v1219_v44, %s7040_s21 }
 0x163   : > { %v1164_v56 = vpop.permute.xlu0 %1163 }
 0x164   : > { %1188 = vst.msk [vmem:[#allocation2 + $0x8] sm:$0xff] %vm1187_vm0, %v1164_v56  ;;  %v6793_v56 = vld [vmem:[%s8782_s5 + $0x88] sm:$0xff]  }
 0x166   : > { %v1285_v62 = vpop.permute.xlu1 %1284 }
 0x16a   : > { %v1221_v0 = vpop.permute.xlu1 %1220  ;;  %v1223_v1 = vpop.permute.xlu0 %1222 }
 0x16b   : > { %v1251_v2 = vsel %vm1249_vm8, %v1221_v0, %v1250_v63  ;;  %1254 = vst.msk [vmem:[#allocation2 + $0x8] sm:$0xff] %vm1253_vm10, %v1223_v1  ;;  %v6796_v0 = vld [vmem:[%s8782_s5 + $0xd0] sm:$0xff]  }
 0x16c   : > { %1252 = vst [vmem:[#allocation2] sm:$0x80] %v1251_v2  ;;  %1312 = vst.msk [vmem:[#allocation2 + $0x8] sm:$0xff] %vm1311_vm11, %v1285_v62  ;;  %v6795_v62 = vld [vmem:[%s8782_s5 + $0x8] sm:$0xff]   ;;  %v6798_v1 = vld [vmem:[%s8782_s5 + $0x50] sm:$0xff]  }
 0x16e   : > { %v1166_v3 = vpop.permute.xlu1 %1165  ;;  %v1283_v5 = vpop.permute.xlu0 %1282 }
 0x16f   : > { %1189 = vst.msk [vmem:[#allocation2 + $0x10] sm:$0xff] %vm1187_vm0, %v1166_v3 }
 0x170   : > { %1310 = vst.msk [vmem:[#allocation2] sm:$0x80] %vm1309_vm12, %v1283_v5 }
 0x172   : > { %v1287_v7 = vpop.permute.xlu1 %1286  ;;  %v1225_v8 = vpop.permute.xlu0 %1224 }
 0x173   : > { %1255 = vst.msk [vmem:[#allocation2 + $0x10] sm:$0xff] %vm1253_vm10, %v1225_v8  ;;  %v1322_v9 = vld [vmem:[#allocation2 + $0x8] sm:$0xff]  ;;  %v6797_v8 = vld [vmem:[%s8782_s5 + $0x90] sm:$0xff]  }
 0x174   : > { %1313 = vst.msk [vmem:[#allocation2 + $0x10] sm:$0xff] %vm1311_vm11, %v1287_v7  ;;  %6568 = vmatmul.mubr.bf16.vlgmr.msra.gmra.mrb[16].mxu0 %v1322_v9 }
 0x175   : > { %6640 = vmatpush3.bf16.msra.mxu0 %v6772_v6  ;;  %6571 = vmatprep.mubr.msk.bf16.mxu0 %vm7039_vm9, %v7035_v13 }
 0x176   : > { %v1227_v12 = vpop.permute.xlu1 %1226  ;;  %v1168_v14 = vpop.permute.xlu0 %1167  ;;  %6641 = vmatprep.subr.bf16.mxu0 %v7035_v13 }
 0x177   : > { %v1321_v15 = vld [vmem:[#allocation2] sm:$0xff]  ;;  %1190 = vst.msk [vmem:[#allocation2 + $0x18] sm:$0xff] %vm1187_vm0, %v1168_v14 }
 0x178   : > { %6612 = vmatmul.mubr.bf16.vlgmr.msra.gmra.mrb[16].mxu1 %v1321_v15  ;;  %1256 = vst.msk [vmem:[#allocation2 + $0x18] sm:$0xff] %vm1253_vm10, %v1227_v12  ;;  %v6802_v12 = vld [vmem:[%s8782_s5 + $0x58] sm:$0xff]  }
 0x179   : > { %6684 = vmatpush3.bf16.msra.mxu1 %v6773_v10  ;;  %6615 = vmatprep.mubr.msk.bf16.mxu1 %vm7039_vm9, %v7035_v13 }
 0x17a   : > { %6642 = vmatpush3.bf16.msra.mxu0 %v6774_v11  ;;  %6685 = vmatprep.subr.bf16.mxu1 %v7035_v13  ;;  %v1170_v19 = vpop.permute.xlu1 %1169  ;;  %v1289_v20 = vpop.permute.xlu0 %1288  ;;  %v6800_v11 = vld [vmem:[%s8782_s5 + $0xd8] sm:$0xff]  }
 0x17b   : > { %6643 = vmatprep.subr.bf16.mxu0 %v7035_v13  ;;  %1191 = vst.msk [vmem:[#allocation2 + $0x20] sm:$0xff] %vm1187_vm0, %v1170_v19  ;;  %v7380_v22 = vld [vmem:[#allocation2 + $0x10] sm:$0xff] }
 0x17c   : > { %1314 = vst.msk [vmem:[#allocation2 + $0x18] sm:$0xff] %vm1311_vm11, %v1289_v20  ;;  %6572 = vmatmul.mubr.bf16.gmra.mrb[20].mxu0 %v7380_v22  ;;  %v6804_v20 = vld [vmem:[%s8782_s5 + $0xe0] sm:$0xff]  }
 0x17d   : > { %6686 = vmatpush3.bf16.msra.mxu1 %v6775_v17  ;;  %6575 = vmatprep.mubr.msk.bf16.mxu0 %vm7039_vm9, %v7035_v13  ;;  %v6801_v17 = vld [vmem:[%s8782_s5 + $0x98] sm:$0xff]  }
 0x17e   : > { %6644 = vmatpush3.bf16.msra.mxu0 %v6776_v18  ;;  %v1291_v25 = vpop.permute.xlu1 %1290  ;;  %v1229_v26 = vpop.permute.xlu0 %1228  ;;  %6687 = vmatprep.subr.bf16.mxu1 %v7035_v13  ;;  %v6803_v18 = vld [vmem:[%s8782_s5 + $0x18] sm:$0xff]  }
 0x17f   : > { %6645 = vmatprep.subr.bf16.mxu0 %v7035_v13  ;;  %1257 = vst.msk [vmem:[#allocation2 + $0x20] sm:$0xff] %vm1253_vm10, %v1229_v26 }
 0x180   : > { %6616 = vmatmul.mubr.bf16.gmra.mrb[20].mxu1 %v1322_v9  ;;  %1315 = vst.msk [vmem:[#allocation2 + $0x20] sm:$0xff] %vm1311_vm11, %v1291_v25  ;;  %v6799_v9 = vld [vmem:[%s8782_s5 + $0x10] sm:$0xff]  }
 0x181   : > { %6688 = vmatpush3.bf16.msra.mxu1 %v6777_v23  ;;  %6619 = vmatprep.mubr.msk.bf16.mxu1 %vm7039_vm9, %v7035_v13 }
 0x182   : > { %6646 = vmatpush3.bf16.msra.mxu0 %v6778_v24  ;;  %6689 = vmatprep.subr.bf16.mxu1 %v7035_v13  ;;  %v1231_v4 = vpop.permute.xlu1 %1230  ;;  %v1172_v29 = vpop.permute.xlu0 %1171 }
 0x183   : > { %v7404_v30 = vld [vmem:[#allocation2 + $0x18] sm:$0xff]  ;;  %6647 = vmatprep.subr.bf16.mxu0 %v7035_v13  ;;  %1192 = vst.msk [vmem:[#allocation2 + $0x28] sm:$0xff] %vm1187_vm0, %v1172_v29 }
 0x184   : > { %1258 = vst.msk [vmem:[#allocation2 + $0x28] sm:$0xff] %vm1253_vm10, %v1231_v4  ;;  %6576 = vmatmul.mubr.bf16.gmra.mrb[24].mxu0 %v7404_v30  ;;  %v6807_v4 = vld [vmem:[%s8782_s5 + $0x20] sm:$0xff]  }
 0x185   : > { %6690 = vmatpush3.bf16.msra.mxu1 %v6779_v27  ;;  %6579 = vmatprep.mubr.msk.bf16.mxu0 %vm7039_vm9, %v7035_v13 }
 0x186   : > { %6648 = vmatpush3.bf16.msra.mxu0 %v6780_v28  ;;  %v1174_v33 = vpop.permute.xlu1 %1173  ;;  %v1293_v34 = vpop.permute.xlu0 %1292  ;;  %6691 = vmatprep.subr.bf16.mxu1 %v7035_v13  ;;  %v6805_v28 = vld [vmem:[%s8782_s5 + $0xa0] sm:$0xff]  }
 0x187   : > { %6649 = vmatprep.subr.bf16.mxu0 %v7035_v13  ;;  %1193 = vst.msk [vmem:[#allocation2 + $0x30] sm:$0xff] %vm1187_vm0, %v1174_v33  ;;  %v1325_v38 = vld [vmem:[#allocation2 + $0x20] sm:$0xff] }
 0x188   : > { %1316 = vst.msk [vmem:[#allocation2 + $0x28] sm:$0xff] %vm1311_vm11, %v1293_v34  ;;  %6620 = vmatmul.mubr.bf16.gmra.mrb[24].mxu1 %v7380_v22 }
 0x189   : > { %6623 = vmatprep.mubr.msk.bf16.mxu1 %vm7039_vm9, %v7035_v13  ;;  %6692 = vmatpush3.bf16.msra.mxu1 %v6781_v31 }
 0x18a   : > { %6650 = vmatpush3.bf16.msra.mxu0 %v6782_v32  ;;  %6693 = vmatprep.subr.bf16.mxu1 %v7035_v13  ;;  %v1295_v21 = vpop.permute.xlu1 %1294  ;;  %v1233_v37 = vpop.permute.xlu0 %1232 }
 0x18b   : > { %6651 = vmatprep.subr.bf16.mxu0 %v7035_v13  ;;  %1259 = vst.msk [vmem:[#allocation2 + $0x30] sm:$0xff] %vm1253_vm10, %v1233_v37 }
 0x18c   : > { %1317 = vst.msk [vmem:[#allocation2 + $0x30] sm:$0xff] %vm1311_vm11, %v1295_v21  ;;  %6580 = vmatmul.mubr.bf16.gmra.mrb[28].mxu0 %v1325_v38 }
 0x18d   : > { %6694 = vmatpush3.bf16.msra.mxu1 %v6783_v35  ;;  %6583 = vmatprep.mubr.msk.bf16.mxu0 %vm7039_vm9, %v7035_v13 }
 0x18e   : > { %6652 = vmatpush3.bf16.msra.mxu0 %v6784_v36  ;;  %v1235_v41 = vpop.permute.xlu1 %1234  ;;  %v1176_v42 = vpop.permute.xlu0 %1175  ;;  %6695 = vmatprep.subr.bf16.mxu1 %v7035_v13 }
 0x18f   : > { %6653 = vmatprep.subr.bf16.mxu0 %v7035_v13  ;;  %1194 = vst.msk [vmem:[#allocation2 + $0x38] sm:$0xff] %vm1187_vm0, %v1176_v42  ;;  %v1326_v16 = vld [vmem:[#allocation2 + $0x28] sm:$0xff] }
 0x190   : > { %6624 = vmatmul.mubr.bf16.gmra.mrb[28].mxu1 %v7404_v30  ;;  %1260 = vst.msk [vmem:[#allocation2 + $0x38] sm:$0xff] %vm1253_vm10, %v1235_v41 }
 0x191   : > { %6627 = vmatprep.mubr.msk.bf16.mxu1 %vm7039_vm9, %v7035_v13  ;;  %6696 = vmatpush3.bf16.msra.mxu1 %v6785_v39 }
 0x192   : > { %6654 = vmatpush3.bf16.msra.mxu0 %v6786_v40  ;;  %6697 = vmatprep.subr.bf16.mxu1 %v7035_v13  ;;  %v1178_v46 = vpop.permute.xlu1 %1177  ;;  %v1297_v47 = vpop.permute.xlu0 %1296 }
 0x193   : > { %1195 = vst.msk [vmem:[#allocation2 + $0x40] sm:$0xff] %vm1187_vm0, %v1178_v46  ;;  %v1327_v50 = vld [vmem:[#allocation2 + $0x30] sm:$0xff]  ;;  %5935 = vmatprep.subr.bf16.mxu0 %v6788_v57  ;;  %vm2175_vm0 = vcmask 523264  }
 0x194   : > { %1318 = vst.msk [vmem:[#allocation2 + $0x38] sm:$0xff] %vm1311_vm11, %v1297_v47  ;;  %6584 = vmatmul.mubr.bf16.gmra.mrb[32].mxu0 %v1326_v16  ;;  %vm7639_vm11 = vmand %vm2175_vm0, %vm1138_vm5 }
 0x195   : > { %6698 = vmatpush3.bf16.msra.mxu1 %v6787_v45  ;;  %6587 = vmatprep.mubr.msk.bf16.mxu0 %vm7039_vm9, %v7035_v13 }
 0x196   : > { %v1237_v49 = vpop.permute.xlu0 %1236  ;;  %v1299_v52 = vpop.permute.xlu1 %1298  ;;  %5987 = vmatprep.subr.bf16.mxu1 %v6790_v59 }
 0x198   : > { %6628 = vmatmul.mubr.bf16.gmra.mrb[32].mxu1 %v1325_v38 }
 0x199   : > { %6631 = vmatprep.mubr.msk.bf16.mxu1 %vm7039_vm9, %v7035_v13 }
 0x19a   : > { %v1263_v48 = vld [vmem:[#allocation2 + $0x40] sm:$0xff] }
 0x19b   : > { %v1264_v43 = vsel %vm1262_vm13, %v1237_v49, %v1263_v48  ;;  %v1344_v53 = vld [vmem:[#allocation2 + $0x38] sm:$0xff] }
 0x19c   : > { %1265 = vst [vmem:[#allocation2 + $0x40] sm:$0xff] %v1264_v43  ;;  %6588 = vmatmul.mubr.bf16.gmra.mrb[36].mxu0 %v1327_v50 }
 0x19d   : > { %1320 = vst.msk [vmem:[#allocation2 + $0x40] sm:$0x7f] %vm1319_vm14, %v1299_v52  ;;  %6591 = vmatprep.mubr.msk.bf16.mxu0 %vm7039_vm9, %v7035_v13 }
 0x1a0   : > { %6632 = vmatmul.mubr.bf16.gmra.mrb[36].mxu1 %v1326_v16 }
 0x1a1   : > { %6635 = vmatprep.mubr.msk.bf16.mxu1 %vm7039_vm9, %v7035_v13 }
 0x1a4   : > { %6592 = vmatmul.mubr.bf16.gmra.mrb[40].mxu0 %v1344_v53  ;;  %v1816_v54 = vld [vmem:[#allocation2 + $0x40] sm:$0xff] }
 0x1a5   : > { %6655 = vmatprep.mubr.msk.bf16.mxu0 %vm7039_vm9, %v7035_v13 }
 0x1a8   : > { %6636 = vmatmul.mubr.bf16.gmra.mrb[40].mxu1 %v1327_v50 }
 0x1a9   : > { %6699 = vmatprep.mubr.msk.bf16.mxu1 %vm7039_vm9, %v7035_v13 }
 0x1ac   : > { %6656 = vmatmul.mubr.bf16.vlgmr.msra.gmra.mrb[44].mxu0 %v7380_v22  ;;  %v6806_v22 = vld [vmem:[%s8782_s5 + $0x60] sm:$0xff]  }
 0x1ad   : > { %6659 = vmatprep.mubr.msk.bf16.mxu0 %vm7039_vm9, %v7035_v13  ;;  %5936 = vmatpush3.bf16.msra.mxu0 %v6789_v58 }
 0x1ae   : > { %5937 = vmatprep.subr.bf16.mxu0 %v6792_v61 }
 0x1b0   : > { %6700 = vmatmul.mubr.bf16.vlgmr.msra.gmra.mrb[44].mxu1 %v7404_v30 }
 0x1b1   : > { %6703 = vmatprep.mubr.msk.bf16.mxu1 %vm7039_vm9, %v7035_v13  ;;  %5988 = vmatpush3.bf16.msra.mxu1 %v6791_v60 }
 0x1b2   : > { %5989 = vmatprep.subr.bf16.mxu1 %v6794_v51  ;;  %5938 = vmatpush3.bf16.msra.mxu0 %v6793_v56 }
 0x1b3   : > { %5939 = vmatprep.subr.bf16.mxu0 %v6796_v0 }
 0x1b4   : > { %6660 = vmatmul.mubr.bf16.gmra.mrb[48].mxu0 %v7404_v30 }
 0x1b5   : > { %6663 = vmatprep.mubr.msk.bf16.mxu0 %vm7039_vm9, %v7035_v13  ;;  %5990 = vmatpush3.bf16.msra.mxu1 %v6795_v62 }
 0x1b6   : > { %5991 = vmatprep.subr.bf16.mxu1 %v6798_v1  ;;  %5940 = vmatpush3.bf16.msra.mxu0 %v6797_v8 }
 0x1b7   : > { %5941 = vmatprep.subr.bf16.mxu0 %v6800_v11 }
 0x1b8   : > { %6704 = vmatmul.mubr.bf16.gmra.mrb[48].mxu1 %v1325_v38 }
 0x1b9   : > { %6707 = vmatprep.mubr.msk.bf16.mxu1 %vm7039_vm9, %v7035_v13  ;;  %5992 = vmatpush3.bf16.msra.mxu1 %v6799_v9 }
 0x1ba   : > { %5993 = vmatprep.subr.bf16.mxu1 %v6802_v12  ;;  %5942 = vmatpush3.bf16.msra.mxu0 %v6801_v17 }
 0x1bb   : > { %5943 = vmatprep.subr.bf16.mxu0 %v6804_v20  ;;  %v6809_v20 = vld [vmem:[%s8782_s5 + $0xa8] sm:$0xff]  }
 0x1bc   : > { %6664 = vmatmul.mubr.bf16.gmra.mrb[52].mxu0 %v1325_v38 }
 0x1bd   : > { %6667 = vmatprep.mubr.msk.bf16.mxu0 %vm7039_vm9, %v7035_v13  ;;  %5994 = vmatpush3.bf16.msra.mxu1 %v6803_v18 }
 0x1be   : > { %5995 = vmatprep.subr.bf16.mxu1 %v6806_v22  ;;  %5944 = vmatpush3.bf16.msra.mxu0 %v6805_v28  ;;  %v6810_v22 = vld [vmem:[%s8782_s5 + $0x68] sm:$0xff]   ;;  %v7592_v28 = vld [vmem:[%s8781_s4] ss:$0 sm:$0xff] }
 0x1c0   : > { %6708 = vmatmul.mubr.bf16.gmra.mrb[52].mxu1 %v1326_v16 }
 0x1c1   : > { %6711 = vmatprep.mubr.msk.bf16.mxu1 %vm7039_vm9, %v7035_v13  ;;  %5996 = vmatpush3.bf16.msra.mxu1 %v6807_v4  ;;  %v6814_v4 = vld [vmem:[%s8782_s5 + $0x70] sm:$0xff]  }
 0x1c2   : > { %5997 = vmatprep.subr.bf16.mxu1 %v6810_v22 }
 0x1c4   : > { %6668 = vmatmul.mubr.bf16.gmra.mrb[56].mxu0 %v1326_v16 }
 0x1c5   : > { %6671 = vmatprep.mubr.msk.bf16.mxu0 %vm7039_vm9, %v7035_v13 }
 0x1c8   : > { %6712 = vmatmul.mubr.bf16.gmra.mrb[56].mxu1 %v1327_v50 }
 0x1c9   : > { %6715 = vmatprep.mubr.msk.bf16.mxu1 %vm7039_vm9, %v7035_v13 }
 0x1cc   : > { %6672 = vmatmul.mubr.bf16.gmra.mrb[60].mxu0 %v1327_v50 }
 0x1cd   : > { %6675 = vmatprep.mubr.msk.bf16.mxu0 %vm7039_vm9, %v7035_v13 }
 0x1d0   : > { %6716 = vmatmul.mubr.bf16.gmra.mrb[60].mxu1 %v1344_v53 }
 0x1d1   : > { %6719 = vmatprep.mubr.msk.bf16.mxu1 %vm7039_vm9, %v7035_v13 }
 0x1d4   : > { %6676 = vmatmul.mubr.bf16.gmra.mrb[64].mxu0 %v1344_v53 }
 0x1d5   : > { %6679 = vmatprep.mubr.msk.bf16.mxu0 %vm7039_vm9, %v7035_v13 }
 0x1d8   : > { %6720 = vmatmul.mubr.bf16.gmra.mrb[64].mxu1 %v1816_v54 }
 0x1d9   : > { %6723 = vmatprep.mubr.msk.bf16.mxu1 %vm7039_vm9, %v7035_v13 }
 0x1dc   : > { %6680 = vmatmul.mubr.bf16.gmra.mrb[68].mxu0 %v1816_v54 }
 0x1e0   : > { %6724 = vmatmul.mubr.bf16.gmra.mrb[68].mxu1 %v1817_v55 }
 0x247   : > { %v1444_v44 = vpop.f32.mrb[16].mxu0 }
 0x248   : > { %v6569_v63 = vpop.f32.mrb[17].mxu0 }
 0x249   : > { %v1447_v2 = vpop.f32.mrb[18].mxu0 }
 0x24a   : > { %v6570_v3 = vpop.f32.mrb[19].mxu0 }
 0x24b   : > { %v1581_v5 = vpop.f32.mrb[16].mxu1 }
 0x24c   : > { %v7527_v6 = vadd.f32 %v1581_v5, %v1444_v44  ;;  %v6613_v7 = vpop.f32.mrb[17].mxu1 }
 0x24d   : > { %v1584_v10 = vpop.f32.mrb[18].mxu1 }
 0x24e   : > { %v6614_v14 = vpop.f32.mrb[19].mxu1  ;;  %v783_v10 = vlaneseq }
 0x24f   : > { %v1452_v15 = vpop.f32.mrb[20].mxu0 }
 0x250   : > { %v6573_v19 = vpop.f32.mrb[21].mxu0 }
 0x251   : > { %v1455_v23 = vpop.f32.mrb[22].mxu0  ;;  %v6808_v19 = vld [vmem:[%s8782_s5 + $0xe8] sm:$0xff]  }
 0x252   : > { %v6574_v24 = vpop.f32.mrb[23].mxu0  ;;  %5945 = vmatprep.subr.bf16.mxu0 %v6808_v19 }
 0x253   : > { %v1589_v25 = vpop.f32.mrb[20].mxu1  ;;  %v6811_v24 = vld [vmem:[%s8782_s5 + $0x28] sm:$0xff]   ;;  %5946 = vmatpush3.bf16.msra.mxu0 %v6809_v20 }
 0x254   : > { %v7553_v26 = vadd.f32 %v1589_v25, %v1452_v15  ;;  %v6617_v27 = vpop.f32.mrb[21].mxu1  ;;  %v7571_v15 = vshrl.u32 %v783_v10, 7  ;;  %5998 = vmatpush3.bf16.msra.mxu1 %v6811_v24  ;;  %v6819_v10 = vld [vmem:[%s8782_s5 + $0x38] sm:$0xff]  }
 0x255   : > { %v1592_v29 = vpop.f32.mrb[22].mxu1  ;;  %5999 = vmatprep.subr.bf16.mxu1 %v6814_v4 }
 0x256   : > { %v6618_v30 = vpop.f32.mrb[23].mxu1  ;;  %v804_v29 = vand.u32 15, %v7571_v15 }
 0x257   : > { %v1460_v31 = vpop.f32.mrb[24].mxu0 }
 0x258   : > { %v6577_v32 = vpop.f32.mrb[25].mxu0  ;;  %vm2049_vm15 = vcmp.lt.s32.totalorder %v804_v29, 7 }
 0x259   : > { %v1463_v33 = vpop.f32.mrb[26].mxu0  ;;  %v6813_v32 = vld [vmem:[%s8782_s5 + $0xb0] sm:$0xff]  }
 0x25a   : > { %v6578_v34 = vpop.f32.mrb[27].mxu0  ;;  %v6815_v33 = vld [vmem:[%s8782_s5 + $0x30] sm:$0xff]  }
 0x25b   : > { %v1597_v35 = vpop.f32.mrb[24].mxu1  ;;  %6000 = vmatpush3.bf16.msra.mxu1 %v6815_v33 }
 0x25c   : > { %v7561_v36 = vadd.f32 %v1597_v35, %v1460_v31  ;;  %v6621_v21 = vpop.f32.mrb[25].mxu1 }
 0x25d   : > { %v1600_v37 = vpop.f32.mrb[26].mxu1 }
 0x25e   : > { %v6622_v38 = vpop.f32.mrb[27].mxu1  ;;  %v7606_v37 = vadd.s32 16, %v7571_v15 }
 0x25f   : > { %v1468_v39 = vpop.f32.mrb[28].mxu0 }
 0x260   : > { %v6581_v40 = vpop.f32.mrb[29].mxu0 }
 0x261   : > { %v1471_v41 = vpop.f32.mrb[30].mxu0 }
 0x262   : > { %v6582_v42 = vpop.f32.mrb[31].mxu0 }
 0x263   : > { %v1605_v45 = vpop.f32.mrb[28].mxu1 }
 0x264   : > { %v7563_v46 = vadd.f32 %v1605_v45, %v1468_v39  ;;  %v6625_v47 = vpop.f32.mrb[29].mxu1 }
 0x265   : > { %v1608_v16 = vpop.f32.mrb[30].mxu1 }
 0x266   : > { %v6626_v48 = vpop.f32.mrb[31].mxu1 }
 0x267   : > { %v1476_v49 = vpop.f32.mrb[32].mxu0  ;;  %v818_v48 = vand.u32 15, %v7606_v37 }
 0x268   : > { %v6585_v43 = vpop.f32.mrb[33].mxu0 }
 0x269   : > { %v1479_v50 = vpop.f32.mrb[34].mxu0  ;;  %vm7630_vm8 = vcmp.lt.s32.totalorder %v818_v48, 7 }
 0x26a   : > { %v6586_v52 = vpop.f32.mrb[35].mxu0 }
 0x26b   : > { %v1613_v53 = vpop.f32.mrb[32].mxu1 }
 0x26c   : > { %v7565_v54 = vadd.f32 %v1613_v53, %v1476_v49  ;;  %v6629_v55 = vpop.f32.mrb[33].mxu1  ;;  %v6816_v53 = vld [vmem:[%s8782_s5 + $0xf8] sm:$0xff]  }
 0x26d   : > { %v1616_v57 = vpop.f32.mrb[34].mxu1 }
 0x26e   : > { %v6630_v58 = vpop.f32.mrb[35].mxu1 }
 0x26f   : > { %v1484_v59 = vpop.f32.mrb[36].mxu0 }
 0x270   : > { %v6589_v60 = vpop.f32.mrb[37].mxu0 }
 0x271   : > { %v1487_v61 = vpop.f32.mrb[38].mxu0 }
 0x272   : > { %v6590_v51 = vpop.f32.mrb[39].mxu0 }
 0x273   : > { %v1621_v44 = vpop.f32.mrb[36].mxu1  ;;  %v7635_v51 = vadd.s32 32, %v7571_v15 }
 0x274   : > { %v7567_v56 = vadd.f32 %v1621_v44, %v1484_v59  ;;  %v6633_v62 = vpop.f32.mrb[37].mxu1  ;;  %v2258_v44 = vld [vmem:[#allocation3 + $0x8] sm:$0x80] }
 0x275   : > { %v1624_v63 = vpop.f32.mrb[38].mxu1  ;;  %v832_v19 = vand.u32 15, %v7635_v51  ;;  %v6894_v51 = vld [vmem:[%s8784_s7 + $0x10] sm:$0xff]  }
 0x276   : > { %v6634_v0 = vpop.f32.mrb[39].mxu1 }
 0x277   : > { %v1492_v1 = vpop.f32.mrb[40].mxu0  ;;  %vm7674_vm12 = vcmp.lt.s32.totalorder %v832_v19, 7 }
 0x278   : > { %v6593_v2 = vpop.f32.mrb[41].mxu0 }
 0x279   : > { %v1495_v3 = vpop.f32.mrb[42].mxu0 }
 0x27a   : > { %v6594_v5 = vpop.f32.mrb[43].mxu0 }
 0x27b   : > { %v1629_v7 = vpop.f32.mrb[40].mxu1 }
 0x27c   : > { %v7569_v8 = vadd.f32 %v1629_v7, %v1492_v1  ;;  %v6637_v9 = vpop.f32.mrb[41].mxu1  ;;  %v6817_v7 = vld [vmem:[%s8782_s5 + $0xb8] sm:$0xff]  }
 0x27d   : > { %v1632_v11 = vpop.f32.mrb[42].mxu1  ;;  %v6818_v9 = vld [vmem:[%s8782_s5 + $0x78] sm:$0xff]  }
 0x27e   : > { %v6638_v12 = vpop.f32.mrb[43].mxu1  ;;  %6001 = vmatprep.subr.bf16.mxu1 %v6818_v9  ;;  %v7705_v9 = vadd.s32 64, %v7571_v15 }
 0x27f   : > { %v1742_v14 = vpop.f32.mrb[44].mxu0  ;;  %6002 = vmatpush3.bf16.msra.mxu1 %v6819_v10 }
 0x280   : > { %v1797_v17 = vadd.f32 %v1742_v14, %v7527_v6  ;;  %v6657_v18 = vpop.f32.mrb[45].mxu0  ;;  %v6812_v6 = vld [vmem:[%s8782_s5 + $0xf0] sm:$0xff]  }
 0x281   : > { %v1745_v23 = vpop.f32.mrb[46].mxu0  ;;  %5947 = vmatprep.subr.bf16.mxu0 %v6812_v6  ;;  %v7662_v6 = vld [vmem:[#allocation3] sm:$0xff] }
 0x282   : > { %v6658_v25 = vpop.f32.mrb[47].mxu0  ;;  %5948 = vmatpush3.bf16.msra.mxu0 %v6813_v32 }
 0x283   : > { %v1917_v27 = vpop.f32.mrb[44].mxu1  ;;  %5949 = vmatprep.subr.bf16.mxu0 %v6816_v53 }
 0x284   : > { %v1972_v30 = vadd.f32 %v1917_v27, %v1797_v17  ;;  %v6701_v31 = vpop.f32.mrb[45].mxu1 }
 0x285   : > { %v1920_v34 = vpop.f32.mrb[46].mxu1 }
 0x286   : > { %v1993_v35 = vadd.f32 %v7592_v28, %v1972_v30  ;;  %v6702_v21 = vpop.f32.mrb[47].mxu1  ;;  %5950 = vmatpush3.bf16.msra.mxu0 %v6817_v7  ;;  %v6820_v30 = vld [vmem:[%s8782_s5 + $0x140] sm:$0xff]  }
 0x287   : > { %v1750_v39 = vpop.f32.mrb[48].mxu0  ;;  %6039 = vmatprep.subr.bf16.mxu0 %v6820_v30 }
 0x288   : > { %vm2007_vm9 = vcmp.gt.f32.partialorder %v1993_v35, 0.0  ;;  %v2021_v38 = vmul.f32 0.2, %v1993_v35  ;;  %v1799_v40 = vadd.f32 %v1750_v39, %v7553_v26  ;;  %v6661_v41 = vpop.f32.mrb[49].mxu0 }
 0x289   : > { %v1753_v45 = vpop.f32.mrb[50].mxu0 }
 0x28a   : > { %v2035_v42 = vsel %vm2007_vm9, %v1993_v35, %v2021_v38  ;;  %v6662_v16 = vpop.f32.mrb[51].mxu0  ;;  %v7679_v38 = vadd.s32 48, %v7571_v15 }
 0x28b   : > { %v2091_v47 = vsel %vm2049_vm15, %v2035_v42, 0.0  ;;  %v1925_v49 = vpop.f32.mrb[48].mxu1 }
 0x28c   : > { %v1974_v43 = vadd.f32 %v1925_v49, %v1799_v40  ;;  %v6705_v50 = vpop.f32.mrb[49].mxu1  ;;  %v7613_v52 = vpack.c.bf16 %v7035_v13, %v2091_v47  ;;  %v6822_v47 = vld [vmem:[%s8782_s5 + $0x1c0] sm:$0xff]  }
 0x28d   : > { %v1928_v55 = vpop.f32.mrb[50].mxu1  ;;  %6091 = vmatprep.subr.bf16.mxu1 %v6822_v47 }
 0x28e   : > { %v1995_v26 = vadd.f32 %v7592_v28, %v1974_v43  ;;  %v6706_v57 = vpop.f32.mrb[51].mxu1  ;;  %2199 = vrot.lane.b32.xlu1 %v7613_v52, %s7040_s21  ;;  %v2113_v58 = vshrl.u32 %v7613_v52, 16  ;;  %v2116_v59 = vshll.u32 %v7613_v52, 16  ;;  %v2271_v4 = vrot.slane %v7613_v52, 1 }
 0x28f   : > { %v1758_v63 = vpop.f32.mrb[52].mxu0  ;;  %v846_v57 = vand.u32 15, %v7679_v38 }
 0x290   : > { %vm2009_vm10 = vcmp.gt.f32.partialorder %v1995_v26, 0.0  ;;  %v2023_v62 = vmul.f32 0.2, %v1995_v26  ;;  %v7643_v1 = vrot.slane %v2113_v58, 7  ;;  %v2228_v2 = vrot.slane %v2116_v59, 1  ;;  %v6665_v5 = vpop.f32.mrb[53].mxu0 }
 0x291   : > { %v1801_v3 = vadd.f32 %v1758_v63, %v7561_v36  ;;  %v1761_v12 = vpop.f32.mrb[54].mxu0  ;;  %vm7700_vm14 = vcmp.lt.s32.totalorder %v846_v57, 7 }
 0x292   : > { %v2037_v11 = vsel %vm2009_vm10, %v1995_v26, %v2023_v62  ;;  %v2118_v14 = vor.u32 %v2116_v59, %v7643_v1  ;;  %v2259_v36 = vsel %vm7624_vm2, %v2228_v2, %v2258_v44  ;;  %v6666_v18 = vpop.f32.mrb[55].mxu0  ;;  %v2229_v39 = vor.u32 %v2228_v2, %v2113_v58 }
 0x293   : > { %v2093_v17 = vsel %vm7630_vm8, %v2037_v11, 0.0  ;;  %v1933_v20 = vpop.f32.mrb[52].mxu1  ;;  %2260 = vst [vmem:[#allocation3 + $0x8] sm:$0x80] %v2259_v36 }
 0x294   : > { %v2106_v22 = vpack.c.bf16 %v7035_v13, %v2093_v17  ;;  %v1976_v23 = vadd.f32 %v1933_v20, %v1801_v3  ;;  %v6709_v24 = vpop.f32.mrb[53].mxu1  ;;  %v2178_v25 = vsel %vm7639_vm11, %v2118_v14, %v7662_v6 }
 0x295   : > { %v1936_v27 = vpop.f32.mrb[54].mxu1  ;;  %2179 = vst [vmem:[#allocation3 + $0x10] sm:$0xff] %v2178_v25 }
 0x296   : > { %v1997_v31 = vadd.f32 %v7592_v28, %v1976_v23  ;;  %v6710_v32 = vpop.f32.mrb[55].mxu1  ;;  %v2272_v33 = vrot.slane %v2106_v22, 1  ;;  %v2123_v34 = vshll.u32 %v2106_v22, 16  ;;  %v2120_v35 = vshrl.u32 %v2106_v22, 16 }
 0x297   : > { %v1766_v41 = vpop.f32.mrb[56].mxu0 }
 0x298   : > { %vm2011_vm13 = vcmp.gt.f32.partialorder %v1997_v31, 0.0  ;;  %v2025_v40 = vmul.f32 0.2, %v1997_v31  ;;  %v2273_v42 = vsel %vm1266_vm3, %v2271_v4, %v2272_v33  ;;  %v2230_v45 = vrot.slane %v2123_v34, 1  ;;  %v6669_v49 = vpop.f32.mrb[57].mxu0 }
 0x299   : > { %v1803_v16 = vadd.f32 %v1766_v41, %v7563_v46  ;;  %2286 = vrot.lane.b32.xlu0 %v2273_v42, %s7040_s21  ;;  %v2122_v43 = vrot.slane %v2120_v35, 7  ;;  %v1769_v52 = vpop.f32.mrb[58].mxu0 }
 0x29a   : > { %v2039_v50 = vsel %vm2011_vm13, %v1997_v31, %v2025_v40  ;;  %v2231_v53 = vsel %vm1196_vm6, %v2229_v39, %v2230_v45  ;;  %v6670_v26 = vpop.f32.mrb[59].mxu0  ;;  %v2232_v10 = vor.u32 %v2230_v45, %v2120_v35  ;;  %v7728_v45 = vadd.s32 80, %v7571_v15 }
 0x29b   : > { %v2095_v55 = vsel %vm7674_vm12, %v2039_v50, 0.0  ;;  %v1941_v58 = vpop.f32.mrb[56].mxu1  ;;  %2261 = vst.msk [vmem:[#allocation3 + $0x18] sm:$0xff] %vm2175_vm0, %v2231_v53  ;;  %v2125_v59 = vor.u32 %v2123_v34, %v2122_v43  ;;  %vm2187_vm12 = vcmask 516096  }
 0x29c   : > { %v2107_v46 = vpack.c.bf16 %v7035_v13, %v2095_v55  ;;  %v1978_v60 = vadd.f32 %v1941_v58, %v1803_v16  ;;  %v6713_v61 = vpop.f32.mrb[57].mxu1  ;;  %vm2188_vm13 = vmand %vm2187_vm12, %vm1064_vm4 }
 0x29d   : > { %v1944_v44 = vpop.f32.mrb[58].mxu1  ;;  %2284 = vrot.lane.b32.xlu0 %v2271_v4, %s7040_s21  ;;  %v2126_v62 = vsel %vm1064_vm4, %v7643_v1, %v2125_v59  ;;  %v860_v4 = vand.u32 15, %v7705_v9  ;;  %v874_v61 = vand.u32 15, %v7728_v45  ;;  %v6912_v45 = vld [vmem:[%s8784_s7 + $0xb0] sm:$0xff]  }
 0x29e   : > { %v1999_v63 = vadd.f32 %v7592_v28, %v1978_v60  ;;  %v6714_v0 = vpop.f32.mrb[59].mxu1  ;;  %v2274_v2 = vrot.slane %v2107_v46, 1  ;;  %2181 = vst.msk [vmem:[#allocation3 + $0x20] sm:$0xff] %vm2175_vm0, %v2126_v62  ;;  %v2131_v3 = vshll.u32 %v2107_v46, 16  ;;  %v2128_v5 = vshrl.u32 %v2107_v46, 16 }
 0x29f   : > { %v1774_v11 = vpop.f32.mrb[60].mxu0  ;;  %vm7723_vm15 = vcmp.lt.s32.totalorder %v860_v4, 7  ;;  %vm7746_vm2 = vcmp.lt.s32.totalorder %v874_v61, 7 }
 0x2a0   : > { %vm2013_vm9 = vcmp.gt.f32.partialorder %v1999_v63, 0.0  ;;  %v2027_v1 = vmul.f32 0.2, %v1999_v63  ;;  %v2275_v12 = vsel %vm1266_vm3, %v2272_v33, %v2274_v2  ;;  %v2233_v14 = vrot.slane %v2131_v3, 1  ;;  %v6673_v17 = vpop.f32.mrb[61].mxu0 }
 0x2a1   : > { %v1805_v36 = vadd.f32 %v1774_v11, %v7565_v54  ;;  %2201 = vrot.lane.b32.xlu0 %v2106_v22, %s7040_s21  ;;  %2288 = vrot.lane.b32.xlu1 %v2275_v12, %s7040_s21  ;;  %v2130_v18 = vrot.slane %v2128_v5, 7  ;;  %v1777_v23 = vpop.f32.mrb[62].mxu0 }
 0x2a2   : > { %v2041_v20 = vsel %vm2013_vm9, %v1999_v63, %v2027_v1  ;;  %v2234_v24 = vsel %vm1196_vm6, %v2232_v10, %v2233_v14  ;;  %v6674_v27 = vpop.f32.mrb[63].mxu0  ;;  %v2235_v53 = vor.u32 %v2233_v14, %v2128_v5  ;;  %v796_v14 = vadd.s32 96, %v7571_v15 }
 0x2a3   : > { %v2097_v25 = vsel %vm7700_vm14, %v2041_v20, 0.0  ;;  %v1949_v30 = vpop.f32.mrb[60].mxu1  ;;  %2262 = vst.msk [vmem:[#allocation3 + $0x28] sm:$0xff] %vm2175_vm0, %v2234_v24  ;;  %v2133_v54 = vor.u32 %v2131_v3, %v2130_v18  ;;  %vm2267_vm14 = vmand %vm2175_vm0, %vm1196_vm6  ;;  %vm2220_vm9 = vcmask 1048064  }
 0x2a4   : > { %v1980_v31 = vadd.f32 %v1949_v30, %v1805_v36  ;;  %v6717_v22 = vpop.f32.mrb[61].mxu1  ;;  %v2108_v32 = vpack.c.bf16 %v7035_v13, %v2097_v25 }
 0x2a5   : > { %v1952_v33 = vpop.f32.mrb[62].mxu1  ;;  %2203 = vrot.lane.b32.xlu0 %v2107_v46, %s7040_s21  ;;  %v2134_v34 = vsel %vm1064_vm4, %v2122_v43, %v2133_v54 }
 0x2a6   : > { %v2001_v35 = vadd.f32 %v7592_v28, %v1980_v31  ;;  %v6718_v21 = vpop.f32.mrb[63].mxu1  ;;  %v2276_v39 = vrot.slane %v2108_v32, 1  ;;  %2182 = vst.msk [vmem:[#allocation3 + $0x30] sm:$0xff] %vm2175_vm0, %v2134_v34  ;;  %v2136_v40 = vshrl.u32 %v2108_v32, 16  ;;  %v2139_v41 = vshll.u32 %v2108_v32, 16 }
 0x2a7   : > { %v1782_v16 = vpop.f32.mrb[64].mxu0  ;;  %v888_v33 = vand.u32 15, %v796_v14 }
 0x2a8   : > { %vm2015_vm1 = vcmp.gt.f32.partialorder %v2001_v35, 0.0  ;;  %v2029_v47 = vmul.f32 0.2, %v2001_v35  ;;  %v2277_v49 = vsel %vm1266_vm3, %v2274_v2, %v2276_v39  ;;  %v2138_v43 = vrot.slane %v2136_v40, 7  ;;  %v6677_v52 = vpop.f32.mrb[65].mxu0 }
 0x2a9   : > { %v1807_v50 = vadd.f32 %v1782_v16, %v7567_v56  ;;  %2205 = vrot.lane.b32.xlu0 %v2108_v32, %s7040_s21  ;;  %2290 = vrot.lane.b32.xlu1 %v2277_v49, %s7040_s21  ;;  %v2236_v55 = vrot.slane %v2139_v41, 1  ;;  %v1785_v58 = vpop.f32.mrb[66].mxu0  ;;  %vm2061_vm10 = vcmp.lt.s32.totalorder %v888_v33, 7  ;;  %v6825_v33 = vld [vmem:[%s8782_s5 + $0x108] sm:$0xff]  }
 0x2aa   : > { %v2043_v26 = vsel %vm2015_vm1, %v2001_v35, %v2029_v47  ;;  %v2141_v59 = vor.u32 %v2139_v41, %v2138_v43  ;;  %v6678_v60 = vpop.f32.mrb[67].mxu0 }
 0x2ab   : > { %v2099_v46 = vsel %vm7723_vm15, %v2043_v26, 0.0  ;;  %v1957_v44 = vpop.f32.mrb[64].mxu1  ;;  %v2237_v62 = vsel %vm1196_vm6, %v2235_v53, %v2236_v55  ;;  %v2238_v25 = vor.u32 %v2236_v55, %v2136_v40  ;;  %vm2308_vm15 = vcmask 1048071  }
 0x2ac   : > { %v1982_v56 = vadd.f32 %v1957_v44, %v1807_v50  ;;  %v6721_v63 = vpop.f32.mrb[65].mxu1  ;;  %v2109_v0 = vpack.c.bf16 %v7035_v13, %v2099_v46  ;;  %v2142_v2 = vsel %vm1064_vm4, %v2130_v18, %v2141_v59  ;;  %2263 = vst.msk [vmem:[#allocation3 + $0x38] sm:$0xff] %vm2175_vm0, %v2237_v62 }
 0x2ad   : > { %v1960_v3 = vpop.f32.mrb[66].mxu1  ;;  %2183 = vst.msk [vmem:[#allocation3 + $0x40] sm:$0xff] %vm2175_vm0, %v2142_v2 }
 0x2ae   : > { %v2003_v5 = vadd.f32 %v7592_v28, %v1982_v56  ;;  %v6722_v7 = vpop.f32.mrb[67].mxu1  ;;  %2207 = vrot.lane.b32.xlu0 %v2109_v0, %s7040_s21  ;;  %v2278_v10 = vrot.slane %v2109_v0, 1  ;;  %v2144_v1 = vshrl.u32 %v2109_v0, 16  ;;  %v2147_v11 = vshll.u32 %v2109_v0, 16  ;;  %v2189_v0 = vld [vmem:[#allocation3 + $0x80] sm:$0x1] }
 0x2af   : > { %v1790_v17 = vpop.f32.mrb[68].mxu0 }
 0x2b0   : > { %vm2017_vm8 = vcmp.gt.f32.partialorder %v2003_v5, 0.0  ;;  %v2031_v36 = vmul.f32 0.2, %v2003_v5  ;;  %v2279_v18 = vsel %vm1266_vm3, %v2276_v39, %v2278_v10  ;;  %v2146_v20 = vrot.slane %v2144_v1, 7  ;;  %v6681_v24 = vpop.f32.mrb[69].mxu0 }
 0x2b1   : > { %v1809_v23 = vadd.f32 %v1790_v17, %v7569_v8  ;;  %2292 = vrot.lane.b32.xlu1 %v2279_v18, %s7040_s21  ;;  %v2239_v27 = vrot.slane %v2147_v11, 1  ;;  %v1793_v54 = vpop.f32.mrb[70].mxu0 }
 0x2b2   : > { %v2045_v30 = vsel %vm2017_vm8, %v2003_v5, %v2031_v36  ;;  %v2149_v31 = vor.u32 %v2147_v11, %v2146_v20  ;;  %v6682_v32 = vpop.f32.mrb[71].mxu0  ;;  %vm3427_vm8 = vcmask 1047559  }
 0x2b3   : > { %v2101_v22 = vsel %vm7746_vm2, %v2045_v30, 0.0  ;;  %v1965_v34 = vpop.f32.mrb[68].mxu1  ;;  %v2240_v35 = vsel %vm1196_vm6, %v2238_v25, %v2239_v27  ;;  %v6824_v30 = vld [vmem:[%s8782_s5 + $0x148] sm:$0xff]   ;;  %vm8029_vm2 = vcmp.lt.s32.totalorder %v804_v29, 6 }
 0x2b4   : > { %v1984_v21 = vadd.f32 %v1965_v34, %v1809_v23  ;;  %v6725_v39 = vpop.f32.mrb[69].mxu1  ;;  %v2110_v8 = vpack.c.bf16 %v7035_v13, %v2101_v22  ;;  %v2150_v41 = vsel %vm1064_vm4, %v2138_v43, %v2149_v31  ;;  %2264 = vst.msk [vmem:[#allocation3 + $0x48] sm:$0xff] %vm2175_vm0, %v2240_v35  ;;  %v2241_v43 = vor.u32 %v2239_v27, %v2144_v1  ;;  %v6821_v23 = vld [vmem:[%s8782_s5 + $0x100] sm:$0xff]   ;;  %v6826_v34 = vld [vmem:[%s8782_s5 + $0x1c8] sm:$0xff]   ;;  %v6828_v35 = vld [vmem:[%s8782_s5 + $0x150] sm:$0xff]  }
 0x2b5   : > { %v1968_v40 = vpop.f32.mrb[70].mxu1  ;;  %2184 = vst.msk [vmem:[#allocation3 + $0x50] sm:$0xff] %vm2175_vm0, %v2150_v41  ;;  %v6823_v31 = vld [vmem:[%s8782_s5 + $0x180] sm:$0xff]   ;;  %v6829_v39 = vld [vmem:[%s8782_s5 + $0x110] sm:$0xff]  }
 0x2b6   : > { %v2005_v42 = vadd.f32 %v7592_v28, %v1984_v21  ;;  %v6726_v47 = vpop.f32.mrb[71].mxu1  ;;  %2209 = vrot.lane.b32.xlu0 %v2110_v8, %s7040_s21  ;;  %v2280_v16 = vrot.slane %v2110_v8, 1  ;;  %v2152_v49 = vshrl.u32 %v2110_v8, 16  ;;  %v2155_v50 = vshll.u32 %v2110_v8, 16  ;;  %v6827_v21 = vld [vmem:[%s8782_s5 + $0x188] sm:$0xff]  }
 0x2b7   : > { %v6830_v47 = vld [vmem:[%s8782_s5 + $0x1d0] sm:$0xff]  }
 0x2b8   : > { %vm2019_vm11 = vcmp.gt.f32.partialorder %v2005_v42, 0.0  ;;  %v2033_v52 = vmul.f32 0.2, %v2005_v42  ;;  %v2281_v53 = vsel %vm1266_vm3, %v2278_v10, %v2280_v16  ;;  %v2154_v55 = vrot.slane %v2152_v49, 7 }
 0x2b9   : > { %2294 = vrot.lane.b32.xlu1 %v2281_v53, %s7040_s21  ;;  %v2242_v26 = vrot.slane %v2155_v50, 1 }
 0x2ba   : > { %v2047_v58 = vsel %vm2019_vm11, %v2005_v42, %v2033_v52  ;;  %v2157_v59 = vor.u32 %v2155_v50, %v2154_v55  ;;  %v6833_v50 = vld [vmem:[%s8782_s5 + $0x118] sm:$0xff]   ;;  %vm7041_vm11 = vmmov 1  }
 0x2bb   : > { %v2103_v46 = vsel %vm2061_vm10, %v2047_v58, 0.0  ;;  %v2243_v28 = vsel %vm1196_vm6, %v2241_v43, %v2242_v26  ;;  %v2244_v5 = vor.u32 %v2242_v26, %v2152_v49  ;;  %v6831_v49 = vld [vmem:[%s8782_s5 + $0x190] sm:$0xff]   ;;  %v6834_v52 = vld [vmem:[%s8782_s5 + $0x1d8] sm:$0xff]   ;;  %vm3382_vm10 = vcmask 1047552   ;;  %vm8046_vm12 = vmpackc.low %vm7041_vm11, %vm8029_vm2 }
 0x2bc   : > { %v2111_v60 = vpack.c.bf16 %v7035_v13, %v2103_v46  ;;  %v2158_v44 = vsel %vm1064_vm4, %v2146_v20, %v2157_v59  ;;  %2265 = vst.msk [vmem:[#allocation3 + $0x58] sm:$0xff] %vm2175_vm0, %v2243_v28  ;;  %v6835_v43 = vld [vmem:[%s8782_s5 + $0x198] sm:$0xff]   ;;  %v6837_v59 = vld [vmem:[%s8782_s5 + $0x120] sm:$0xff]  }
 0x2bd   : > { %2185 = vst.msk [vmem:[#allocation3 + $0x60] sm:$0xff] %vm2175_vm0, %v2158_v44  ;;  %v6838_v46 = vld [vmem:[%s8782_s5 + $0x1e0] sm:$0xff]  }
 0x2be   : > { %2211 = vrot.lane.b32.xlu0 %v2111_v60, %s7040_s21  ;;  %v2282_v62 = vrot.slane %v2111_v60, 1  ;;  %v2160_v56 = vshrl.u32 %v2111_v60, 16  ;;  %v2163_v63 = vshll.u32 %v2111_v60, 16  ;;  %v6840_v60 = vld [vmem:[%s8782_s5 + $0x168] sm:$0xff]   ;;  %v6839_v44 = vld [vmem:[%s8782_s5 + $0x1a0] sm:$0xff]  }
 0x2c0   : > { %v2283_v2 = vsel %vm1266_vm3, %v2280_v16, %v2282_v62  ;;  %v2162_v3 = vrot.slane %v2160_v56, 7  ;;  %v2245_v7 = vrot.slane %v2163_v63, 1  ;;  %v6832_v16 = vld [vmem:[%s8782_s5 + $0x158] sm:$0xff]  }
 0x2c1   : > { %2296 = vrot.lane.b32.xlu1 %v2283_v2, %s7040_s21  ;;  %v6843_v2 = vld [vmem:[%s8782_s5 + $0x1a8] sm:$0xff]  }
 0x2c2   : > { %v2165_v10 = vor.u32 %v2163_v63, %v2162_v3  ;;  %v2190_v1 = vsel %vm2188_vm13, %v2162_v3, %v2189_v0  ;;  %v2246_v11 = vsel %vm1196_vm6, %v2244_v5, %v2245_v7  ;;  %v2247_v12 = vor.u32 %v2245_v7, %v2160_v56  ;;  %v6842_v56 = vld [vmem:[%s8782_s5 + $0x1e8] sm:$0xff]   ;;  %v6844_v0 = vld [vmem:[%s8782_s5 + $0x170] sm:$0xff]   ;;  %vm8058_vm13 = vmand %vm3427_vm8, %vm1248_vm7 }
 0x2c3   : > { %2191 = vst [vmem:[#allocation3 + $0x80] sm:$0x1] %v2190_v1  ;;  %2266 = vst.msk [vmem:[#allocation3 + $0x68] sm:$0xff] %vm2175_vm0, %v2246_v11  ;;  %v6845_v7 = vld [vmem:[%s8782_s5 + $0x130] sm:$0xff]   ;;  %v6848_v11 = vld [vmem:[%s8782_s5 + $0x178] sm:$0xff]   ;;  %vm8193_vm8 = vcmp.lt.s32.totalorder %v846_v57, 6 }
 0x2c4   : > { %v2166_v14 = vsel %vm1064_vm4, %v2154_v55, %v2165_v10  ;;  %v2269_v36 = vsel %vm2267_vm14, %v2247_v12, %v7662_v6  ;;  %v6836_v55 = vld [vmem:[%s8782_s5 + $0x160] sm:$0xff]   ;;  %v6846_v10 = vld [vmem:[%s8782_s5 + $0x1f0] sm:$0xff]   ;;  %vm8064_vm14 = vcmp.lt.s32.totalorder %v818_v48, 6  ;;  %vm3383_vm7 = vmand %vm3382_vm10, %vm1138_vm5 }
 0x2c5   : > { %2298 = vrot.lane.b32.xlu1 %v2282_v62, %s7040_s21  ;;  %2186 = vst.msk [vmem:[#allocation3 + $0x70] sm:$0xff] %vm2175_vm0, %v2166_v14  ;;  %2270 = vst [vmem:[#allocation3 + $0x78] sm:$0xff] %v2269_v36  ;;  %v6841_v62 = vld [vmem:[%s8782_s5 + $0x128] sm:$0xff]   ;;  %v6847_v12 = vld [vmem:[%s8782_s5 + $0x1b0] sm:$0xff]   ;;  %vm2316_vm0 = vcmask 1047040  }
 0x2c6   : > { %v6849_v14 = vld [vmem:[%s8782_s5 + $0x138] sm:$0xff]   ;;  %vm8099_vm5 = vmpackc.low %vm7041_vm11, %vm8064_vm14  ;;  %v6895_v57 = vld [vmem:[%s8784_s7 + $0x90] sm:$0xff]  }
 0x2c7   : > { %v6850_v36 = vld [vmem:[%s8782_s5 + $0x1f8] sm:$0xff]  }
 0x300   : > { %v2200_v17 = vpop.permute.xlu1 %2199 }
 0x301   : > { %2221 = vst.msk [vmem:[#allocation3 + $0x10] sm:$0xff] %vm2220_vm9, %v2200_v17 }
 0x308   : > { %v2320_v54 = vld [vmem:[#allocation3 + $0x10] sm:$0xff] }
 0x30b   : > { %v2287_v18 = vpop.permute.xlu0 %2286 }
 0x30c   : > { %2310 = vst.msk [vmem:[#allocation3 + $0x18] sm:$0xff] %vm2220_vm9, %v2287_v18  ;;  %v6851_v18 = vld [vmem:[%s8782_s5 + $0x1b8] sm:$0xff]  }
 0x30f   : > { %v2285_v20 = vpop.permute.xlu0 %2284 }
 0x310   : > { %2309 = vst.msk [vmem:[#allocation3 + $0x8] sm:$0x80] %vm2308_vm15, %v2285_v20 }
 0x313   : > { %v2202_v24 = vpop.permute.xlu0 %2201  ;;  %v2289_v25 = vpop.permute.xlu1 %2288  ;;  %v2321_v27 = vld [vmem:[#allocation3 + $0x18] sm:$0xff] }
 0x314   : > { %2222 = vst.msk [vmem:[#allocation3 + $0x20] sm:$0xff] %vm2220_vm9, %v2202_v24  ;;  %2311 = vst.msk [vmem:[#allocation3 + $0x28] sm:$0xff] %vm2220_vm9, %v2289_v25  ;;  %2525 = vmatprep.mubr.bf16.mxu0 %v2321_v27 }
 0x315   : > { %2526 = vmatmul.mubr.bf16.vlgmr.msra.gmra.mrb[72].mxu0 %v2320_v54 }
 0x316   : > { %6040 = vmatpush3.bf16.msra.mxu0 %v6821_v23 }
 0x317   : > { %v2204_v22 = vpop.permute.xlu0 %2203  ;;  %v2319_v32 = vld [vmem:[#allocation3 + $0x8] sm:$0xff]  ;;  %6041 = vmatprep.subr.bf16.mxu0 %v6824_v30 }
 0x318   : > { %2223 = vst.msk [vmem:[#allocation3 + $0x30] sm:$0xff] %vm2220_vm9, %v2204_v22  ;;  %2702 = vmatprep.mubr.bf16.mxu1 %v2319_v32  ;;  %v2995_v22 = vld [vmem:[#allocation3 + $0x80] sm:$0xff]  ;;  %v6852_v32 = vld [vmem:[%s8784_s7 + $0x140] sm:$0xff]  }
 0x319   : > { %2703 = vmatmul.mubr.bf16.vlgmr.msra.gmra.mrb[72].mxu1 %v7662_v6 }
 0x31a   : > { %6092 = vmatpush3.bf16.msra.mxu1 %v6823_v31  ;;  %2710 = vmatprep.mubr.bf16.mxu1 %v2321_v27 }
 0x31b   : > { %v2206_v8 = vpop.permute.xlu0 %2205  ;;  %v2291_v41 = vpop.permute.xlu1 %2290  ;;  %v7812_v40 = vld [vmem:[#allocation3 + $0x28] sm:$0xff]  ;;  %v7814_v42 = vld [vmem:[#allocation3 + $0x20] sm:$0xff]  ;;  %6042 = vmatpush3.bf16.msra.mxu0 %v6825_v33  ;;  %6093 = vmatprep.subr.bf16.mxu1 %v6826_v34  ;;  %v6853_v33 = vld [vmem:[%s8784_s7 + $0x1c0] sm:$0xff]  }
 0x31c   : > { %2224 = vst.msk [vmem:[#allocation3 + $0x40] sm:$0xff] %vm2220_vm9, %v2206_v8  ;;  %2312 = vst.msk [vmem:[#allocation3 + $0x38] sm:$0xff] %vm2220_vm9, %v2291_v41  ;;  %2533 = vmatprep.mubr.bf16.mxu0 %v7812_v40  ;;  %6043 = vmatprep.subr.bf16.mxu0 %v6828_v35  ;;  %v6854_v34 = vld [vmem:[%s8784_s7 + $0x100] sm:$0xff]   ;;  %v6859_v8 = vld [vmem:[%s8784_s7 + $0x188] sm:$0xff]  }
 0x31d   : > { %2534 = vmatmul.mubr.bf16.gmra.mrb[76].mxu0 %v7814_v42  ;;  %v6855_v35 = vld [vmem:[%s8784_s7 + $0x180] sm:$0xff]   ;;  %v6860_v41 = vld [vmem:[%s8784_s7 + $0x150] sm:$0xff]  }
 0x31e   : > { %6094 = vmatpush3.bf16.msra.mxu1 %v6827_v21  ;;  %v6857_v21 = vld [vmem:[%s8784_s7 + $0x1c8] sm:$0xff]  }
 0x31f   : > { %6044 = vmatpush3.bf16.msra.mxu0 %v6829_v39  ;;  %6095 = vmatprep.subr.bf16.mxu1 %v6830_v47  ;;  %v7853_v28 = vld [vmem:[#allocation3 + $0x30] sm:$0xff]  ;;  %v6858_v39 = vld [vmem:[%s8784_s7 + $0x108] sm:$0xff]   ;;  %v6863_v47 = vld [vmem:[%s8784_s7 + $0x190] sm:$0xff]  }
 0x320   : > { %v2208_v53 = vpop.permute.xlu0 %2207  ;;  %6045 = vmatprep.subr.bf16.mxu0 %v6832_v16  ;;  %v6864_v16 = vld [vmem:[%s8784_s7 + $0x158] sm:$0xff]  }
 0x321   : > { %2225 = vst.msk [vmem:[#allocation3 + $0x50] sm:$0xff] %vm2220_vm9, %v2208_v53  ;;  %2711 = vmatmul.mubr.bf16.gmra.mrb[76].mxu1 %v2320_v54  ;;  %v6865_v53 = vld [vmem:[%s8784_s7 + $0x1d8] sm:$0xff]  }
 0x322   : > { %2718 = vmatprep.mubr.bf16.mxu1 %v7812_v40  ;;  %6096 = vmatpush3.bf16.msra.mxu1 %v6831_v49  ;;  %v6866_v49 = vld [vmem:[%s8784_s7 + $0x118] sm:$0xff]  }
 0x323   : > { %v2293_v26 = vpop.permute.xlu1 %2292  ;;  %v7843_v58 = vld [vmem:[#allocation3 + $0x38] sm:$0xff]  ;;  %6046 = vmatpush3.bf16.msra.mxu0 %v6833_v50  ;;  %6097 = vmatprep.subr.bf16.mxu1 %v6834_v52  ;;  %v2326_v1 = vld [vmem:[#allocation3 + $0x40] sm:$0xff]  ;;  %v6868_v50 = vld [vmem:[%s8784_s7 + $0x160] sm:$0xff]  }
 0x324   : > { %2313 = vst.msk [vmem:[#allocation3 + $0x48] sm:$0xff] %vm2220_vm9, %v2293_v26  ;;  %2541 = vmatprep.mubr.bf16.mxu0 %v7843_v58  ;;  %6047 = vmatprep.subr.bf16.mxu0 %v6836_v55  ;;  %v6870_v52 = vld [vmem:[%s8784_s7 + $0x120] sm:$0xff]   ;;  %v6867_v55 = vld [vmem:[%s8784_s7 + $0x198] sm:$0xff]   ;;  %v6874_v26 = vld [vmem:[%s8784_s7 + $0x128] sm:$0xff]  }
 0x325   : > { %2542 = vmatmul.mubr.bf16.gmra.mrb[80].mxu0 %v7853_v28 }
 0x326   : > { %6098 = vmatpush3.bf16.msra.mxu1 %v6835_v43  ;;  %v6872_v43 = vld [vmem:[%s8784_s7 + $0x168] sm:$0xff]  }
 0x327   : > { %6048 = vmatpush3.bf16.msra.mxu0 %v6837_v59  ;;  %6099 = vmatprep.subr.bf16.mxu1 %v6838_v46  ;;  %v6871_v59 = vld [vmem:[%s8784_s7 + $0x1a0] sm:$0xff]   ;;  %v6876_v46 = vld [vmem:[%s8784_s7 + $0x170] sm:$0xff]  }
 0x328   : > { %v2210_v63 = vpop.permute.xlu0 %2209  ;;  %6049 = vmatprep.subr.bf16.mxu0 %v6840_v60  ;;  %v2328_v24 = vld [vmem:[#allocation3 + $0x50] sm:$0xff]  ;;  %v6873_v60 = vld [vmem:[%s8784_s7 + $0x1e8] sm:$0xff]  }
 0x329   : > { %2226 = vst.msk [vmem:[#allocation3 + $0x60] sm:$0xff] %vm2220_vm9, %v2210_v63  ;;  %2719 = vmatmul.mubr.bf16.gmra.mrb[80].mxu1 %v7814_v42  ;;  %v6878_v63 = vld [vmem:[%s8784_s7 + $0x1f0] sm:$0xff]  }
 0x32a   : > { %2726 = vmatprep.mubr.bf16.mxu1 %v7843_v58  ;;  %6100 = vmatpush3.bf16.msra.mxu1 %v6839_v44  ;;  %v6875_v44 = vld [vmem:[%s8784_s7 + $0x1a8] sm:$0xff]  }
 0x32b   : > { %v2295_v3 = vpop.permute.xlu1 %2294  ;;  %v2327_v5 = vld [vmem:[#allocation3 + $0x48] sm:$0xff]  ;;  %6050 = vmatpush3.bf16.msra.mxu0 %v6841_v62  ;;  %6101 = vmatprep.subr.bf16.mxu1 %v6842_v56 }
 0x32c   : > { %2314 = vst.msk [vmem:[#allocation3 + $0x58] sm:$0xff] %vm2220_vm9, %v2295_v3  ;;  %2549 = vmatprep.mubr.bf16.mxu0 %v2327_v5  ;;  %6051 = vmatprep.subr.bf16.mxu0 %v6844_v0  ;;  %v6880_v62 = vld [vmem:[%s8784_s7 + $0x178] sm:$0xff]   ;;  %v6879_v0 = vld [vmem:[%s8784_s7 + $0x1b0] sm:$0xff]  }
 0x32d   : > { %2550 = vmatmul.mubr.bf16.gmra.mrb[84].mxu0 %v2326_v1  ;;  %v6881_v56 = vld [vmem:[%s8784_s7 + $0x138] sm:$0xff]  }
 0x32e   : > { %6102 = vmatpush3.bf16.msra.mxu1 %v6843_v2  ;;  %v6882_v2 = vld [vmem:[%s8784_s7 + $0x1f8] sm:$0xff]  }
 0x32f   : > { %6052 = vmatpush3.bf16.msra.mxu0 %v6845_v7  ;;  %6103 = vmatprep.subr.bf16.mxu1 %v6846_v10  ;;  %v6883_v3 = vld [vmem:[%s8784_s7 + $0x1b8] sm:$0xff]   ;;  %v6885_v7 = vld [vmem:[%s8784_s7 + $0xc0] sm:$0xff]  }
 0x330   : > { %v2212_v17 = vpop.permute.xlu0 %2211  ;;  %6053 = vmatprep.subr.bf16.mxu0 %v6848_v11  ;;  %v2362_v30 = vld [vmem:[#allocation3 + $0x60] sm:$0xff] }
 0x331   : > { %2227 = vst.msk [vmem:[#allocation3 + $0x70] sm:$0xff] %vm2220_vm9, %v2212_v17  ;;  %2727 = vmatmul.mubr.bf16.gmra.mrb[84].mxu1 %v7853_v28 }
 0x332   : > { %2734 = vmatprep.mubr.bf16.mxu1 %v2327_v5  ;;  %6104 = vmatpush3.bf16.msra.mxu1 %v6847_v12 }
 0x333   : > { %v2297_v20 = vpop.permute.xlu1 %2296  ;;  %v2329_v23 = vld [vmem:[#allocation3 + $0x58] sm:$0xff]  ;;  %6054 = vmatpush3.bf16.msra.mxu0 %v6849_v14  ;;  %6105 = vmatprep.subr.bf16.mxu1 %v6850_v36 }
 0x334   : > { %2315 = vst.msk [vmem:[#allocation3 + $0x68] sm:$0xff] %vm2220_vm9, %v2297_v20  ;;  %2557 = vmatprep.mubr.bf16.mxu0 %v2329_v23  ;;  %6143 = vmatprep.subr.bf16.mxu0 %v6852_v32 }
 0x335   : > { %2558 = vmatmul.mubr.bf16.gmra.mrb[88].mxu0 %v2328_v24 }
 0x336   : > { %6106 = vmatpush3.bf16.msra.mxu1 %v6851_v18 }
 0x337   : > { %v2299_v25 = vpop.permute.xlu1 %2298  ;;  %6189 = vmatprep.subr.bf16.mxu1 %v6853_v33 }
 0x338   : > { %2317 = vst.msk [vmem:[#allocation3 + $0x78] sm:$0x7f] %vm2316_vm0, %v2299_v25  ;;  %v2993_v31 = vld [vmem:[#allocation3 + $0x70] sm:$0xff]  ;;  %vm8131_vm0 = vcmp.lt.s32.totalorder %v832_v19, 6 }
 0x339   : > { %2735 = vmatmul.mubr.bf16.gmra.mrb[88].mxu1 %v2326_v1 }
 0x33a   : > { %2742 = vmatprep.mubr.bf16.mxu1 %v2329_v23 }
 0x33b   : > { %v2363_v27 = vld [vmem:[#allocation3 + $0x68] sm:$0xff] }
 0x33c   : > { %2565 = vmatprep.mubr.bf16.mxu0 %v2363_v27 }
 0x33d   : > { %2566 = vmatmul.mubr.bf16.gmra.mrb[92].mxu0 %v2362_v30 }
 0x33e   : > { %2924 = vmatprep.mubr.bf16.mxu0 %v7812_v40  ;;  %v6861_v40 = vld [vmem:[%s8784_s7 + $0x1d0] sm:$0xff]  }
 0x33f   : > { %v2994_v54 = vld [vmem:[#allocation3 + $0x78] sm:$0xff] }
 0x341   : > { %2743 = vmatmul.mubr.bf16.gmra.mrb[92].mxu1 %v2328_v24 }
 0x342   : > { %3158 = vmatprep.mubr.bf16.mxu1 %v7843_v58 }
 0x345   : > { %2925 = vmatmul.mubr.bf16.vlgmr.msra.gmra.mrb[96].mxu0 %v7814_v42  ;;  %v6862_v42 = vld [vmem:[%s8784_s7 + $0x110] sm:$0xff]  }
 0x346   : > { %2932 = vmatprep.mubr.bf16.mxu0 %v7843_v58  ;;  %6144 = vmatpush3.bf16.msra.mxu0 %v6854_v34  ;;  %v6869_v58 = vld [vmem:[%s8784_s7 + $0x1e0] sm:$0xff]  }
 0x349   : > { %3159 = vmatmul.mubr.bf16.vlgmr.msra.gmra.mrb[96].mxu1 %v7853_v28 }
 0x34a   : > { %3166 = vmatprep.mubr.bf16.mxu1 %v2327_v5  ;;  %6190 = vmatpush3.bf16.msra.mxu1 %v6855_v35 }
 0x34b   : > { %6191 = vmatprep.subr.bf16.mxu1 %v6857_v21 }
 0x34d   : > { %2933 = vmatmul.mubr.bf16.gmra.mrb[100].mxu0 %v7853_v28  ;;  %v6877_v28 = vld [vmem:[%s8784_s7 + $0x130] sm:$0xff]  }
 0x34e   : > { %2940 = vmatprep.mubr.bf16.mxu0 %v2327_v5  ;;  %6192 = vmatpush3.bf16.msra.mxu1 %v6859_v8  ;;  %v6884_v5 = vld [vmem:[%s8784_s7 + $0x40] sm:$0xff]  }
 0x34f   : > { %6193 = vmatprep.subr.bf16.mxu1 %v6861_v40 }
 0x351   : > { %3167 = vmatmul.mubr.bf16.gmra.mrb[100].mxu1 %v2326_v1 }
 0x352   : > { %3174 = vmatprep.mubr.bf16.mxu1 %v2329_v23  ;;  %6194 = vmatpush3.bf16.msra.mxu1 %v6863_v47 }
 0x353   : > { %6195 = vmatprep.subr.bf16.mxu1 %v6865_v53 }
 0x355   : > { %2941 = vmatmul.mubr.bf16.gmra.mrb[104].mxu0 %v2326_v1 }
 0x356   : > { %2948 = vmatprep.mubr.bf16.mxu0 %v2329_v23  ;;  %6196 = vmatpush3.bf16.msra.mxu1 %v6867_v55 }
 0x357   : > { %6197 = vmatprep.subr.bf16.mxu1 %v6869_v58 }
 0x359   : > { %3175 = vmatmul.mubr.bf16.gmra.mrb[104].mxu1 %v2328_v24 }
 0x35a   : > { %3182 = vmatprep.mubr.bf16.mxu1 %v2363_v27  ;;  %6198 = vmatpush3.bf16.msra.mxu1 %v6871_v59 }
 0x35b   : > { %6199 = vmatprep.subr.bf16.mxu1 %v6873_v60 }
 0x35d   : > { %2949 = vmatmul.mubr.bf16.gmra.mrb[108].mxu0 %v2328_v24 }
 0x35e   : > { %2956 = vmatprep.mubr.bf16.mxu0 %v2363_v27  ;;  %6200 = vmatpush3.bf16.msra.mxu1 %v6875_v44 }
 0x35f   : > { %6201 = vmatprep.subr.bf16.mxu1 %v6878_v63 }
 0x361   : > { %3183 = vmatmul.mubr.bf16.gmra.mrb[108].mxu1 %v2362_v30 }
 0x362   : > { %3190 = vmatprep.mubr.bf16.mxu1 %v2994_v54  ;;  %6202 = vmatpush3.bf16.msra.mxu1 %v6879_v0 }
 0x363   : > { %6203 = vmatprep.subr.bf16.mxu1 %v6882_v2 }
 0x365   : > { %2957 = vmatmul.mubr.bf16.gmra.mrb[112].mxu0 %v2362_v30 }
 0x366   : > { %2964 = vmatprep.mubr.bf16.mxu0 %v2994_v54  ;;  %6204 = vmatpush3.bf16.msra.mxu1 %v6883_v3 }
 0x367   : > { %6281 = vmatprep.subr.bf16.mxu1 %v6885_v7 }
 0x369   : > { %3191 = vmatmul.mubr.bf16.gmra.mrb[112].mxu1 %v2993_v31 }
 0x36a   : > { %3198 = vmatprep.mubr.bf16.mxu1 %v7662_v6  ;;  %v6856_v6 = vld [vmem:[%s8784_s7 + $0x148] sm:$0xff]  }
 0x36b   : > { %6145 = vmatprep.subr.bf16.mxu0 %v6856_v6 }
 0x36c   : > { %6146 = vmatpush3.bf16.msra.mxu0 %v6858_v39 }
 0x36d   : > { %2965 = vmatmul.mubr.bf16.gmra.mrb[116].mxu0 %v2993_v31  ;;  %6147 = vmatprep.subr.bf16.mxu0 %v6860_v41 }
 0x370   : > { %6148 = vmatpush3.bf16.msra.mxu0 %v6862_v42 }
 0x371   : > { %3199 = vmatmul.mubr.bf16.gmra.mrb[116].mxu1 %v2995_v22  ;;  %6149 = vmatprep.subr.bf16.mxu0 %v6864_v16 }
 0x374   : > { %6150 = vmatpush3.bf16.msra.mxu0 %v6866_v49 }
 0x375   : > { %6151 = vmatprep.subr.bf16.mxu0 %v6868_v50 }
 0x378   : > { %6152 = vmatpush3.bf16.msra.mxu0 %v6870_v52 }
 0x379   : > { %6153 = vmatprep.subr.bf16.mxu0 %v6872_v43 }
 0x37c   : > { %6154 = vmatpush3.bf16.msra.mxu0 %v6874_v26 }
 0x37d   : > { %6155 = vmatprep.subr.bf16.mxu0 %v6876_v46 }
 0x380   : > { %6156 = vmatpush3.bf16.msra.mxu0 %v6877_v28 }
 0x381   : > { %6157 = vmatprep.subr.bf16.mxu0 %v6880_v62 }
 0x384   : > { %6158 = vmatpush3.bf16.msra.mxu0 %v6881_v56 }
 0x385   : > { %6235 = vmatprep.subr.bf16.mxu0 %v6884_v5 }
 0x3e8   : > { %v5951_v10 = vpop.f32.mrb[72].mxu0 }
 0x3e9   : > { %v5952_v1 = vpop.f32.mrb[73].mxu0 }
 0x3ea   : > { %v5953_v11 = vadd.f32 %v5952_v1, %v5951_v10  ;;  %v5954_v12 = vpop.f32.mrb[74].mxu0 }
 0x3eb   : > { %v5955_v14 = vpop.f32.mrb[75].mxu0 }
 0x3ec   : > { %v6003_v36 = vpop.f32.mrb[72].mxu1 }
 0x3ed   : > { %v6004_v17 = vpop.f32.mrb[73].mxu1 }
 0x3ee   : > { %v6005_v18 = vadd.f32 %v6004_v17, %v6003_v36  ;;  %v6006_v20 = vpop.f32.mrb[74].mxu1 }
 0x3ef   : > { %v6007_v23 = vpop.f32.mrb[75].mxu1 }
 0x3f0   : > { %v2705_v24 = vadd.f32 %v6005_v18, %v5953_v11  ;;  %v5957_v25 = vpop.f32.mrb[76].mxu0 }
 0x3f1   : > { %v5958_v27 = vpop.f32.mrb[77].mxu0 }
 0x3f2   : > { %v5959_v30 = vadd.f32 %v5958_v27, %v5957_v25  ;;  %v5960_v54 = vpop.f32.mrb[78].mxu0 }
 0x3f3   : > { %v5961_v31 = vpop.f32.mrb[79].mxu0 }
 0x3f4   : > { %v6009_v22 = vpop.f32.mrb[76].mxu1 }
 0x3f5   : > { %v6010_v32 = vpop.f32.mrb[77].mxu1 }
 0x3f6   : > { %v6011_v33 = vadd.f32 %v6010_v32, %v6009_v22  ;;  %v6012_v34 = vpop.f32.mrb[78].mxu1 }
 0x3f7   : > { %v6013_v35 = vpop.f32.mrb[79].mxu1 }
 0x3f8   : > { %v8011_v6 = vadd.f32 %v6011_v33, %v5959_v30  ;;  %v5963_v21 = vpop.f32.mrb[80].mxu0 }
 0x3f9   : > { %v5964_v39 = vpop.f32.mrb[81].mxu0 }
 0x3fa   : > { %v5965_v8 = vadd.f32 %v5964_v39, %v5963_v21  ;;  %v5966_v41 = vpop.f32.mrb[82].mxu0 }
 0x3fb   : > { %v5967_v40 = vpop.f32.mrb[83].mxu0 }
 0x3fc   : > { %v6015_v42 = vpop.f32.mrb[80].mxu1 }
 0x3fd   : > { %v6016_v47 = vpop.f32.mrb[81].mxu1 }
 0x3fe   : > { %v6017_v16 = vadd.f32 %v6016_v47, %v6015_v42  ;;  %v6018_v49 = vpop.f32.mrb[82].mxu1  ;;  %v8024_v42 = vld [vmem:[%s8783_s6] ss:$0 sm:$0xff] }
 0x3ff   : > { %v6019_v50 = vpop.f32.mrb[83].mxu1 }
 0x400   : > { %v8013_v52 = vadd.f32 %v6017_v16, %v5965_v8  ;;  %v5969_v53 = vpop.f32.mrb[84].mxu0 }
 0x401   : > { %v5970_v55 = vpop.f32.mrb[85].mxu0 }
 0x402   : > { %v5971_v43 = vadd.f32 %v5970_v55, %v5969_v53  ;;  %v5972_v26 = vpop.f32.mrb[86].mxu0 }
 0x403   : > { %v5973_v58 = vpop.f32.mrb[87].mxu0 }
 0x404   : > { %v6021_v59 = vpop.f32.mrb[84].mxu1  ;;  %v6954_v58 = vld [vmem:[%s8784_s7 + $0x308] sm:$0xff]  }
 0x405   : > { %v6022_v46 = vpop.f32.mrb[85].mxu1 }
 0x406   : > { %v6023_v28 = vadd.f32 %v6022_v46, %v6021_v59  ;;  %v6024_v60 = vpop.f32.mrb[86].mxu1 }
 0x407   : > { %v6025_v44 = vpop.f32.mrb[87].mxu1 }
 0x408   : > { %v8015_v62 = vadd.f32 %v6023_v28, %v5971_v43  ;;  %v5975_v56 = vpop.f32.mrb[88].mxu0 }
 0x409   : > { %v5976_v63 = vpop.f32.mrb[89].mxu0 }
 0x40a   : > { %v5977_v0 = vadd.f32 %v5976_v63, %v5975_v56  ;;  %v5978_v2 = vpop.f32.mrb[90].mxu0 }
 0x40b   : > { %v5979_v3 = vpop.f32.mrb[91].mxu0 }
 0x40c   : > { %v6027_v5 = vpop.f32.mrb[88].mxu1 }
 0x40d   : > { %v6028_v7 = vpop.f32.mrb[89].mxu1 }
 0x40e   : > { %v6029_v10 = vadd.f32 %v6028_v7, %v6027_v5  ;;  %v6030_v1 = vpop.f32.mrb[90].mxu1 }
 0x40f   : > { %v6031_v11 = vpop.f32.mrb[91].mxu1 }
 0x410   : > { %v8017_v12 = vadd.f32 %v6029_v10, %v5977_v0  ;;  %v5981_v14 = vpop.f32.mrb[92].mxu0 }
 0x411   : > { %v5982_v36 = vpop.f32.mrb[93].mxu0 }
 0x412   : > { %v5983_v17 = vadd.f32 %v5982_v36, %v5981_v14  ;;  %v5984_v18 = vpop.f32.mrb[94].mxu0 }
 0x413   : > { %v5985_v20 = vpop.f32.mrb[95].mxu0 }
 0x414   : > { %v6033_v23 = vpop.f32.mrb[92].mxu1 }
 0x415   : > { %v6034_v25 = vpop.f32.mrb[93].mxu1 }
 0x416   : > { %v6035_v27 = vadd.f32 %v6034_v25, %v6033_v23  ;;  %v6036_v30 = vpop.f32.mrb[94].mxu1 }
 0x417   : > { %v6037_v54 = vpop.f32.mrb[95].mxu1 }
 0x418   : > { %v8019_v31 = vadd.f32 %v6035_v27, %v5983_v17  ;;  %v6055_v22 = vpop.f32.mrb[96].mxu0  ;;  %v3429_v17 = vld [vmem:[#allocation4 + $0x10] sm:$0x80] }
 0x419   : > { %v6056_v32 = vpop.f32.mrb[97].mxu0 }
 0x41a   : > { %v6057_v33 = vadd.f32 %v6056_v32, %v6055_v22  ;;  %v6058_v34 = vpop.f32.mrb[98].mxu0 }
 0x41b   : > { %v6059_v35 = vpop.f32.mrb[99].mxu0 }
 0x41c   : > { %v2973_v21 = vadd.f32 %v6057_v33, %v2705_v24  ;;  %v6107_v39 = vpop.f32.mrb[96].mxu1  ;;  %v6886_v35 = vld [vmem:[%s8784_s7] sm:$0xff]  }
 0x41d   : > { %v6108_v8 = vpop.f32.mrb[97].mxu1 }
 0x41e   : > { %v6109_v41 = vadd.f32 %v6108_v8, %v6107_v39  ;;  %v6110_v40 = vpop.f32.mrb[98].mxu1 }
 0x41f   : > { %v6111_v47 = vpop.f32.mrb[99].mxu1 }
 0x420   : > { %v3207_v16 = vadd.f32 %v6109_v41, %v2973_v21  ;;  %v6061_v49 = vpop.f32.mrb[100].mxu0  ;;  %v8084_v41 = vld [vmem:[#allocation3] sm:$0xff] }
 0x421   : > { %v6062_v50 = vpop.f32.mrb[101].mxu0 }
 0x422   : > { %v3226_v53 = vadd.f32 %v8024_v42, %v3207_v16  ;;  %v6063_v55 = vadd.f32 %v6062_v50, %v6061_v49  ;;  %v6064_v43 = vpop.f32.mrb[102].mxu0 }
 0x423   : > { %v6065_v26 = vpop.f32.mrb[103].mxu0 }
 0x424   : > { %vm3238_vm1 = vcmp.gt.f32.partialorder %v3226_v53, 0.0  ;;  %v3250_v24 = vmul.f32 0.2, %v3226_v53  ;;  %v2975_v59 = vadd.f32 %v6063_v55, %v8011_v6  ;;  %v6113_v46 = vpop.f32.mrb[100].mxu1 }
 0x425   : > { %v6114_v28 = vpop.f32.mrb[101].mxu1 }
 0x426   : > { %v3262_v60 = vsel %vm3238_vm1, %v3226_v53, %v3250_v24  ;;  %v6115_v44 = vadd.f32 %v6114_v28, %v6113_v46  ;;  %v6116_v56 = vpop.f32.mrb[102].mxu1  ;;  %v6890_v46 = vld [vmem:[%s8784_s7 + $0x8] sm:$0xff]   ;;  %vm8178_vm1 = vmpackc.low %vm7041_vm11, %vm8131_vm0 }
 0x427   : > { %v3310_v63 = vsel %vm8029_vm2, %v3262_v60, 0.0  ;;  %v6117_v0 = vpop.f32.mrb[103].mxu1  ;;  %v8051_v14 = vpack.c.bf16 %v7035_v13, %v3262_v60  ;;  %v6892_v56 = vld [vmem:[%s8784_s7 + $0x50] sm:$0xff]  }
 0x428   : > { %v8037_v2 = vpack.c.bf16 %v7035_v13, %v3310_v63  ;;  %v3209_v15 = vadd.f32 %v6115_v44, %v2975_v59  ;;  %v6067_v29 = vpop.f32.mrb[104].mxu0 }
 0x429   : > { %v6068_v3 = vpop.f32.mrb[105].mxu0  ;;  %6984 = vmatprep.mubr.msk.bf16.mxu0 %vm8046_vm12, %v8051_v14 }
 0x42a   : > { %v3329_v5 = vshrl.u32 %v8037_v2, 16  ;;  %v3332_v6 = vshll.u32 %v8037_v2, 16  ;;  %v3447_v7 = vrot.slane %v8037_v2, 1  ;;  %v3228_v10 = vadd.f32 %v8024_v42, %v3209_v15  ;;  %v6070_v1 = vpop.f32.mrb[106].mxu0 }
 0x42b   : > { %v6069_v20 = vadd.f32 %v6068_v3, %v6067_v29  ;;  %v6071_v23 = vpop.f32.mrb[107].mxu0  ;;  %v6887_v3 = vld [vmem:[%s8784_s7 + $0x80] sm:$0xff]  }
 0x42c   : > { %v8068_v25 = vrot.slane %v3329_v5, 7  ;;  %v3403_v27 = vrot.slane %v3332_v6, 1  ;;  %3465 = vst [vmem:[#allocation4 + $0x18] sm:$0x80] %v3447_v7  ;;  %vm3240_vm9 = vcmp.gt.f32.partialorder %v3228_v10, 0.0  ;;  %v6119_v54 = vpop.f32.mrb[104].mxu1 }
 0x42d   : > { %v3252_v30 = vmul.f32 0.2, %v3228_v10  ;;  %v2977_v22 = vadd.f32 %v6069_v20, %v8013_v52  ;;  %v6120_v32 = vpop.f32.mrb[105].mxu1  ;;  %v6888_v52 = vld [vmem:[%s8784_s7 + $0x48] sm:$0xff]   ;;  %v6896_v20 = vld [vmem:[%s8784_s7 + $0x58] sm:$0xff]  }
 0x42e   : > { %v3334_v37 = vor.u32 %v3332_v6, %v8068_v25  ;;  %v3430_v48 = vsel %vm8058_vm13, %v3403_v27, %v3429_v17  ;;  %v6122_v34 = vpop.f32.mrb[106].mxu1  ;;  %v6121_v39 = vadd.f32 %v6120_v32, %v6119_v54  ;;  %v3404_v28 = vor.u32 %v3403_v27, %v3329_v5  ;;  %vm8250_vm13 = vmpackc.low %vm7041_vm11, %vm8193_vm8 }
 0x42f   : > { %v3264_v33 = vsel %vm3240_vm9, %v3228_v10, %v3252_v30  ;;  %3431 = vst [vmem:[#allocation4 + $0x10] sm:$0x80] %v3430_v48  ;;  %v6123_v8 = vpop.f32.mrb[107].mxu1  ;;  %vm8278_vm9 = vcmp.lt.s32.totalorder %v860_v4, 6 }
 0x430   : > { %v3312_v21 = vsel %vm8064_vm14, %v3264_v33, 0.0  ;;  %v8087_v40 = vsel %vm3383_vm7, %v3334_v37, %v8084_v41  ;;  %v6073_v16 = vpop.f32.mrb[108].mxu0  ;;  %v3211_v49 = vadd.f32 %v6121_v39, %v2977_v22  ;;  %v8104_v59 = vpack.c.bf16 %v7035_v13, %v3264_v33  ;;  %v6891_v22 = vld [vmem:[%s8784_s7 + $0x88] sm:$0xff]   ;;  %vm8322_vm7 = vmpackc.low %vm7041_vm11, %vm8278_vm9 }
 0x431   : > { %v8090_v47 = vpack.c.bf16 %v7035_v13, %v3312_v21  ;;  %v6074_v50 = vpop.f32.mrb[109].mxu0  ;;  %3850 = vmatmul.mubr.bf16.vlgmr.msra.gmra.mrb[120].mxu0 %v8087_v40 }
 0x432   : > { %v6075_v26 = vadd.f32 %v6074_v50, %v6073_v16  ;;  %v6076_v24 = vpop.f32.mrb[110].mxu0  ;;  %6987 = vmatprep.mubr.msk.bf16.mxu0 %vm8099_vm5, %v8104_v59  ;;  %6236 = vmatpush3.bf16.msra.mxu0 %v6886_v35  ;;  %v3230_v60 = vadd.f32 %v8024_v42, %v3211_v49  ;;  %v6898_v35 = vld [vmem:[%s8784_s7 + $0x18] sm:$0xff]   ;;  %v6900_v50 = vld [vmem:[%s8784_s7 + $0x60] sm:$0xff]   ;;  %v6958_v16 = vld [vmem:[%s8784_s7 + $0x310] sm:$0xff]  }
 0x433   : > { %v3336_v53 = vshrl.u32 %v8090_v47, 16  ;;  %v3339_v55 = vshll.u32 %v8090_v47, 16  ;;  %v3448_v43 = vrot.slane %v8090_v47, 1  ;;  %v6077_v44 = vpop.f32.mrb[111].mxu0  ;;  %6237 = vmatprep.subr.bf16.mxu0 %v6888_v52 }
 0x434   : > { %v2979_v15 = vadd.f32 %v6075_v26, %v8015_v62  ;;  %v6125_v29 = vpop.f32.mrb[108].mxu1  ;;  %vm3242_vm15 = vcmp.gt.f32.partialorder %v3230_v60, 0.0  ;;  %v3254_v5 = vmul.f32 0.2, %v3230_v60  ;;  %v6889_v62 = vld [vmem:[%s8784_s7 + $0xc8] sm:$0xff]   ;;  %v6903_v26 = vld [vmem:[%s8784_s7 + $0xa0] sm:$0xff]  }
 0x435   : > { %v8118_v63 = vrot.slane %v3336_v53, 7  ;;  %v3405_v0 = vrot.slane %v3339_v55, 1  ;;  %v8123_v2 = vsel %vm1266_vm3, %v3447_v7, %v3448_v43  ;;  %v6126_v10 = vpop.f32.mrb[109].mxu1 }
 0x436   : > { %3922 = vmatprep.mubr.bf16.mxu1 %v8123_v2  ;;  %v6127_v36 = vadd.f32 %v6126_v10, %v6125_v29  ;;  %v6128_v17 = vpop.f32.mrb[110].mxu1  ;;  %6238 = vmatpush3.bf16.msra.mxu0 %v6890_v46  ;;  %v3266_v19 = vsel %vm3242_vm15, %v3230_v60, %v3254_v5  ;;  %v6901_v5 = vld [vmem:[%s8784_s7 + $0x20] sm:$0xff]   ;;  %v3474_v11 = vld [vmem:[#allocation4 + $0x10] sm:$0xff] }
 0x437   : > { %v3341_v7 = vor.u32 %v3339_v55, %v8118_v63  ;;  %v8141_v1 = vsel %vm1196_vm6, %v3404_v28, %v3405_v0  ;;  %v6129_v18 = vpop.f32.mrb[111].mxu1  ;;  %6239 = vmatprep.subr.bf16.mxu0 %v6892_v56  ;;  %v3314_v27 = vsel %vm8131_vm0, %v3266_v19, 0.0  ;;  %v8183_v49 = vpack.c.bf16 %v7035_v13, %v3266_v19 }
 0x438   : > { %3923 = vmatmul.mubr.bf16.vlgmr.msra.gmra.mrb[120].mxu1 %v8141_v1  ;;  %v3213_v30 = vadd.f32 %v6127_v36, %v2979_v15  ;;  %v6079_v54 = vpop.f32.mrb[112].mxu0  ;;  %v8161_v32 = vpack.c.bf16 %v7035_v13, %v3314_v27  ;;  %v3407_v28 = vor.u32 %v3405_v0, %v3336_v53  ;;  %v6897_v53 = vld [vmem:[%s8784_s7 + $0xd8] sm:$0xff]   ;;  %vm8337_vm0 = vcmp.lt.s32.totalorder %v874_v61, 6 }
 0x439   : > { %v8152_v23 = vsel %vm1064_vm4, %v8068_v25, %v3341_v7  ;;  %6282 = vmatpush3.bf16.msra.mxu1 %v6887_v3  ;;  %v6080_v37 = vpop.f32.mrb[113].mxu0  ;;  %v6893_v25 = vld [vmem:[%s8784_s7 + $0xd0] sm:$0xff]   ;;  %v6904_v7 = vld [vmem:[%s8784_s7 + $0x68] sm:$0xff]  }
 0x43a   : > { %3387 = vst [vmem:[#allocation4 + $0x40] sm:$0xff] %v8152_v23  ;;  %3858 = vmatmul.mubr.bf16.gmra.mrb[124].mxu0 %v8152_v23  ;;  %6283 = vmatprep.subr.bf16.mxu1 %v6889_v62  ;;  %v3232_v48 = vadd.f32 %v8024_v42, %v3213_v30  ;;  %v6081_v33 = vadd.f32 %v6080_v37, %v6079_v54  ;;  %v6082_v34 = vpop.f32.mrb[114].mxu0  ;;  %v3344_v21 = vshrl.u32 %v8161_v32, 16  ;;  %v3347_v39 = vshll.u32 %v8161_v32, 16  ;;  %v6902_v30 = vld [vmem:[%s8784_s7 + $0xe0] sm:$0xff]   ;;  %v6961_v37 = vld [vmem:[%s8784_s7 + $0x3d8] sm:$0xff]  }
 0x43b   : > { %6240 = vmatpush3.bf16.msra.mxu0 %v6894_v51  ;;  %3399 = vst [vmem:[#allocation4 + $0x68] sm:$0xff] %v8161_v32  ;;  %v3450_v8 = vrot.slane %v8161_v32, 1  ;;  %v6083_v52 = vpop.f32.mrb[115].mxu0  ;;  %6990 = vmatprep.mubr.msk.bf16.mxu0 %vm8178_vm1, %v8183_v49  ;;  %v6899_v51 = vld [vmem:[%s8784_s7 + $0x98] sm:$0xff]  }
 0x43c   : > { %6241 = vmatprep.subr.bf16.mxu0 %v6896_v20  ;;  %vm3244_vm2 = vcmp.gt.f32.partialorder %v3232_v48, 0.0  ;;  %v3256_v55 = vmul.f32 0.2, %v3232_v48  ;;  %v2981_v24 = vadd.f32 %v6081_v33, %v8017_v12  ;;  %v6131_v46 = vpop.f32.mrb[112].mxu1  ;;  %v8200_v60 = vrot.slane %v3344_v21, 7 }
 0x43d   : > { %6284 = vmatpush3.bf16.msra.mxu1 %v6891_v22  ;;  %v3408_v44 = vrot.slane %v3347_v39, 1  ;;  %v8205_v56 = vsel %vm1266_vm3, %v3448_v43, %v3450_v8  ;;  %v6132_v38 = vpop.f32.mrb[113].mxu1 }
 0x43e   : > { %6285 = vmatprep.subr.bf16.mxu1 %v6893_v25  ;;  %v3268_v12 = vsel %vm3244_vm2, %v3232_v48, %v3256_v55  ;;  %v6133_v15 = vadd.f32 %v6132_v38, %v6131_v46  ;;  %v6134_v29 = vpop.f32.mrb[114].mxu1  ;;  %3930 = vmatprep.mubr.bf16.mxu1 %v8205_v56  ;;  %v3349_v47 = vor.u32 %v3347_v39, %v8200_v60  ;;  %v6905_v48 = vld [vmem:[%s8784_s7 + $0x28] sm:$0xff]   ;;  %v6908_v39 = vld [vmem:[%s8784_s7 + $0x70] sm:$0xff]   ;;  %vm3392_vm2 = vcmask 1040384  }
 0x43f   : > { %6242 = vmatpush3.bf16.msra.mxu0 %v6898_v35  ;;  %v8216_v43 = vsel %vm1196_vm6, %v3407_v28, %v3408_v44  ;;  %v3316_v0 = vsel %vm8193_vm8, %v3268_v12, 0.0  ;;  %v6135_v3 = vpop.f32.mrb[115].mxu1  ;;  %v3410_v54 = vor.u32 %v3408_v44, %v3344_v21  ;;  %v8255_v25 = vpack.c.bf16 %v7035_v13, %v3268_v12  ;;  %v6909_v38 = vld [vmem:[%s8784_s7 + $0x30] sm:$0xff]   ;;  %v6911_v29 = vld [vmem:[%s8784_s7 + $0x78] sm:$0xff]   ;;  %vm8383_vm8 = vmand %vm3392_vm2, %vm1064_vm4 }
 0x440   : > { %6243 = vmatprep.subr.bf16.mxu0 %v6900_v50  ;;  %v8224_v6 = vpack.c.bf16 %v7035_v13, %v3316_v0  ;;  %v3215_v10 = vadd.f32 %v6133_v15, %v2981_v24  ;;  %v6085_v62 = vpop.f32.mrb[116].mxu0  ;;  %3931 = vmatmul.mubr.bf16.gmra.mrb[124].mxu1 %v8216_v43  ;;  %v8232_v36 = vsel %vm1064_vm4, %v8118_v63, %v3349_v47  ;;  %v6910_v0 = vld [vmem:[%s8784_s7 + $0xf0] sm:$0xff]   ;;  %v6917_v50 = vld [vmem:[%s8784_s7 + $0x2c0] sm:$0xff]  }
 0x441   : > { %v6086_v17 = vpop.f32.mrb[117].mxu0  ;;  %6286 = vmatpush3.bf16.msra.mxu1 %v6895_v57  ;;  %3388 = vst [vmem:[#allocation4 + $0x60] sm:$0xff] %v8232_v36 }
 0x442   : > { %v3352_v19 = vshrl.u32 %v8224_v6, 16  ;;  %v3355_v18 = vshll.u32 %v8224_v6, 16  ;;  %3400 = vst [vmem:[#allocation4 + $0x88] sm:$0xff] %v8224_v6  ;;  %v3452_v20 = vrot.slane %v8224_v6, 1  ;;  %v3234_v27 = vadd.f32 %v8024_v42, %v3215_v10  ;;  %v6088_v63 = vpop.f32.mrb[118].mxu0  ;;  %3866 = vmatmul.mubr.bf16.gmra.mrb[128].mxu0 %v8232_v36  ;;  %6287 = vmatprep.subr.bf16.mxu1 %v6897_v53 }
 0x443   : > { %v6087_v22 = vadd.f32 %v6086_v17, %v6085_v62  ;;  %v6089_v32 = vpop.f32.mrb[119].mxu0  ;;  %6993 = vmatprep.mubr.msk.bf16.mxu0 %vm8250_vm13, %v8255_v25  ;;  %6244 = vmatpush3.bf16.msra.mxu0 %v6901_v5  ;;  %v6970_v62 = vld [vmem:[%s8784_s7 + $0x3e8] sm:$0xff]  }
 0x444   : > { %v8265_v33 = vrot.slane %v3352_v19, 7  ;;  %v3411_v34 = vrot.slane %v3355_v18, 1  ;;  %v8270_v35 = vsel %vm1266_vm3, %v3450_v8, %v3452_v20  ;;  %vm3246_vm14 = vcmp.gt.f32.partialorder %v3234_v27, 0.0  ;;  %v6137_v21 = vpop.f32.mrb[116].mxu1  ;;  %6245 = vmatprep.subr.bf16.mxu0 %v6904_v7  ;;  %v6913_v7 = vld [vmem:[%s8784_s7 + $0x38] sm:$0xff]  }
 0x445   : > { %3468 = vst [vmem:[#allocation4 + $0x78] sm:$0xff] %v8270_v35  ;;  %v3258_v52 = vmul.f32 0.2, %v3234_v27  ;;  %v2983_v55 = vadd.f32 %v6087_v22, %v8019_v31  ;;  %v6138_v8 = vpop.f32.mrb[117].mxu1  ;;  %3938 = vmatprep.mubr.bf16.mxu1 %v8270_v35  ;;  %6288 = vmatpush3.bf16.msra.mxu1 %v6899_v51  ;;  %v6906_v31 = vld [vmem:[%s8784_s7 + $0xe8] sm:$0xff]   ;;  %v6976_v51 = vld [vmem:[%s8784_s7 + $0x3b0] sm:$0xff]  }
 0x446   : > { %v3357_v24 = vor.u32 %v3355_v18, %v8265_v33  ;;  %v8289_v46 = vsel %vm1196_vm6, %v3410_v54, %v3411_v34  ;;  %v6139_v9 = vadd.f32 %v6138_v8, %v6137_v21  ;;  %v6140_v4 = vpop.f32.mrb[118].mxu1  ;;  %6289 = vmatprep.subr.bf16.mxu1 %v6902_v30  ;;  %v6916_v18 = vld [vmem:[%s8784_s7 + $0x240] sm:$0xff]  }
 0x447   : > { %3434 = vst [vmem:[#allocation4 + $0x70] sm:$0xff] %v8289_v46  ;;  %v3270_v28 = vsel %vm3246_vm14, %v3234_v27, %v3258_v52  ;;  %v6141_v44 = vpop.f32.mrb[119].mxu1  ;;  %6246 = vmatpush3.bf16.msra.mxu0 %v6905_v48  ;;  %v3413_v27 = vor.u32 %v3411_v34, %v3352_v19  ;;  %v6914_v19 = vld [vmem:[%s8784_s7 + $0xf8] sm:$0xff]   ;;  %vm3437_vm14 = vmand %vm3382_vm10, %vm1196_vm6 }
 0x448   : > { %v8301_v57 = vsel %vm1064_vm4, %v8200_v60, %v3357_v24  ;;  %v3318_v12 = vsel %vm8278_vm9, %v3270_v28, 0.0  ;;  %v3217_v15 = vadd.f32 %v6139_v9, %v2983_v55  ;;  %3939 = vmatmul.mubr.bf16.gmra.mrb[128].mxu1 %v8289_v46  ;;  %6247 = vmatprep.subr.bf16.mxu0 %v6908_v39  ;;  %v6907_v60 = vld [vmem:[%s8784_s7 + $0xa8] sm:$0xff]   ;;  %v6915_v34 = vld [vmem:[%s8784_s7 + $0xb8] sm:$0xff]   ;;  %v3394_v55 = vld [vmem:[#allocation4 + $0xe0] sm:$0x1] }
 0x449   : > { %3389 = vst [vmem:[#allocation4 + $0x80] sm:$0xff] %v8301_v57  ;;  %v3326_v53 = vpack.c.bf16 %v7035_v13, %v3318_v12  ;;  %6290 = vmatpush3.bf16.msra.mxu1 %v6903_v26 }
 0x44a   : > { %v3236_v47 = vadd.f32 %v8024_v42, %v3217_v15  ;;  %3874 = vmatmul.mubr.bf16.gmra.mrb[132].mxu0 %v8301_v57  ;;  %6291 = vmatprep.subr.bf16.mxu1 %v6906_v31  ;;  %v8327_v42 = vpack.c.bf16 %v7035_v13, %v3270_v28 }
 0x44b   : > { %v3360_v3 = vshrl.u32 %v3326_v53, 16  ;;  %v3363_v5 = vshll.u32 %v3326_v53, 16  ;;  %3401 = vst [vmem:[#allocation4 + $0xa8] sm:$0xff] %v3326_v53  ;;  %v3454_v10 = vrot.slane %v3326_v53, 1  ;;  %6248 = vmatpush3.bf16.msra.mxu0 %v6909_v38  ;;  %v6918_v38 = vld [vmem:[%s8784_s7 + $0x200] sm:$0xff]   ;;  %v6920_v53 = vld [vmem:[%s8784_s7 + $0x248] sm:$0xff]  }
 0x44c   : > { %6996 = vmatprep.mubr.msk.bf16.mxu0 %vm8322_vm7, %v8327_v42  ;;  %vm3248_vm15 = vcmp.gt.f32.partialorder %v3236_v47, 0.0  ;;  %v3260_v17 = vmul.f32 0.2, %v3236_v47  ;;  %6249 = vmatprep.subr.bf16.mxu0 %v6911_v29  ;;  %v3475_v29 = vld [vmem:[#allocation4 + $0x18] sm:$0xff] }
 0x44d   : > { %v3362_v63 = vrot.slane %v3360_v3, 7  ;;  %v3414_v30 = vrot.slane %v3363_v5, 1  ;;  %v8349_v54 = vsel %vm1266_vm3, %v3452_v20, %v3454_v10  ;;  %6292 = vmatpush3.bf16.msra.mxu1 %v6907_v60  ;;  %v6922_v60 = vld [vmem:[%s8784_s7 + $0x208] sm:$0xff]  }
 0x44e   : > { %3469 = vst [vmem:[#allocation4 + $0x98] sm:$0xff] %v8349_v54  ;;  %v8355_v61 = vsel %vm3248_vm15, %v3236_v47, %v3260_v17  ;;  %3946 = vmatprep.mubr.bf16.mxu1 %v8349_v54  ;;  %6293 = vmatprep.subr.bf16.mxu1 %v6910_v0  ;;  %v6924_v47 = vld [vmem:[%s8784_s7 + $0x250] sm:$0xff]   ;;  %v6919_v0 = vld [vmem:[%s8784_s7 + $0x280] sm:$0xff]  }
 0x44f   : > { %v3365_v6 = vor.u32 %v3363_v5, %v3362_v63  ;;  %v8362_v20 = vsel %vm1196_vm6, %v3413_v27, %v3414_v30  ;;  %v3320_v22 = vsel %vm8337_vm0, %v8355_v61, 0.0  ;;  %6250 = vmatpush3.bf16.msra.mxu0 %v6913_v7  ;;  %v3416_v8 = vor.u32 %v3414_v30, %v3360_v3  ;;  %v6921_v3 = vld [vmem:[%s8784_s7 + $0x2c8] sm:$0xff]   ;;  %v6928_v5 = vld [vmem:[%s8784_s7 + $0x258] sm:$0xff]   ;;  %v6925_v7 = vld [vmem:[%s8784_s7 + $0x2d0] sm:$0xff]  }
 0x450   : > { %3435 = vst [vmem:[#allocation4 + $0x90] sm:$0xff] %v8362_v20  ;;  %v3327_v32 = vpack.c.bf16 %v7035_v13, %v3320_v22  ;;  %3947 = vmatmul.mubr.bf16.gmra.mrb[132].mxu1 %v8362_v20  ;;  %6327 = vmatprep.subr.bf16.mxu0 %v6916_v18  ;;  %v6932_v17 = vld [vmem:[%s8784_s7 + $0x260] sm:$0xff]   ;;  %v6929_v18 = vld [vmem:[%s8784_s7 + $0x2d8] sm:$0xff]   ;;  %v6941_v22 = vld [vmem:[%s8784_s7 + $0x230] sm:$0xff]  }
 0x451   : > { %v8372_v48 = vsel %vm1064_vm4, %v8265_v33, %v3365_v6  ;;  %6294 = vmatpush3.bf16.msra.mxu1 %v6912_v45  ;;  %v6933_v27 = vld [vmem:[%s8784_s7 + $0x220] sm:$0xff]   ;;  %v6931_v30 = vld [vmem:[%s8784_s7 + $0x298] sm:$0xff]   ;;  %v6938_v6 = vld [vmem:[%s8784_s7 + $0x2e8] sm:$0xff]  }
 0x452   : > { %3390 = vst [vmem:[#allocation4 + $0xa0] sm:$0xff] %v8372_v48  ;;  %v3368_v21 = vshrl.u32 %v3327_v32, 16  ;;  %v3371_v39 = vshll.u32 %v3327_v32, 16  ;;  %v3456_v52 = vrot.slane %v3327_v32, 1  ;;  %3882 = vmatmul.mubr.bf16.gmra.mrb[136].mxu0 %v8372_v48  ;;  %6295 = vmatprep.subr.bf16.mxu1 %v6914_v19  ;;  %v6934_v45 = vld [vmem:[%s8784_s7 + $0x2e0] sm:$0xff]   ;;  %v6940_v19 = vld [vmem:[%s8784_s7 + $0x270] sm:$0xff]  }
 0x453   : > { %4187 = vmatprep.mubr.bf16.mxu0 %v8084_v41  ;;  %v6943_v32 = vld [vmem:[%s8784_s7 + $0x278] sm:$0xff]  }
 0x454   : > { %v3370_v26 = vrot.slane %v3368_v21, 7  ;;  %v3417_v24 = vrot.slane %v3371_v39, 1  ;;  %v8389_v9 = vsel %vm1266_vm3, %v3454_v10, %v3456_v52  ;;  %3471 = vst [vmem:[#allocation4 + $0xd8] sm:$0x7f] %v3456_v52  ;;  %v6923_v10 = vld [vmem:[%s8784_s7 + $0x288] sm:$0xff]   ;;  %v6948_v52 = vld [vmem:[%s8784_s7 + $0x340] sm:$0xff]   ;;  %vm8630_vm3 = vmpackc.low %vm7041_vm11, %vm8337_vm0 }
 0x455   : > { %3954 = vmatprep.mubr.bf16.mxu1 %v8389_v9  ;;  %6296 = vmatpush3.bf16.msra.mxu1 %v6915_v34  ;;  %v6939_v34 = vld [vmem:[%s8784_s7 + $0x2a8] sm:$0xff]   ;;  %v6946_v33 = vld [vmem:[%s8784_s7 + $0x2f8] sm:$0xff]  }
 0x456   : > { %v3373_v4 = vor.u32 %v3371_v39, %v3370_v26  ;;  %v3395_v31 = vsel %vm8383_vm8, %v3370_v26, %v3394_v55  ;;  %v8397_v28 = vsel %vm1196_vm6, %v3416_v8, %v3417_v24  ;;  %v3419_v44 = vor.u32 %v3417_v24, %v3368_v21  ;;  %6373 = vmatprep.subr.bf16.mxu1 %v6917_v50  ;;  %v6942_v21 = vld [vmem:[%s8784_s7 + $0x2f0] sm:$0xff]   ;;  %v6945_v39 = vld [vmem:[%s8784_s7 + $0x238] sm:$0xff]   ;;  %v6949_v8 = vld [vmem:[%s8784_s7 + $0x3c0] sm:$0xff]  }
 0x457   : > { %3396 = vst [vmem:[#allocation4 + $0xe0] sm:$0x1] %v3395_v31  ;;  %v6944_v50 = vld [vmem:[%s8784_s7 + $0x2b0] sm:$0xff]   ;;  %v6947_v55 = vld [vmem:[%s8784_s7 + $0x2b8] sm:$0xff]   ;;  %v6950_v26 = vld [vmem:[%s8784_s7 + $0x300] sm:$0xff]  }
 0x458   : > { %v8403_v12 = vsel %vm1064_vm4, %v3362_v63, %v3373_v4  ;;  %v8406_v15 = vsel %vm3437_vm14, %v3419_v44, %v8084_v41  ;;  %3955 = vmatmul.mubr.bf16.gmra.mrb[136].mxu1 %v8397_v28  ;;  %v6936_v63 = vld [vmem:[%s8784_s7 + $0x268] sm:$0xff]   ;;  %v4301_v4 = vld [vmem:[#allocation4 + $0x40] sm:$0xff] }
 0x459   : > { %4260 = vmatprep.mubr.bf16.mxu1 %v3475_v29  ;;  %v6952_v24 = vld [vmem:[%s8784_s7 + $0x348] sm:$0xff]  }
 0x45a   : > { %4188 = vmatmul.mubr.bf16.vlgmr.msra.gmra.mrb[140].mxu0 %v8084_v41  ;;  %v6953_v31 = vld [vmem:[%s8784_s7 + $0x3c8] sm:$0xff]  }
 0x45b   : > { %6999 = vmatprep.mubr.msk.bf16.mxu0 %vm8046_vm12, %v8051_v14  ;;  %6328 = vmatpush3.bf16.msra.mxu0 %v6918_v38  ;;  %v6926_v14 = vld [vmem:[%s8784_s7 + $0x210] sm:$0xff]   ;;  %v6955_v44 = vld [vmem:[%s8784_s7 + $0x388] sm:$0xff]  }
 0x45c   : > { %6329 = vmatprep.subr.bf16.mxu0 %v6920_v53  ;;  %v6957_v38 = vld [vmem:[%s8784_s7 + $0x3d0] sm:$0xff]   ;;  %v6968_v29 = vld [vmem:[%s8784_s7 + $0x368] sm:$0xff]   ;;  %v6963_v53 = vld [vmem:[%s8784_s7 + $0x398] sm:$0xff]  }
 0x45f   : > { %6330 = vmatpush3.bf16.msra.mxu0 %v6922_v60  ;;  %v6966_v60 = vld [vmem:[%s8784_s7 + $0x3e0] sm:$0xff]  }
 0x460   : > { %4261 = vmatmul.mubr.bf16.vlgmr.msra.gmra.mrb[140].mxu1 %v3474_v11  ;;  %6331 = vmatprep.subr.bf16.mxu0 %v6924_v47  ;;  %v6975_v47 = vld [vmem:[%s8784_s7 + $0x378] sm:$0xff]   ;;  %v7022_v11 = vpack.c.bf16 %v7035_v13, %v8355_v61 }
 0x461   : > { %6374 = vmatpush3.bf16.msra.mxu1 %v6919_v0  ;;  %4268 = vmatprep.mubr.bf16.mxu1 %v8123_v2  ;;  %v6930_v2 = vld [vmem:[%s8784_s7 + $0x218] sm:$0xff]   ;;  %v6971_v0 = vld [vmem:[%s8784_s7 + $0x3a8] sm:$0xff]  }
 0x462   : > { %4196 = vmatmul.mubr.bf16.gmra.mrb[144].mxu0 %v8087_v40  ;;  %6375 = vmatprep.subr.bf16.mxu1 %v6921_v3  ;;  %v6927_v40 = vld [vmem:[%s8784_s7 + $0x290] sm:$0xff]   ;;  %v4320_v13 = vld [vmem:[#allocation4 + $0xd8] sm:$0xff] }
 0x463   : > { %7002 = vmatprep.mubr.msk.bf16.mxu0 %vm8099_vm5, %v8104_v59  ;;  %6332 = vmatpush3.bf16.msra.mxu0 %v6926_v14  ;;  %v6974_v3 = vld [vmem:[%s8784_s7 + $0x3f0] sm:$0xff]   ;;  %v6978_v14 = vld [vmem:[%s8784_s7 + $0x3f8] sm:$0xff]  }
 0x464   : > { %6333 = vmatprep.subr.bf16.mxu0 %v6928_v5  ;;  %v6979_v61 = vld [vmem:[%s8784_s7 + $0x3b8] sm:$0xff]   ;;  %v4735_v5 = vld [vmem:[#allocation4 + $0x68] sm:$0xff] }
 0x465   : > { %6376 = vmatpush3.bf16.msra.mxu1 %v6923_v10  ;;  %v4737_v10 = vld [vmem:[#allocation4 + $0x78] sm:$0xff] }
 0x466   : > { %6377 = vmatprep.subr.bf16.mxu1 %v6925_v7  ;;  %v4734_v7 = vld [vmem:[#allocation4 + $0x60] sm:$0xff] }
 0x467   : > { %6334 = vmatpush3.bf16.msra.mxu0 %v6930_v2  ;;  %v4739_v2 = vld [vmem:[#allocation4 + $0x88] sm:$0xff] }
 0x468   : > { %4269 = vmatmul.mubr.bf16.gmra.mrb[144].mxu1 %v8141_v1  ;;  %6335 = vmatprep.subr.bf16.mxu0 %v6932_v17  ;;  %v6937_v1 = vld [vmem:[%s8784_s7 + $0x228] sm:$0xff]   ;;  %v4736_v17 = vld [vmem:[#allocation4 + $0x70] sm:$0xff] }
 0x469   : > { %4276 = vmatprep.mubr.bf16.mxu1 %v8205_v56  ;;  %6378 = vmatpush3.bf16.msra.mxu1 %v6927_v40  ;;  %v4741_v40 = vld [vmem:[#allocation4 + $0x98] sm:$0xff] }
 0x46a   : > { %4204 = vmatmul.mubr.bf16.gmra.mrb[148].mxu0 %v8152_v23  ;;  %6379 = vmatprep.subr.bf16.mxu1 %v6929_v18  ;;  %v6935_v23 = vld [vmem:[%s8784_s7 + $0x2a0] sm:$0xff]  }
 0x46b   : > { %7005 = vmatprep.mubr.msk.bf16.mxu0 %vm8178_vm1, %v8183_v49  ;;  %6336 = vmatpush3.bf16.msra.mxu0 %v6933_v27  ;;  %v4738_v18 = vld [vmem:[#allocation4 + $0x80] sm:$0xff]  ;;  %v4743_v27 = vld [vmem:[#allocation4 + $0xa8] sm:$0xff] }
 0x46c   : > { %6337 = vmatprep.subr.bf16.mxu0 %v6936_v63  ;;  %v4740_v63 = vld [vmem:[#allocation4 + $0x90] sm:$0xff] }
 0x46d   : > { %6380 = vmatpush3.bf16.msra.mxu1 %v6931_v30  ;;  %v4742_v30 = vld [vmem:[#allocation4 + $0xa0] sm:$0xff] }
 0x46e   : > { %6381 = vmatprep.subr.bf16.mxu1 %v6934_v45  ;;  %v4750_v45 = vld [vmem:[#allocation4 + $0xe0] sm:$0xff] }
 0x46f   : > { %6338 = vmatpush3.bf16.msra.mxu0 %v6937_v1 }
 0x470   : > { %4277 = vmatmul.mubr.bf16.gmra.mrb[148].mxu1 %v8216_v43  ;;  %6339 = vmatprep.subr.bf16.mxu0 %v6940_v19 }
 0x471   : > { %4284 = vmatprep.mubr.bf16.mxu1 %v8270_v35  ;;  %6382 = vmatpush3.bf16.msra.mxu1 %v6935_v23 }
 0x472   : > { %4212 = vmatmul.mubr.bf16.gmra.mrb[152].mxu0 %v8232_v36  ;;  %6383 = vmatprep.subr.bf16.mxu1 %v6938_v6 }
 0x473   : > { %7008 = vmatprep.mubr.msk.bf16.mxu0 %vm8250_vm13, %v8255_v25  ;;  %6340 = vmatpush3.bf16.msra.mxu0 %v6941_v22 }
 0x474   : > { %6341 = vmatprep.subr.bf16.mxu0 %v6943_v32 }
 0x475   : > { %6384 = vmatpush3.bf16.msra.mxu1 %v6939_v34 }
 0x476   : > { %6385 = vmatprep.subr.bf16.mxu1 %v6942_v21 }
 0x477   : > { %6342 = vmatpush3.bf16.msra.mxu0 %v6945_v39 }
 0x478   : > { %4285 = vmatmul.mubr.bf16.gmra.mrb[152].mxu1 %v8289_v46  ;;  %6419 = vmatprep.subr.bf16.mxu0 %v6948_v52 }
 0x479   : > { %4292 = vmatprep.mubr.bf16.mxu1 %v8349_v54  ;;  %6386 = vmatpush3.bf16.msra.mxu1 %v6944_v50 }
 0x47a   : > { %4220 = vmatmul.mubr.bf16.gmra.mrb[156].mxu0 %v8301_v57  ;;  %6387 = vmatprep.subr.bf16.mxu1 %v6946_v33 }
 0x47b   : > { %7011 = vmatprep.mubr.msk.bf16.mxu0 %vm8099_vm5, %v8104_v59  ;;  %v6956_v59 = vld [vmem:[%s8784_s7 + $0x350] sm:$0xff]  }
 0x47d   : > { %6388 = vmatpush3.bf16.msra.mxu1 %v6947_v55 }
 0x47e   : > { %6465 = vmatprep.subr.bf16.mxu1 %v6949_v8 }
 0x480   : > { %4293 = vmatmul.mubr.bf16.gmra.mrb[156].mxu1 %v8362_v20 }
 0x481   : > { %4683 = vmatprep.mubr.bf16.mxu1 %v8205_v56  ;;  %v6951_v56 = vld [vmem:[%s8784_s7 + $0x380] sm:$0xff]  }
 0x482   : > { %4611 = vmatmul.mubr.bf16.vlgmr.msra.gmra.mrb[160].mxu0 %v4301_v4 }
 0x483   : > { %7014 = vmatprep.mubr.msk.bf16.mxu0 %vm8178_vm1, %v8183_v49  ;;  %6420 = vmatpush3.bf16.msra.mxu0 %v6950_v26  ;;  %v6960_v49 = vld [vmem:[%s8784_s7 + $0x358] sm:$0xff]  }
 0x484   : > { %6421 = vmatprep.subr.bf16.mxu0 %v6952_v24 }
 0x487   : > { %6422 = vmatpush3.bf16.msra.mxu0 %v6954_v58 }
 0x488   : > { %4684 = vmatmul.mubr.bf16.vlgmr.msra.gmra.mrb[160].mxu1 %v8216_v43  ;;  %6423 = vmatprep.subr.bf16.mxu0 %v6956_v59  ;;  %v6962_v43 = vld [vmem:[%s8784_s7 + $0x318] sm:$0xff]  }
 0x489   : > { %6466 = vmatpush3.bf16.msra.mxu1 %v6951_v56  ;;  %4691 = vmatprep.mubr.bf16.mxu1 %v8270_v35  ;;  %v6964_v35 = vld [vmem:[%s8784_s7 + $0x360] sm:$0xff]  }
 0x48a   : > { %4619 = vmatmul.mubr.bf16.gmra.mrb[164].mxu0 %v8232_v36  ;;  %6467 = vmatprep.subr.bf16.mxu1 %v6953_v31  ;;  %v6959_v36 = vld [vmem:[%s8784_s7 + $0x390] sm:$0xff]  }
 0x48b   : > { %7017 = vmatprep.mubr.msk.bf16.mxu0 %vm8250_vm13, %v8255_v25  ;;  %6424 = vmatpush3.bf16.msra.mxu0 %v6958_v16  ;;  %v6965_v25 = vld [vmem:[%s8784_s7 + $0x320] sm:$0xff]  }
 0x48c   : > { %6425 = vmatprep.subr.bf16.mxu0 %v6960_v49 }
 0x48d   : > { %6468 = vmatpush3.bf16.msra.mxu1 %v6955_v44 }
 0x48e   : > { %6469 = vmatprep.subr.bf16.mxu1 %v6957_v38 }
 0x48f   : > { %6426 = vmatpush3.bf16.msra.mxu0 %v6962_v43 }
 0x490   : > { %4692 = vmatmul.mubr.bf16.gmra.mrb[164].mxu1 %v8289_v46  ;;  %6427 = vmatprep.subr.bf16.mxu0 %v6964_v35  ;;  %v6969_v46 = vld [vmem:[%s8784_s7 + $0x328] sm:$0xff]  }
 0x491   : > { %4699 = vmatprep.mubr.bf16.mxu1 %v8349_v54  ;;  %6470 = vmatpush3.bf16.msra.mxu1 %v6959_v36  ;;  %v6972_v54 = vld [vmem:[%s8784_s7 + $0x370] sm:$0xff]  }
 0x492   : > { %4627 = vmatmul.mubr.bf16.gmra.mrb[168].mxu0 %v8301_v57  ;;  %6471 = vmatprep.subr.bf16.mxu1 %v6961_v37  ;;  %v6967_v57 = vld [vmem:[%s8784_s7 + $0x3a0] sm:$0xff]  }
 0x493   : > { %7020 = vmatprep.mubr.msk.bf16.mxu0 %vm8322_vm7, %v8327_v42  ;;  %6428 = vmatpush3.bf16.msra.mxu0 %v6965_v25  ;;  %v6973_v42 = vld [vmem:[%s8784_s7 + $0x330] sm:$0xff]  }
 0x494   : > { %6429 = vmatprep.subr.bf16.mxu0 %v6968_v29 }
 0x495   : > { %6472 = vmatpush3.bf16.msra.mxu1 %v6963_v53 }
 0x496   : > { %6473 = vmatprep.subr.bf16.mxu1 %v6966_v60 }
 0x497   : > { %6430 = vmatpush3.bf16.msra.mxu0 %v6969_v46 }
 0x498   : > { %4700 = vmatmul.mubr.bf16.gmra.mrb[168].mxu1 %v8362_v20  ;;  %6431 = vmatprep.subr.bf16.mxu0 %v6972_v54 }
 0x499   : > { %4707 = vmatprep.mubr.bf16.mxu1 %v8389_v9  ;;  %6474 = vmatpush3.bf16.msra.mxu1 %v6967_v57 }
 0x49a   : > { %4635 = vmatmul.mubr.bf16.gmra.mrb[172].mxu0 %v8372_v48  ;;  %6475 = vmatprep.subr.bf16.mxu1 %v6970_v62  ;;  %v6977_v48 = vld [vmem:[%s8784_s7 + $0x338] sm:$0xff]  }
 0x49b   : > { %7023 = vmatprep.mubr.msk.bf16.mxu0 %vm8630_vm3, %v7022_v11  ;;  %6432 = vmatpush3.bf16.msra.mxu0 %v6973_v42 }
 0x49c   : > { %6433 = vmatprep.subr.bf16.mxu0 %v6975_v47 }
 0x49d   : > { %6476 = vmatpush3.bf16.msra.mxu1 %v6971_v0 }
 0x49e   : > { %6477 = vmatprep.subr.bf16.mxu1 %v6974_v3 }
 0x49f   : > { %6434 = vmatpush3.bf16.msra.mxu0 %v6977_v48 }
 0x4a0   : > { %4708 = vmatmul.mubr.bf16.gmra.mrb[172].mxu1 %v8397_v28 }
 0x4a1   : > { %4715 = vmatprep.mubr.bf16.mxu1 %v4320_v13  ;;  %6478 = vmatpush3.bf16.msra.mxu1 %v6976_v51 }
 0x4a2   : > { %4643 = vmatmul.mubr.bf16.gmra.mrb[176].mxu0 %v8403_v12  ;;  %6479 = vmatprep.subr.bf16.mxu1 %v6978_v14 }
 0x4a3   : > { %5043 = vmatprep.mubr.bf16.mxu0 %v4735_v5 }
 0x4a5   : > { %6480 = vmatpush3.bf16.msra.mxu1 %v6979_v61 }
 0x4a8   : > { %4716 = vmatmul.mubr.bf16.gmra.mrb[176].mxu1 %v8406_v15 }
 0x4a9   : > { %5116 = vmatprep.mubr.bf16.mxu1 %v4737_v10 }
 0x4aa   : > { %5044 = vmatmul.mubr.bf16.vlgmr.msra.gmra.mrb[180].mxu0 %v4734_v7 }
 0x4ab   : > { %5051 = vmatprep.mubr.bf16.mxu0 %v4739_v2 }
 0x4b0   : > { %5117 = vmatmul.mubr.bf16.vlgmr.msra.gmra.mrb[180].mxu1 %v4736_v17 }
 0x4b1   : > { %5124 = vmatprep.mubr.bf16.mxu1 %v4741_v40 }
 0x4b2   : > { %5052 = vmatmul.mubr.bf16.gmra.mrb[184].mxu0 %v4738_v18 }
 0x4b3   : > { %5059 = vmatprep.mubr.bf16.mxu0 %v4743_v27 }
 0x4b8   : > { %5125 = vmatmul.mubr.bf16.gmra.mrb[184].mxu1 %v4740_v63 }
 0x4b9   : > { %5132 = vmatprep.mubr.bf16.mxu1 %v8389_v9 }
 0x4ba   : > { %5060 = vmatmul.mubr.bf16.gmra.mrb[188].mxu0 %v4742_v30 }
 0x4bb   : > { %7026 = vmatprep.mubr.msk.bf16.mxu0 %vm8630_vm3, %v7022_v11 }
 0x4c0   : > { %5133 = vmatmul.mubr.bf16.gmra.mrb[188].mxu1 %v8397_v28 }
 0x4c1   : > { %5140 = vmatprep.mubr.bf16.mxu1 %v4320_v13 }
 0x4c2   : > { %5068 = vmatmul.mubr.bf16.gmra.mrb[192].mxu0 %v8403_v12 }
 0x4c3   : > { %5075 = vmatprep.mubr.bf16.mxu0 %v8084_v41 }
 0x4c8   : > { %5141 = vmatmul.mubr.bf16.gmra.mrb[192].mxu1 %v8406_v15 }
 0x4c9   : > { %5148 = vmatprep.mubr.bf16.mxu1 %v8084_v41 }
 0x4ca   : > { %5076 = vmatmul.mubr.bf16.gmra.mrb[196].mxu0 %v4750_v45 }
 0x4d0   : > { %5149 = vmatmul.mubr.bf16.gmra.mrb[196].mxu1 %v8084_v41 }
 0x504   : > { %v6159_v9 = vpop.f32.mrb[120].mxu0 }
 0x505   : > { %v6160_v1 = vpop.f32.mrb[121].mxu0 }
 0x506   : > { %v6161_v19 = vadd.f32 %v6160_v1, %v6159_v9  ;;  %v6162_v23 = vpop.f32.mrb[122].mxu0 }
 0x507   : > { %v6163_v6 = vpop.f32.mrb[123].mxu0 }
 0x508   : > { %v6164_v22 = vadd.f32 %v6163_v6, %v6162_v23 }
 0x50b   : > { %v6205_v28 = vpop.f32.mrb[120].mxu1 }
 0x50c   : > { %v6206_v32 = vpop.f32.mrb[121].mxu1 }
 0x50d   : > { %v6207_v34 = vadd.f32 %v6206_v32, %v6205_v28  ;;  %v6165_v12 = vpop.f32.mrb[124].mxu0  ;;  %v6208_v21 = vpop.f32.mrb[122].mxu1 }
 0x50e   : > { %v6166_v39 = vpop.f32.mrb[125].mxu0  ;;  %v6209_v52 = vpop.f32.mrb[123].mxu1 }
 0x50f   : > { %v3925_v15 = vadd.f32 %v6207_v34, %v6161_v19  ;;  %v6167_v50 = vadd.f32 %v6166_v39, %v6165_v12  ;;  %v6210_v33 = vadd.f32 %v6209_v52, %v6208_v21  ;;  %v6168_v55 = vpop.f32.mrb[126].mxu0 }
 0x510   : > { %v6169_v8 = vpop.f32.mrb[127].mxu0 }
 0x511   : > { %v3928_v26 = vadd.f32 %v6210_v33, %v6164_v22  ;;  %v6170_v41 = vadd.f32 %v6169_v8, %v6168_v55 }
 0x513   : > { %v6211_v24 = vpop.f32.mrb[124].mxu1 }
 0x514   : > { %v6212_v4 = vpop.f32.mrb[125].mxu1 }
 0x515   : > { %v6213_v58 = vadd.f32 %v6212_v4, %v6211_v24  ;;  %v6171_v59 = vpop.f32.mrb[128].mxu0  ;;  %v6214_v56 = vpop.f32.mrb[126].mxu1 }
 0x516   : > { %v6172_v31 = vpop.f32.mrb[129].mxu0  ;;  %v6215_v16 = vpop.f32.mrb[127].mxu1 }
 0x517   : > { %v8662_v49 = vadd.f32 %v6213_v58, %v6167_v50  ;;  %v6173_v44 = vadd.f32 %v6172_v31, %v6171_v59  ;;  %v6216_v38 = vadd.f32 %v6215_v16, %v6214_v56  ;;  %v6174_v43 = vpop.f32.mrb[130].mxu0 }
 0x518   : > { %v6175_v35 = vpop.f32.mrb[131].mxu0 }
 0x519   : > { %v3936_v36 = vadd.f32 %v6216_v38, %v6170_v41  ;;  %v6176_v37 = vadd.f32 %v6175_v35, %v6174_v43 }
 0x51b   : > { %v6217_v25 = vpop.f32.mrb[128].mxu1 }
 0x51c   : > { %v6218_v29 = vpop.f32.mrb[129].mxu1 }
 0x51d   : > { %v6219_v53 = vadd.f32 %v6218_v29, %v6217_v25  ;;  %v6177_v60 = vpop.f32.mrb[132].mxu0  ;;  %v6220_v46 = vpop.f32.mrb[130].mxu1 }
 0x51e   : > { %v6178_v54 = vpop.f32.mrb[133].mxu0  ;;  %v6221_v57 = vpop.f32.mrb[131].mxu1 }
 0x51f   : > { %v8664_v62 = vadd.f32 %v6219_v53, %v6173_v44  ;;  %v6179_v42 = vadd.f32 %v6178_v54, %v6177_v60  ;;  %v6222_v47 = vadd.f32 %v6221_v57, %v6220_v46  ;;  %v6180_v0 = vpop.f32.mrb[134].mxu0 }
 0x520   : > { %v6181_v3 = vpop.f32.mrb[135].mxu0 }
 0x521   : > { %v8666_v20 = vadd.f32 %v6222_v47, %v6176_v37  ;;  %v6182_v11 = vadd.f32 %v6181_v3, %v6180_v0 }
 0x523   : > { %v6223_v48 = vpop.f32.mrb[132].mxu1 }
 0x524   : > { %v6224_v51 = vpop.f32.mrb[133].mxu1 }
 0x525   : > { %v6225_v14 = vadd.f32 %v6224_v51, %v6223_v48  ;;  %v6183_v13 = vpop.f32.mrb[136].mxu0  ;;  %v6226_v61 = vpop.f32.mrb[134].mxu1 }
 0x526   : > { %v6184_v5 = vpop.f32.mrb[137].mxu0  ;;  %v6227_v10 = vpop.f32.mrb[135].mxu1 }
 0x527   : > { %v8668_v7 = vadd.f32 %v6225_v14, %v6179_v42  ;;  %v6185_v2 = vadd.f32 %v6184_v5, %v6183_v13  ;;  %v6228_v17 = vadd.f32 %v6227_v10, %v6226_v61  ;;  %v6186_v40 = vpop.f32.mrb[138].mxu0 }
 0x528   : > { %v6187_v18 = vpop.f32.mrb[139].mxu0 }
 0x529   : > { %v8670_v27 = vadd.f32 %v6228_v17, %v6182_v11  ;;  %v6188_v63 = vadd.f32 %v6187_v18, %v6186_v40 }
 0x52b   : > { %v6229_v30 = vpop.f32.mrb[136].mxu1 }
 0x52c   : > { %v6230_v45 = vpop.f32.mrb[137].mxu1 }
 0x52d   : > { %v6231_v9 = vadd.f32 %v6230_v45, %v6229_v30  ;;  %v6232_v1 = vpop.f32.mrb[138].mxu1  ;;  %v6251_v19 = vpop.f32.mrb[140].mxu0 }
 0x52e   : > { %v6233_v23 = vpop.f32.mrb[139].mxu1  ;;  %v6252_v6 = vpop.f32.mrb[141].mxu0 }
 0x52f   : > { %v8672_v22 = vadd.f32 %v6231_v9, %v6185_v2  ;;  %v6234_v28 = vadd.f32 %v6233_v23, %v6232_v1  ;;  %v6253_v32 = vadd.f32 %v6252_v6, %v6251_v19  ;;  %v6254_v34 = vpop.f32.mrb[142].mxu0 }
 0x530   : > { %v6255_v12 = vpop.f32.mrb[143].mxu0 }
 0x531   : > { %v8674_v21 = vadd.f32 %v6234_v28, %v6188_v63  ;;  %v4190_v39 = vadd.f32 %v6253_v32, %v3925_v15  ;;  %v6256_v52 = vadd.f32 %v6255_v12, %v6254_v34 }
 0x533   : > { %v4193_v50 = vadd.f32 %v6256_v52, %v3928_v26  ;;  %v6297_v33 = vpop.f32.mrb[140].mxu1 }
 0x534   : > { %v6298_v55 = vpop.f32.mrb[141].mxu1 }
 0x535   : > { %v6299_v8 = vadd.f32 %v6298_v55, %v6297_v33  ;;  %v6257_v41 = vpop.f32.mrb[144].mxu0  ;;  %v6300_v24 = vpop.f32.mrb[142].mxu1 }
 0x536   : > { %v6258_v4 = vpop.f32.mrb[145].mxu0  ;;  %v6301_v58 = vpop.f32.mrb[143].mxu1 }
 0x537   : > { %v8676_v59 = vadd.f32 %v6299_v8, %v4190_v39  ;;  %v6259_v56 = vadd.f32 %v6258_v4, %v6257_v41  ;;  %v6302_v31 = vadd.f32 %v6301_v58, %v6300_v24  ;;  %v6260_v16 = vpop.f32.mrb[146].mxu0 }
 0x538   : > { %v6261_v44 = vpop.f32.mrb[147].mxu0 }
 0x539   : > { %v4198_v38 = vadd.f32 %v6259_v56, %v8662_v49  ;;  %v8679_v43 = vadd.f32 %v6302_v31, %v4193_v50  ;;  %v6262_v15 = vadd.f32 %v6261_v44, %v6260_v16 }
 0x53b   : > { %v4201_v35 = vadd.f32 %v6262_v15, %v3936_v36  ;;  %v6303_v26 = vpop.f32.mrb[144].mxu1 }
 0x53c   : > { %v6304_v37 = vpop.f32.mrb[145].mxu1 }
 0x53d   : > { %v6305_v25 = vadd.f32 %v6304_v37, %v6303_v26  ;;  %v6263_v29 = vpop.f32.mrb[148].mxu0  ;;  %v6306_v53 = vpop.f32.mrb[146].mxu1 }
 0x53e   : > { %v6264_v60 = vpop.f32.mrb[149].mxu0  ;;  %v6307_v46 = vpop.f32.mrb[147].mxu1 }
 0x53f   : > { %v8681_v54 = vadd.f32 %v6305_v25, %v4198_v38  ;;  %v6265_v57 = vadd.f32 %v6264_v60, %v6263_v29  ;;  %v6308_v42 = vadd.f32 %v6307_v46, %v6306_v53  ;;  %v6266_v47 = vpop.f32.mrb[150].mxu0 }
 0x540   : > { %v6267_v0 = vpop.f32.mrb[151].mxu0 }
 0x541   : > { %v4206_v3 = vadd.f32 %v6265_v57, %v8664_v62  ;;  %v8684_v49 = vadd.f32 %v6308_v42, %v4201_v35  ;;  %v6268_v11 = vadd.f32 %v6267_v0, %v6266_v47 }
 0x543   : > { %v4209_v36 = vadd.f32 %v6268_v11, %v8666_v20  ;;  %v6309_v48 = vpop.f32.mrb[148].mxu1 }
 0x544   : > { %v6310_v51 = vpop.f32.mrb[149].mxu1 }
 0x545   : > { %v6311_v14 = vadd.f32 %v6310_v51, %v6309_v48  ;;  %v6269_v13 = vpop.f32.mrb[152].mxu0  ;;  %v6312_v61 = vpop.f32.mrb[150].mxu1 }
 0x546   : > { %v6270_v5 = vpop.f32.mrb[153].mxu0  ;;  %v6313_v10 = vpop.f32.mrb[151].mxu1 }
 0x547   : > { %v8687_v2 = vadd.f32 %v6311_v14, %v4206_v3  ;;  %v6271_v17 = vadd.f32 %v6270_v5, %v6269_v13  ;;  %v6314_v40 = vadd.f32 %v6313_v10, %v6312_v61  ;;  %v6272_v18 = vpop.f32.mrb[154].mxu0 }
 0x548   : > { %v6273_v63 = vpop.f32.mrb[155].mxu0 }
 0x549   : > { %v4214_v62 = vadd.f32 %v6271_v17, %v8668_v7  ;;  %v8690_v30 = vadd.f32 %v6314_v40, %v4209_v36  ;;  %v6274_v45 = vadd.f32 %v6273_v63, %v6272_v18 }
 0x54b   : > { %v4217_v20 = vadd.f32 %v6274_v45, %v8670_v27  ;;  %v6315_v9 = vpop.f32.mrb[152].mxu1 }
 0x54c   : > { %v6316_v1 = vpop.f32.mrb[153].mxu1 }
 0x54d   : > { %v6317_v19 = vadd.f32 %v6316_v1, %v6315_v9  ;;  %v6275_v23 = vpop.f32.mrb[156].mxu0  ;;  %v6318_v6 = vpop.f32.mrb[154].mxu1 }
 0x54e   : > { %v6276_v28 = vpop.f32.mrb[157].mxu0  ;;  %v6319_v32 = vpop.f32.mrb[155].mxu1 }
 0x54f   : > { %v8693_v34 = vadd.f32 %v6317_v19, %v4214_v62  ;;  %v6277_v12 = vadd.f32 %v6276_v28, %v6275_v23  ;;  %v6320_v39 = vadd.f32 %v6319_v32, %v6318_v6  ;;  %v6278_v52 = vpop.f32.mrb[158].mxu0 }
 0x550   : > { %v6279_v50 = vpop.f32.mrb[159].mxu0 }
 0x551   : > { %v4222_v7 = vadd.f32 %v6277_v12, %v8672_v22  ;;  %v8696_v33 = vadd.f32 %v6320_v39, %v4217_v20  ;;  %v6280_v55 = vadd.f32 %v6279_v50, %v6278_v52 }
 0x553   : > { %v4225_v27 = vadd.f32 %v6280_v55, %v8674_v21  ;;  %v6321_v8 = vpop.f32.mrb[156].mxu1 }
 0x554   : > { %v6322_v41 = vpop.f32.mrb[157].mxu1 }
 0x555   : > { %v6323_v24 = vadd.f32 %v6322_v41, %v6321_v8  ;;  %v6324_v4 = vpop.f32.mrb[158].mxu1  ;;  %v6343_v58 = vpop.f32.mrb[160].mxu0 }
 0x556   : > { %v6325_v56 = vpop.f32.mrb[159].mxu1  ;;  %v6344_v31 = vpop.f32.mrb[161].mxu0 }
 0x557   : > { %v8699_v16 = vadd.f32 %v6323_v24, %v4222_v7  ;;  %v6326_v44 = vadd.f32 %v6325_v56, %v6324_v4  ;;  %v6345_v38 = vadd.f32 %v6344_v31, %v6343_v58  ;;  %v6346_v15 = vpop.f32.mrb[162].mxu0 }
 0x558   : > { %v6347_v35 = vpop.f32.mrb[163].mxu0 }
 0x559   : > { %v8701_v26 = vadd.f32 %v6326_v44, %v4225_v27  ;;  %v6348_v22 = vadd.f32 %v6347_v35, %v6346_v15 }
 0x55b   : > { %v6389_v37 = vpop.f32.mrb[160].mxu1 }
 0x55c   : > { %v6390_v25 = vpop.f32.mrb[161].mxu1 }
 0x55d   : > { %v6391_v29 = vadd.f32 %v6390_v25, %v6389_v37  ;;  %v6349_v21 = vpop.f32.mrb[164].mxu0  ;;  %v6392_v53 = vpop.f32.mrb[162].mxu1 }
 0x55e   : > { %v6350_v60 = vpop.f32.mrb[165].mxu0  ;;  %v6393_v46 = vpop.f32.mrb[163].mxu1 }
 0x55f   : > { %v4686_v57 = vadd.f32 %v6391_v29, %v6345_v38  ;;  %v6351_v42 = vadd.f32 %v6350_v60, %v6349_v21  ;;  %v6394_v47 = vadd.f32 %v6393_v46, %v6392_v53  ;;  %v6352_v0 = vpop.f32.mrb[166].mxu0 }
 0x560   : > { %v6353_v3 = vpop.f32.mrb[167].mxu0 }
 0x561   : > { %v8704_v11 = vadd.f32 %v4686_v57, %v8676_v59  ;;  %v4689_v36 = vadd.f32 %v6394_v47, %v6348_v22  ;;  %v6354_v48 = vadd.f32 %v6353_v3, %v6352_v0 }
 0x563   : > { %v8707_v51 = vadd.f32 %v4689_v36, %v8679_v43  ;;  %v6395_v14 = vpop.f32.mrb[164].mxu1 }
 0x564   : > { %v6396_v13 = vpop.f32.mrb[165].mxu1 }
 0x565   : > { %v6397_v61 = vadd.f32 %v6396_v13, %v6395_v14  ;;  %v6355_v5 = vpop.f32.mrb[168].mxu0  ;;  %v6398_v10 = vpop.f32.mrb[166].mxu1 }
 0x566   : > { %v6356_v17 = vpop.f32.mrb[169].mxu0  ;;  %v6399_v40 = vpop.f32.mrb[167].mxu1 }
 0x567   : > { %v4694_v18 = vadd.f32 %v6397_v61, %v6351_v42  ;;  %v6357_v63 = vadd.f32 %v6356_v17, %v6355_v5  ;;  %v6400_v62 = vadd.f32 %v6399_v40, %v6398_v10  ;;  %v6358_v45 = vpop.f32.mrb[170].mxu0 }
 0x568   : > { %v6359_v20 = vpop.f32.mrb[171].mxu0 }
 0x569   : > { %v8710_v59 = vadd.f32 %v4694_v18, %v8681_v54  ;;  %v4697_v9 = vadd.f32 %v6400_v62, %v6354_v48  ;;  %v6360_v1 = vadd.f32 %v6359_v20, %v6358_v45 }
 0x56b   : > { %v8713_v43 = vadd.f32 %v4697_v9, %v8684_v49  ;;  %v6401_v19 = vpop.f32.mrb[168].mxu1 }
 0x56c   : > { %v6402_v23 = vpop.f32.mrb[169].mxu1 }
 0x56d   : > { %v6403_v6 = vadd.f32 %v6402_v23, %v6401_v19  ;;  %v6361_v28 = vpop.f32.mrb[172].mxu0  ;;  %v6404_v32 = vpop.f32.mrb[170].mxu1 }
 0x56e   : > { %v6362_v12 = vpop.f32.mrb[173].mxu0  ;;  %v6405_v39 = vpop.f32.mrb[171].mxu1 }
 0x56f   : > { %v4702_v52 = vadd.f32 %v6403_v6, %v6357_v63  ;;  %v6363_v50 = vadd.f32 %v6362_v12, %v6361_v28  ;;  %v6406_v7 = vadd.f32 %v6405_v39, %v6404_v32  ;;  %v6364_v55 = vpop.f32.mrb[174].mxu0 }
 0x570   : > { %v6365_v27 = vpop.f32.mrb[175].mxu0 }
 0x571   : > { %v8716_v54 = vadd.f32 %v4702_v52, %v8687_v2  ;;  %v4705_v8 = vadd.f32 %v6406_v7, %v6360_v1  ;;  %v6366_v41 = vadd.f32 %v6365_v27, %v6364_v55 }
 0x573   : > { %v8719_v49 = vadd.f32 %v4705_v8, %v8690_v30  ;;  %v6407_v24 = vpop.f32.mrb[172].mxu1 }
 0x574   : > { %v6408_v4 = vpop.f32.mrb[173].mxu1 }
 0x575   : > { %v6409_v58 = vadd.f32 %v6408_v4, %v6407_v24  ;;  %v6367_v56 = vpop.f32.mrb[176].mxu0  ;;  %v6410_v31 = vpop.f32.mrb[174].mxu1 }
 0x576   : > { %v6368_v44 = vpop.f32.mrb[177].mxu0  ;;  %v6411_v38 = vpop.f32.mrb[175].mxu1 }
 0x577   : > { %v4710_v15 = vadd.f32 %v6409_v58, %v6363_v50  ;;  %v6369_v35 = vadd.f32 %v6368_v44, %v6367_v56  ;;  %v6412_v22 = vadd.f32 %v6411_v38, %v6410_v31  ;;  %v6370_v37 = vpop.f32.mrb[178].mxu0 }
 0x578   : > { %v6371_v25 = vpop.f32.mrb[179].mxu0 }
 0x579   : > { %v8722_v2 = vadd.f32 %v4710_v15, %v8693_v34  ;;  %v4713_v29 = vadd.f32 %v6412_v22, %v6366_v41  ;;  %v6372_v21 = vadd.f32 %v6371_v25, %v6370_v37 }
 0x57b   : > { %v8725_v30 = vadd.f32 %v4713_v29, %v8696_v33  ;;  %v6413_v53 = vpop.f32.mrb[176].mxu1 }
 0x57c   : > { %v6414_v60 = vpop.f32.mrb[177].mxu1 }
 0x57d   : > { %v6415_v46 = vadd.f32 %v6414_v60, %v6413_v53  ;;  %v6416_v57 = vpop.f32.mrb[178].mxu1  ;;  %v6435_v42 = vpop.f32.mrb[180].mxu0 }
 0x57e   : > { %v6417_v47 = vpop.f32.mrb[179].mxu1  ;;  %v6436_v0 = vpop.f32.mrb[181].mxu0 }
 0x57f   : > { %v4718_v3 = vadd.f32 %v6415_v46, %v6369_v35  ;;  %v6418_v36 = vadd.f32 %v6417_v47, %v6416_v57  ;;  %v6437_v48 = vadd.f32 %v6436_v0, %v6435_v42  ;;  %v6438_v14 = vpop.f32.mrb[182].mxu0 }
 0x580   : > { %v6439_v13 = vpop.f32.mrb[183].mxu0 }
 0x581   : > { %v8728_v34 = vadd.f32 %v4718_v3, %v8699_v16  ;;  %v4721_v61 = vadd.f32 %v6418_v36, %v6372_v21  ;;  %v6440_v5 = vadd.f32 %v6439_v13, %v6438_v14  ;;  %v8737_v16 = vld [vmem:[%s8785_s8] ss:$0 sm:$0xff] }
 0x583   : > { %v8731_v33 = vadd.f32 %v4721_v61, %v8701_v26  ;;  %v6481_v10 = vpop.f32.mrb[180].mxu1 }
 0x584   : > { %v6482_v17 = vpop.f32.mrb[181].mxu1 }
 0x585   : > { %v6483_v40 = vadd.f32 %v6482_v17, %v6481_v10  ;;  %v6441_v18 = vpop.f32.mrb[184].mxu0  ;;  %v6484_v63 = vpop.f32.mrb[182].mxu1 }
 0x586   : > { %v6442_v62 = vpop.f32.mrb[185].mxu0  ;;  %v6485_v45 = vpop.f32.mrb[183].mxu1 }
 0x587   : > { %v5119_v20 = vadd.f32 %v6483_v40, %v6437_v48  ;;  %v6443_v9 = vadd.f32 %v6442_v62, %v6441_v18  ;;  %v6486_v1 = vadd.f32 %v6485_v45, %v6484_v63  ;;  %v6444_v19 = vpop.f32.mrb[186].mxu0 }
 0x588   : > { %v6445_v23 = vpop.f32.mrb[187].mxu0 }
 0x589   : > { %v5157_v26 = vadd.f32 %v5119_v20, %v8704_v11  ;;  %v5122_v6 = vadd.f32 %v6486_v1, %v6440_v5  ;;  %v6446_v28 = vadd.f32 %v6445_v23, %v6444_v19 }
 0x58b   : > { %v5174_v32 = vadd.f32 %v8737_v16, %v5157_v26  ;;  %v5158_v12 = vadd.f32 %v5122_v6, %v8707_v51  ;;  %v6487_v39 = vpop.f32.mrb[184].mxu1 }
 0x58c   : > { %v6488_v52 = vpop.f32.mrb[185].mxu1 }
 0x58d   : > { %5184 = vst [vmem:[%s8743_s10] sm:$0xff] %v5174_v32  ;;  %v5175_v50 = vadd.f32 %v8737_v16, %v5158_v12  ;;  %v6489_v7 = vadd.f32 %v6488_v52, %v6487_v39  ;;  %v6447_v11 = vpop.f32.mrb[188].mxu0  ;;  %v6490_v55 = vpop.f32.mrb[186].mxu1 }
 0x58e   : > { %v6448_v27 = vpop.f32.mrb[189].mxu0  ;;  %v6491_v8 = vpop.f32.mrb[187].mxu1 }
 0x58f   : > { %5185 = vst [vmem:[%s8743_s10 + $0x8] sm:$0xff] %v5175_v50  ;;  %v5127_v41 = vadd.f32 %v6489_v7, %v6443_v9  ;;  %v6449_v24 = vadd.f32 %v6448_v27, %v6447_v11  ;;  %v6492_v4 = vadd.f32 %v6491_v8, %v6490_v55  ;;  %v6450_v58 = vpop.f32.mrb[190].mxu0 }
 0x590   : > { %v6451_v56 = vpop.f32.mrb[191].mxu0 }
 0x591   : > { %v5159_v51 = vadd.f32 %v5127_v41, %v8710_v59  ;;  %v5130_v31 = vadd.f32 %v6492_v4, %v6446_v28  ;;  %v6452_v44 = vadd.f32 %v6451_v56, %v6450_v58 }
 0x593   : > { %v5176_v38 = vadd.f32 %v8737_v16, %v5159_v51  ;;  %v5160_v15 = vadd.f32 %v5130_v31, %v8713_v43  ;;  %v6493_v35 = vpop.f32.mrb[188].mxu1 }
 0x594   : > { %v6494_v22 = vpop.f32.mrb[189].mxu1 }
 0x595   : > { %5186 = vst [vmem:[%s8743_s10 + $0x10] sm:$0xff] %v5176_v38  ;;  %v5177_v37 = vadd.f32 %v8737_v16, %v5160_v15  ;;  %v6495_v25 = vadd.f32 %v6494_v22, %v6493_v35  ;;  %v6453_v29 = vpop.f32.mrb[192].mxu0  ;;  %v6496_v21 = vpop.f32.mrb[190].mxu1 }
 0x596   : > { %v6454_v53 = vpop.f32.mrb[193].mxu0  ;;  %v6497_v60 = vpop.f32.mrb[191].mxu1 }
 0x597   : > { %5187 = vst [vmem:[%s8743_s10 + $0x18] sm:$0xff] %v5177_v37  ;;  %v5135_v46 = vadd.f32 %v6495_v25, %v6449_v24  ;;  %v6455_v59 = vadd.f32 %v6454_v53, %v6453_v29  ;;  %v6498_v57 = vadd.f32 %v6497_v60, %v6496_v21  ;;  %v6456_v42 = vpop.f32.mrb[194].mxu0 }
 0x598   : > { %v6457_v47 = vpop.f32.mrb[195].mxu0 }
 0x599   : > { %v5161_v43 = vadd.f32 %v5135_v46, %v8716_v54  ;;  %v5138_v0 = vadd.f32 %v6498_v57, %v6452_v44  ;;  %v6458_v3 = vadd.f32 %v6457_v47, %v6456_v42 }
 0x59b   : > { %v5178_v36 = vadd.f32 %v8737_v16, %v5161_v43  ;;  %v5162_v48 = vadd.f32 %v5138_v0, %v8719_v49  ;;  %v6499_v14 = vpop.f32.mrb[192].mxu1 }
 0x59c   : > { %v6500_v13 = vpop.f32.mrb[193].mxu1 }
 0x59d   : > { %5188 = vst [vmem:[%s8743_s10 + $0x20] sm:$0xff] %v5178_v36  ;;  %v5179_v61 = vadd.f32 %v8737_v16, %v5162_v48  ;;  %v6501_v5 = vadd.f32 %v6500_v13, %v6499_v14  ;;  %v6459_v10 = vpop.f32.mrb[196].mxu0  ;;  %v6502_v17 = vpop.f32.mrb[194].mxu1 }
 0x59e   : > { %v6460_v40 = vpop.f32.mrb[197].mxu0  ;;  %v6503_v18 = vpop.f32.mrb[195].mxu1 }
 0x59f   : > { %5189 = vst [vmem:[%s8743_s10 + $0x28] sm:$0xff] %v5179_v61  ;;  %v5143_v63 = vadd.f32 %v6501_v5, %v6455_v59  ;;  %v6461_v54 = vadd.f32 %v6460_v40, %v6459_v10  ;;  %v6504_v62 = vadd.f32 %v6503_v18, %v6502_v17  ;;  %v6462_v45 = vpop.f32.mrb[198].mxu0 }
 0x5a0   : > { %v6463_v20 = vpop.f32.mrb[199].mxu0 }
 0x5a1   : > { %v5163_v49 = vadd.f32 %v5143_v63, %v8722_v2  ;;  %v5146_v9 = vadd.f32 %v6504_v62, %v6458_v3  ;;  %v6464_v1 = vadd.f32 %v6463_v20, %v6462_v45 }
 0x5a3   : > { %v5180_v19 = vadd.f32 %v8737_v16, %v5163_v49  ;;  %v5164_v23 = vadd.f32 %v5146_v9, %v8725_v30  ;;  %v6505_v26 = vpop.f32.mrb[196].mxu1 }
 0x5a4   : > { %v6506_v6 = vpop.f32.mrb[197].mxu1 }
 0x5a5   : > { %5190 = vst [vmem:[%s8743_s10 + $0x30] sm:$0xff] %v5180_v19  ;;  %v5181_v28 = vadd.f32 %v8737_v16, %v5164_v23  ;;  %v6507_v32 = vadd.f32 %v6506_v6, %v6505_v26  ;;  %v6508_v12 = vpop.f32.mrb[198].mxu1 }
 0x5a6   : > { %v6509_v39 = vpop.f32.mrb[199].mxu1 }
 0x5a7   : > { %5191 = vst [vmem:[%s8743_s10 + $0x38] sm:$0xff] %v5181_v28  ;;  %v5151_v52 = vadd.f32 %v6507_v32, %v6461_v54  ;;  %v6510_v50 = vadd.f32 %v6509_v39, %v6508_v12 }
 0x5a9   : > { %v5165_v2 = vadd.f32 %v5151_v52, %v8728_v34  ;;  %v5154_v7 = vadd.f32 %v6510_v50, %v6464_v1 }
 0x5ab   : > { %v5182_v11 = vadd.f32 %v8737_v16, %v5165_v2  ;;  %v5166_v55 = vadd.f32 %v5154_v7, %v8731_v33 }
 0x5ad   : > { %5192 = vst [vmem:[%s8743_s10 + $0x40] sm:$0xff] %v5182_v11  ;;  %v5183_v30 = vadd.f32 %v8737_v16, %v5166_v55 }
 0x5af   : > { %5193 = vst [vmem:[%s8743_s10 + $0x48] sm:$0xff] %v5183_v30 }
 0x5b0 PF: > { %s19_s30 = sadd.s32 1, %s7033_s30  }
 0x5b1   : > { %p16_p4 = scmp.ge.s32.totalorder %s19_s30, 4  }
 0x5b3   :  { %18 = sbr.rel (!%p16_p4) target bundleno = 1 (0x1), region = 96 }

</bundles_post_ra>
